<compile_context>
chip_gen: v7x
topology: tpu7x:2x2x1
jax: 0.10.0
libtpu: 0.0.40
codegen_flags: <defaults>
</compile_context>

<pallas_src>
import jax
import jax.numpy as jnp
from jax.experimental import pallas as pl
from jax.experimental.pallas import tpu as pltpu

EPS = 1e-5
LANE = 128


def _round_up(x, m):
    return (x + m - 1) // m * m


def _conv3x3_im2col(xpad, w_ref, H, W):
    """xpad: (H+2, W+2, Cp) bf16 value; w_ref: (9*Cp, Cp) bf16 ref.

    Returns the conv output as an (H*W, Cp) f32 matrix via one MXU contraction.
    Tap order (kh, kw, ci) matches the weight row flattening in the wrapper.
    """
    Cp = xpad.shape[-1]
    taps = [
        xpad[kh:kh + H, kw:kw + W, :].reshape(H * W, Cp)
        for kh in range(3) for kw in range(3)
    ]
    patches = jnp.concatenate(taps, axis=-1)              # (H*W, 9*Cp), lane-aligned
    return jnp.dot(patches, w_ref[...], preferred_element_type=jnp.float32)


def conv1_stats_kernel(xpad_ref, w_ref, y_ref, stats_ref):
    """conv1 (im2col, bf16 in / f32 acc) + per-sample channel sum & sumsq."""
    _, HP, WP, Cp = xpad_ref.shape
    H, W = HP - 2, WP - 2
    y = _conv3x3_im2col(xpad_ref[0], w_ref, H, W)          # (H*W, Cp) f32
    y_ref[0] = y.reshape(H, W, Cp)
    # BN statistics fused into the conv epilogue (per-sample partial sums).
    stats_ref[0, 0:1, :] = jnp.sum(y, axis=0, keepdims=True)
    stats_ref[0, 1:2, :] = jnp.sum(y * y, axis=0, keepdims=True)


def bn_relu_conv2_kernel(y1_ref, s1_ref, t1_ref, w_ref, y2_ref, stats_ref):
    """bn1 (folded scale/shift) + relu + conv2 (im2col) + per-sample stats."""
    _, H, W, Cp = y1_ref.shape
    scale = s1_ref[...].reshape(1, 1, Cp)
    shift = t1_ref[...].reshape(1, 1, Cp)
    a = jnp.maximum(y1_ref[0] * scale + shift, 0.0).astype(jnp.bfloat16)

    # Build the 1-pixel zero halo in-register (no padded scratch, no full zero-fill).
    zrow = jnp.zeros((1, W, Cp), jnp.bfloat16)
    zcol = jnp.zeros((H + 2, 1, Cp), jnp.bfloat16)
    ap = jnp.concatenate([zrow, a, zrow], axis=0)          # (H+2, W,   Cp)
    ap = jnp.concatenate([zcol, ap, zcol], axis=1)         # (H+2, W+2, Cp)

    y2 = _conv3x3_im2col(ap, w_ref, H, W)                  # (H*W, Cp) f32
    y2_ref[0] = y2.reshape(H, W, Cp)
    stats_ref[0, 0:1, :] = jnp.sum(y2, axis=0, keepdims=True)
    stats_ref[0, 1:2, :] = jnp.sum(y2 * y2, axis=0, keepdims=True)


def bn_add_relu_kernel(y2_ref, x_ref, s2_ref, t2_ref, o_ref):
    """bn2 (folded scale/shift) + residual add + relu, lane-dense elementwise."""
    _, H, W, Cp = y2_ref.shape
    scale = s2_ref[...].reshape(1, 1, Cp)
    shift = t2_ref[...].reshape(1, 1, Cp)
    o_ref[0] = jnp.maximum(y2_ref[0] * scale + shift + x_ref[0], 0.0)


@jax.jit
def basic_block_pallas(x_nchw, w1, w2, g1, b1, g2, b2):
    """x_nchw: (N, C, H, W) f32; w*: (Cout, Cin, 3, 3) PyTorch layout; g*, b*: (C,)."""
    N, C, H, W = x_nchw.shape
    Cp = max(LANE, _round_up(C, LANE))
    cpad = Cp - C
    HP, WP = H + 2, W + 2
    cnt = N * H * W

    # ---- wrapper-side layout: NCHW -> lane-dense NHWC with padded channels ----
    x_nhwc = jnp.transpose(x_nchw, (0, 2, 3, 1)).astype(jnp.float32)
    x_nhwc = jnp.pad(x_nhwc, ((0, 0), (0, 0), (0, 0), (0, cpad)))       # residual, f32
    xpad = jnp.pad(x_nhwc, ((0, 0), (1, 1), (1, 1), (0, 0))).astype(jnp.bfloat16)

    def prep_w(w):
        whwio = jnp.transpose(w, (2, 3, 1, 0)).astype(jnp.float32)      # (3,3,Ci,Co)
        whwio = jnp.pad(whwio, ((0, 0), (0, 0), (0, cpad), (0, cpad)))
        return whwio.reshape(9 * Cp, Cp).astype(jnp.bfloat16)           # rows=(kh,kw,ci)

    w1p, w2p = prep_w(w1), prep_w(w2)
    g1p = jnp.pad(g1.astype(jnp.float32), (0, cpad))
    b1p = jnp.pad(b1.astype(jnp.float32), (0, cpad))
    g2p = jnp.pad(g2.astype(jnp.float32), (0, cpad))
    b2p = jnp.pad(b2.astype(jnp.float32), (0, cpad))

    cparams = pltpu.CompilerParams(
        dimension_semantics=("parallel",),
        vmem_limit_bytes=64 * 1024 * 1024,
    )
    conv_flops = 2 * N * H * W * (9 * Cp) * Cp

    # ---- pass 1: conv1 + per-sample BN statistics -----------------------------
    y1, st1 = pl.pallas_call(
        conv1_stats_kernel,
        grid=(N,),
        in_specs=[
            pl.BlockSpec((1, HP, WP, Cp), lambda n: (n, 0, 0, 0)),
            pl.BlockSpec((9 * Cp, Cp), lambda n: (0, 0)),
        ],
        out_specs=[
            pl.BlockSpec((1, H, W, Cp), lambda n: (n, 0, 0, 0)),
            pl.BlockSpec((1, 2, Cp), lambda n: (n, 0, 0)),
        ],
        out_shape=[
            jax.ShapeDtypeStruct((N, H, W, Cp), jnp.float32),
            jax.ShapeDtypeStruct((N, 2, Cp), jnp.float32),
        ],
        compiler_params=cparams,
        cost_estimate=pl.CostEstimate(
            flops=conv_flops,
            transcendentals=0,
            bytes_accessed=N * HP * WP * Cp * 2 + 9 * Cp * Cp * 2
            + N * H * W * Cp * 4),
    )(xpad, w1p)

    def stats_to_affine(st, gamma, beta):
        s = jnp.sum(st, axis=0)                       # (2, Cp): global sum / sumsq
        mean = s[0] / cnt
        var = jnp.maximum(s[1] / cnt - mean * mean, 0.0)   # biased, training-mode
        scale = gamma * jax.lax.rsqrt(var + EPS)
        shift = beta - mean * scale
        return scale.reshape(1, Cp), shift.reshape(1, Cp)

    s1, t1 = stats_to_affine(st1, g1p, b1p)

    # ---- pass 2: bn1 + relu + conv2 + per-sample BN statistics ----------------
    y2, st2 = pl.pallas_call(
        bn_relu_conv2_kernel,
        grid=(N,),
        in_specs=[
            pl.BlockSpec((1, H, W, Cp), lambda n: (n, 0, 0, 0)),
            pl.BlockSpec((1, Cp), lambda n: (0, 0)),
            pl.BlockSpec((1, Cp), lambda n: (0, 0)),
            pl.BlockSpec((9 * Cp, Cp), lambda n: (0, 0)),
        ],
        out_specs=[
            pl.BlockSpec((1, H, W, Cp), lambda n: (n, 0, 0, 0)),
            pl.BlockSpec((1, 2, Cp), lambda n: (n, 0, 0)),
        ],
        out_shape=[
            jax.ShapeDtypeStruct((N, H, W, Cp), jnp.float32),
            jax.ShapeDtypeStruct((N, 2, Cp), jnp.float32),
        ],
        compiler_params=cparams,
        cost_estimate=pl.CostEstimate(
            flops=conv_flops,
            transcendentals=0,
            bytes_accessed=2 * N * H * W * Cp * 4 + 9 * Cp * Cp * 2),
    )(y1, s1, t1, w2p)

    s2, t2 = stats_to_affine(st2, g2p, b2p)

    # ---- pass 3: bn2 + residual add + relu (lane-dense elementwise) -----------
    out_nhwc = pl.pallas_call(
        bn_add_relu_kernel,
        grid=(N,),
        in_specs=[
            pl.BlockSpec((1, H, W, Cp), lambda n: (n, 0, 0, 0)),
            pl.BlockSpec((1, H, W, Cp), lambda n: (n, 0, 0, 0)),
            pl.BlockSpec((1, Cp), lambda n: (0, 0)),
            pl.BlockSpec((1, Cp), lambda n: (0, 0)),
        ],
        out_specs=pl.BlockSpec((1, H, W, Cp), lambda n: (n, 0, 0, 0)),
        out_shape=jax.ShapeDtypeStruct((N, H, W, Cp), jnp.float32),
        compiler_params=cparams,
    )(y2, x_nhwc, s2, t2)

    return jnp.transpose(out_nhwc[..., :C], (0, 3, 1, 2))


def basic_block_reference(x_nchw, w1, w2, g1, b1, g2, b2):
    """Pure-JAX reference (NCHW, f32, HIGHEST precision) for validation."""
    dn = ('NCHW', 'OIHW', 'NCHW')
    prec = jax.lax.Precision.HIGHEST

    def bn(y, gamma, beta):
        mean = jnp.mean(y, axis=(0, 2, 3), keepdims=True)
        var = jnp.mean(jnp.square(y - mean), axis=(0, 2, 3), keepdims=True)
        return (y - mean) * jax.lax.rsqrt(var + EPS) * gamma.reshape(1, -1, 1, 1) \
               + beta.reshape(1, -1, 1, 1)

    y = jax.lax.conv_general_dilated(x_nchw, w1, (1, 1), 'SAME',
                                     dimension_numbers=dn, precision=prec)
    y = jnp.maximum(bn(y, g1, b1), 0.0)
    y = jax.lax.conv_general_dilated(y, w2, (1, 1), 'SAME',
                                     dimension_numbers=dn, precision=prec)
    y = bn(y, g2, b2)
    return jnp.maximum(y + x_nchw, 0.0)


if __name__ == "__main__":
    # Small deterministic config: in_chans = out_chans = 8, stride = 1,
    # down_sample = None (required so the residual add is shape-compatible).
    N, C, H, W = 2, 8, 16, 16

    key = jax.random.PRNGKey(0)
    kx, kw1, kw2, kg1, kb1, kg2, kb2 = jax.random.split(key, 7)

    x = jax.random.normal(kx, (N, C, H, W), dtype=jnp.float32)
    w1 = 0.1 * jax.random.normal(kw1, (C, C, 3, 3), dtype=jnp.float32)
    w2 = 0.1 * jax.random.normal(kw2, (C, C, 3, 3), dtype=jnp.float32)
    g1 = 1.0 + 0.1 * jax.random.normal(kg1, (C,), dtype=jnp.float32)
    b1 = 0.1 * jax.random.normal(kb1, (C,), dtype=jnp.float32)
    g2 = 1.0 + 0.1 * jax.random.normal(kg2, (C,), dtype=jnp.float32)
    b2 = 0.1 * jax.random.normal(kb2, (C,), dtype=jnp.float32)

    out = jax.block_until_ready(basic_block_pallas(x, w1, w2, g1, b1, g2, b2))
    ref = jax.block_until_ready(basic_block_reference(x, w1, w2, g1, b1, g2, b2))

    assert out.shape == (N, C, H, W)
    # bf16 MXU inputs (f32 accumulation) => tolerance loosened vs the f32 reference.
    assert jnp.allclose(out, ref, rtol=3e-2, atol=3e-2), "mismatch vs JAX reference"

    print("KERNEL_OK")
</pallas_src>

<mosaic_0001>
module attributes {stable_mosaic.version = 11 : i64} {
  func.func @conv1_stats_kernel(%arg0: i32, %arg1: memref<1x18x18x128xbf16, #tpu.memory_space<vmem>>, %arg2: memref<1152x128xbf16, #tpu.memory_space<vmem>>, %arg3: memref<1x16x16x128xf32, #tpu.memory_space<vmem>>, %arg4: memref<1x2x128xf32, #tpu.memory_space<vmem>>) attributes {dimension_semantics = [#tpu.dimension_semantics<parallel>], iteration_bounds = array<i64: 2>, scalar_prefetch = 0 : i64, scratch_operands = 0 : i64, tpu.core_type = #tpu.core_type<tc>, window_params = [{transform_indices = @transform_0, window_bounds = array<i64: 1, 18, 18, 128>}, {pipeline_mode = #tpu.pipeline_mode<synchronous>, transform_indices = @transform_1, window_bounds = array<i64: 1152, 128>}, {transform_indices = @transform_2, window_bounds = array<i64: 1, 16, 16, 128>}, {transform_indices = @transform_3, window_bounds = array<i64: 1, 2, 128>}]} {
    %c0 = arith.constant 0 : index
    %c0_0 = arith.constant 0 : index
    %c0_1 = arith.constant 0 : index
    %c0_2 = arith.constant 0 : index
    %0 = vector.load %arg1[%c0, %c0_0, %c0_1, %c0_2] : memref<1x18x18x128xbf16, #tpu.memory_space<vmem>>, vector<1x18x18x128xbf16>
    %1 = vector.shape_cast %0 : vector<1x18x18x128xbf16> to vector<18x18x128xbf16>
    %2 = vector.extract_strided_slice %1 {offsets = [0, 0, 0], sizes = [16, 16, 128], strides = [1, 1, 1]} : vector<18x18x128xbf16> to vector<16x16x128xbf16>
    %3 = vector.shape_cast %2 : vector<16x16x128xbf16> to vector<256x128xbf16>
    %4 = vector.extract_strided_slice %1 {offsets = [0, 1, 0], sizes = [16, 16, 128], strides = [1, 1, 1]} : vector<18x18x128xbf16> to vector<16x16x128xbf16>
    %5 = vector.shape_cast %4 : vector<16x16x128xbf16> to vector<256x128xbf16>
    %6 = vector.extract_strided_slice %1 {offsets = [0, 2, 0], sizes = [16, 16, 128], strides = [1, 1, 1]} : vector<18x18x128xbf16> to vector<16x16x128xbf16>
    %7 = vector.shape_cast %6 : vector<16x16x128xbf16> to vector<256x128xbf16>
    %8 = vector.extract_strided_slice %1 {offsets = [1, 0, 0], sizes = [16, 16, 128], strides = [1, 1, 1]} : vector<18x18x128xbf16> to vector<16x16x128xbf16>
    %9 = vector.shape_cast %8 : vector<16x16x128xbf16> to vector<256x128xbf16>
    %10 = vector.extract_strided_slice %1 {offsets = [1, 1, 0], sizes = [16, 16, 128], strides = [1, 1, 1]} : vector<18x18x128xbf16> to vector<16x16x128xbf16>
    %11 = vector.shape_cast %10 : vector<16x16x128xbf16> to vector<256x128xbf16>
    %12 = vector.extract_strided_slice %1 {offsets = [1, 2, 0], sizes = [16, 16, 128], strides = [1, 1, 1]} : vector<18x18x128xbf16> to vector<16x16x128xbf16>
    %13 = vector.shape_cast %12 : vector<16x16x128xbf16> to vector<256x128xbf16>
    %14 = vector.extract_strided_slice %1 {offsets = [2, 0, 0], sizes = [16, 16, 128], strides = [1, 1, 1]} : vector<18x18x128xbf16> to vector<16x16x128xbf16>
    %15 = vector.shape_cast %14 : vector<16x16x128xbf16> to vector<256x128xbf16>
    %16 = vector.extract_strided_slice %1 {offsets = [2, 1, 0], sizes = [16, 16, 128], strides = [1, 1, 1]} : vector<18x18x128xbf16> to vector<16x16x128xbf16>
    %17 = vector.shape_cast %16 : vector<16x16x128xbf16> to vector<256x128xbf16>
    %18 = vector.extract_strided_slice %1 {offsets = [2, 2, 0], sizes = [16, 16, 128], strides = [1, 1, 1]} : vector<18x18x128xbf16> to vector<16x16x128xbf16>
    %19 = vector.shape_cast %18 : vector<16x16x128xbf16> to vector<256x128xbf16>
    %20 = tpu.concatenate %3, %5, %7, %9, %11, %13, %15, %17, %19 in 1 : vector<256x128xbf16>, vector<256x128xbf16>, vector<256x128xbf16>, vector<256x128xbf16>, vector<256x128xbf16>, vector<256x128xbf16>, vector<256x128xbf16>, vector<256x128xbf16>, vector<256x128xbf16> -> vector<256x1152xbf16>
    %c0_3 = arith.constant 0 : index
    %c0_4 = arith.constant 0 : index
    %21 = vector.load %arg2[%c0_3, %c0_4] : memref<1152x128xbf16, #tpu.memory_space<vmem>>, vector<1152x128xbf16>
    %cst = arith.constant dense<0.000000e+00> : vector<256x128xf32>
    %22 = tpu.matmul %20, %21, %cst {dimension_numbers = #tpu.dot_dimension_numbers<[1], [0], [0], [1], [0, 0, 1, 1], [], []>} : vector<256x1152xbf16>, vector<1152x128xbf16>, vector<256x128xf32> -> vector<256x128xf32>
    %23 = vector.shape_cast %22 : vector<256x128xf32> to vector<16x16x128xf32>
    %c0_5 = arith.constant 0 : index
    %c0_6 = arith.constant 0 : index
    %c0_7 = arith.constant 0 : index
    %c0_8 = arith.constant 0 : index
    %24 = vector.load %arg3[%c0_5, %c0_6, %c0_7, %c0_8] : memref<1x16x16x128xf32, #tpu.memory_space<vmem>>, vector<1x16x16x128xf32>
    %25 = vector.shape_cast %24 : vector<1x16x16x128xf32> to vector<16x16x128xf32>
    %26 = vector.shape_cast %23 : vector<16x16x128xf32> to vector<1x16x16x128xf32>
    tpu.vector_store %arg3[%c0_5, %c0_6, %c0_7, %c0_8], %26 {strides = array<i32>} : memref<1x16x16x128xf32, #tpu.memory_space<vmem>>, vector<1x16x16x128xf32>,
    %cst_9 = arith.constant dense<0.000000e+00> : vector<128xf32>
    %27 = vector.multi_reduction <add>, %22, %cst_9 [0] : vector<256x128xf32> to vector<128xf32>
    %28 = vector.shape_cast %27 : vector<128xf32> to vector<1x128xf32>
    %c0_10 = arith.constant 0 : index
    %c0_11 = arith.constant 0 : index
    %c0_12 = arith.constant 0 : index
    %29 = vector.load %arg4[%c0_10, %c0_11, %c0_12] : memref<1x2x128xf32, #tpu.memory_space<vmem>>, vector<1x1x128xf32>
    %30 = vector.shape_cast %29 : vector<1x1x128xf32> to vector<1x128xf32>
    %31 = vector.shape_cast %28 : vector<1x128xf32> to vector<1x1x128xf32>
    tpu.vector_store %arg4[%c0_10, %c0_11, %c0_12], %31 {strides = array<i32>} : memref<1x2x128xf32, #tpu.memory_space<vmem>>, vector<1x1x128xf32>,
    %32 = arith.mulf %22, %22 : vector<256x128xf32>
    %cst_13 = arith.constant dense<0.000000e+00> : vector<128xf32>
    %33 = vector.multi_reduction <add>, %32, %cst_13 [0] : vector<256x128xf32> to vector<128xf32>
    %34 = vector.shape_cast %33 : vector<128xf32> to vector<1x128xf32>
    %c0_14 = arith.constant 0 : index
    %c1 = arith.constant 1 : index
    %c0_15 = arith.constant 0 : index
    %35 = vector.load %arg4[%c0_14, %c1, %c0_15] : memref<1x2x128xf32, #tpu.memory_space<vmem>>, vector<1x1x128xf32>
    %36 = vector.shape_cast %35 : vector<1x1x128xf32> to vector<1x128xf32>
    %37 = vector.shape_cast %34 : vector<1x128xf32> to vector<1x1x128xf32>
    tpu.vector_store %arg4[%c0_14, %c1, %c0_15], %37 {strides = array<i32>} : memref<1x2x128xf32, #tpu.memory_space<vmem>>, vector<1x1x128xf32>,
    return
  }
  func.func @transform_0(%arg0: i32) -> (i32, i32, i32, i32) {
    %c0_i32 = arith.constant 0 : i32
    %c0_i32_0 = arith.constant 0 : i32
    %c0_i32_1 = arith.constant 0 : i32
    %c0_i32_2 = arith.constant 0 : i32
    return %arg0, %c0_i32, %c0_i32_0, %c0_i32_1 : i32, i32, i32, i32
  }
  func.func @transform_1(%arg0: i32) -> (i32, i32) {
    %c0_i32 = arith.constant 0 : i32
    %c0_i32_0 = arith.constant 0 : i32
    %c0_i32_1 = arith.constant 0 : i32
    return %c0_i32, %c0_i32_0 : i32, i32
  }
  func.func @transform_2(%arg0: i32) -> (i32, i32, i32, i32) {
    %c0_i32 = arith.constant 0 : i32
    %c0_i32_0 = arith.constant 0 : i32
    %c0_i32_1 = arith.constant 0 : i32
    %c0_i32_2 = arith.constant 0 : i32
    return %arg0, %c0_i32, %c0_i32_0, %c0_i32_1 : i32, i32, i32, i32
  }
  func.func @transform_3(%arg0: i32) -> (i32, i32, i32) {
    %c0_i32 = arith.constant 0 : i32
    %c0_i32_0 = arith.constant 0 : i32
    %c0_i32_1 = arith.constant 0 : i32
    return %arg0, %c0_i32, %c0_i32_0 : i32, i32, i32
  }
}

module attributes {stable_mosaic.version = 11 : i64} {
  func.func @bn_add_relu_kernel(%arg0: i32, %arg1: memref<1x16x16x128xf32, #tpu.memory_space<vmem>>, %arg2: memref<1x16x16x128xf32, #tpu.memory_space<vmem>>, %arg3: memref<1x128xf32, #tpu.memory_space<vmem>>, %arg4: memref<1x128xf32, #tpu.memory_space<vmem>>, %arg5: memref<1x16x16x128xf32, #tpu.memory_space<vmem>>) attributes {dimension_semantics = [#tpu.dimension_semantics<parallel>], iteration_bounds = array<i64: 2>, scalar_prefetch = 0 : i64, scratch_operands = 0 : i64, tpu.core_type = #tpu.core_type<tc>, window_params = [{transform_indices = @transform_0, window_bounds = array<i64: 1, 16, 16, 128>}, {transform_indices = @transform_1, window_bounds = array<i64: 1, 16, 16, 128>}, {pipeline_mode = #tpu.pipeline_mode<synchronous>, transform_indices = @transform_2, window_bounds = array<i64: 1, 128>}, {pipeline_mode = #tpu.pipeline_mode<synchronous>, transform_indices = @transform_3, window_bounds = array<i64: 1, 128>}, {transform_indices = @transform_4, window_bounds = array<i64: 1, 16, 16, 128>}]} {
    %c0 = arith.constant 0 : index
    %c0_0 = arith.constant 0 : index
    %0 = vector.load %arg3[%c0, %c0_0] : memref<1x128xf32, #tpu.memory_space<vmem>>, vector<1x128xf32>
    %1 = vector.shape_cast %0 : vector<1x128xf32> to vector<1x1x128xf32>
    %c0_1 = arith.constant 0 : index
    %c0_2 = arith.constant 0 : index
    %2 = vector.load %arg4[%c0_1, %c0_2] : memref<1x128xf32, #tpu.memory_space<vmem>>, vector<1x128xf32>
    %3 = vector.shape_cast %2 : vector<1x128xf32> to vector<1x1x128xf32>
    %c0_3 = arith.constant 0 : index
    %c0_4 = arith.constant 0 : index
    %c0_5 = arith.constant 0 : index
    %c0_6 = arith.constant 0 : index
    %4 = vector.load %arg1[%c0_3, %c0_4, %c0_5, %c0_6] : memref<1x16x16x128xf32, #tpu.memory_space<vmem>>, vector<1x16x16x128xf32>
    %5 = vector.shape_cast %4 : vector<1x16x16x128xf32> to vector<16x16x128xf32>
    %6 = vector.broadcast %1 : vector<1x1x128xf32> to vector<16x16x128xf32>
    %7 = arith.mulf %5, %6 : vector<16x16x128xf32>
    %8 = vector.broadcast %3 : vector<1x1x128xf32> to vector<16x16x128xf32>
    %9 = arith.addf %7, %8 : vector<16x16x128xf32>
    %c0_7 = arith.constant 0 : index
    %c0_8 = arith.constant 0 : index
    %c0_9 = arith.constant 0 : index
    %c0_10 = arith.constant 0 : index
    %10 = vector.load %arg2[%c0_7, %c0_8, %c0_9, %c0_10] : memref<1x16x16x128xf32, #tpu.memory_space<vmem>>, vector<1x16x16x128xf32>
    %11 = vector.shape_cast %10 : vector<1x16x16x128xf32> to vector<16x16x128xf32>
    %12 = arith.addf %9, %11 : vector<16x16x128xf32>
    %cst = arith.constant 0.000000e+00 : f32
    %13 = vector.broadcast %cst : f32 to vector<16x16x128xf32>
    %14 = arith.maximumf %12, %13 : vector<16x16x128xf32>
    %c0_11 = arith.constant 0 : index
    %c0_12 = arith.constant 0 : index
    %c0_13 = arith.constant 0 : index
    %c0_14 = arith.constant 0 : index
    %15 = vector.load %arg5[%c0_11, %c0_12, %c0_13, %c0_14] : memref<1x16x16x128xf32, #tpu.memory_space<vmem>>, vector<1x16x16x128xf32>
    %16 = vector.shape_cast %15 : vector<1x16x16x128xf32> to vector<16x16x128xf32>
    %17 = vector.shape_cast %14 : vector<16x16x128xf32> to vector<1x16x16x128xf32>
    tpu.vector_store %arg5[%c0_11, %c0_12, %c0_13, %c0_14], %17 {strides = array<i32>} : memref<1x16x16x128xf32, #tpu.memory_space<vmem>>, vector<1x16x16x128xf32>,
    return
  }
  func.func @transform_0(%arg0: i32) -> (i32, i32, i32, i32) {
    %c0_i32 = arith.constant 0 : i32
    %c0_i32_0 = arith.constant 0 : i32
    %c0_i32_1 = arith.constant 0 : i32
    %c0_i32_2 = arith.constant 0 : i32
    return %arg0, %c0_i32, %c0_i32_0, %c0_i32_1 : i32, i32, i32, i32
  }
  func.func @transform_1(%arg0: i32) -> (i32, i32, i32, i32) {
    %c0_i32 = arith.constant 0 : i32
    %c0_i32_0 = arith.constant 0 : i32
    %c0_i32_1 = arith.constant 0 : i32
    %c0_i32_2 = arith.constant 0 : i32
    return %arg0, %c0_i32, %c0_i32_0, %c0_i32_1 : i32, i32, i32, i32
  }
  func.func @transform_2(%arg0: i32) -> (i32, i32) {
    %c0_i32 = arith.constant 0 : i32
    %c0_i32_0 = arith.constant 0 : i32
    %c0_i32_1 = arith.constant 0 : i32
    return %c0_i32, %c0_i32_0 : i32, i32
  }
  func.func @transform_3(%arg0: i32) -> (i32, i32) {
    %c0_i32 = arith.constant 0 : i32
    %c0_i32_0 = arith.constant 0 : i32
    %c0_i32_1 = arith.constant 0 : i32
    return %c0_i32, %c0_i32_0 : i32, i32
  }
  func.func @transform_4(%arg0: i32) -> (i32, i32, i32, i32) {
    %c0_i32 = arith.constant 0 : i32
    %c0_i32_0 = arith.constant 0 : i32
    %c0_i32_1 = arith.constant 0 : i32
    %c0_i32_2 = arith.constant 0 : i32
    return %arg0, %c0_i32, %c0_i32_0, %c0_i32_1 : i32, i32, i32, i32
  }
}

module attributes {stable_mosaic.version = 11 : i64} {
  func.func @bn_relu_conv2_kernel(%arg0: i32, %arg1: memref<1x16x16x128xf32, #tpu.memory_space<vmem>>, %arg2: memref<1x128xf32, #tpu.memory_space<vmem>>, %arg3: memref<1x128xf32, #tpu.memory_space<vmem>>, %arg4: memref<1152x128xbf16, #tpu.memory_space<vmem>>, %arg5: memref<1x16x16x128xf32, #tpu.memory_space<vmem>>, %arg6: memref<1x2x128xf32, #tpu.memory_space<vmem>>) attributes {dimension_semantics = [#tpu.dimension_semantics<parallel>], iteration_bounds = array<i64: 2>, scalar_prefetch = 0 : i64, scratch_operands = 0 : i64, tpu.core_type = #tpu.core_type<tc>, window_params = [{transform_indices = @transform_0, window_bounds = array<i64: 1, 16, 16, 128>}, {pipeline_mode = #tpu.pipeline_mode<synchronous>, transform_indices = @transform_1, window_bounds = array<i64: 1, 128>}, {pipeline_mode = #tpu.pipeline_mode<synchronous>, transform_indices = @transform_2, window_bounds = array<i64: 1, 128>}, {pipeline_mode = #tpu.pipeline_mode<synchronous>, transform_indices = @transform_3, window_bounds = array<i64: 1152, 128>}, {transform_indices = @transform_4, window_bounds = array<i64: 1, 16, 16, 128>}, {transform_indices = @transform_5, window_bounds = array<i64: 1, 2, 128>}]} {
    %c0 = arith.constant 0 : index
    %c0_0 = arith.constant 0 : index
    %0 = vector.load %arg2[%c0, %c0_0] : memref<1x128xf32, #tpu.memory_space<vmem>>, vector<1x128xf32>
    %1 = vector.shape_cast %0 : vector<1x128xf32> to vector<1x1x128xf32>
    %c0_1 = arith.constant 0 : index
    %c0_2 = arith.constant 0 : index
    %2 = vector.load %arg3[%c0_1, %c0_2] : memref<1x128xf32, #tpu.memory_space<vmem>>, vector<1x128xf32>
    %3 = vector.shape_cast %2 : vector<1x128xf32> to vector<1x1x128xf32>
    %c0_3 = arith.constant 0 : index
    %c0_4 = arith.constant 0 : index
    %c0_5 = arith.constant 0 : index
    %c0_6 = arith.constant 0 : index
    %4 = vector.load %arg1[%c0_3, %c0_4, %c0_5, %c0_6] : memref<1x16x16x128xf32, #tpu.memory_space<vmem>>, vector<1x16x16x128xf32>
    %5 = vector.shape_cast %4 : vector<1x16x16x128xf32> to vector<16x16x128xf32>
    %6 = vector.broadcast %1 : vector<1x1x128xf32> to vector<16x16x128xf32>
    %7 = arith.mulf %5, %6 : vector<16x16x128xf32>
    %8 = vector.broadcast %3 : vector<1x1x128xf32> to vector<16x16x128xf32>
    %9 = arith.addf %7, %8 : vector<16x16x128xf32>
    %cst = arith.constant 0.000000e+00 : f32
    %10 = vector.broadcast %cst : f32 to vector<16x16x128xf32>
    %11 = arith.maximumf %9, %10 : vector<16x16x128xf32>
    %12 = arith.truncf %11 : vector<16x16x128xf32> to vector<16x16x128xbf16>
    %cst_7 = arith.constant 0.000000e+00 : bf16
    %13 = vector.broadcast %cst_7 : bf16 to vector<1x16x128xbf16>
    %cst_8 = arith.constant 0.000000e+00 : bf16
    %14 = vector.broadcast %cst_8 : bf16 to vector<18x1x128xbf16>
    %15 = tpu.concatenate %13, %12, %13 in 0 : vector<1x16x128xbf16>, vector<16x16x128xbf16>, vector<1x16x128xbf16> -> vector<18x16x128xbf16>
    %16 = tpu.concatenate %14, %15, %14 in 1 : vector<18x1x128xbf16>, vector<18x16x128xbf16>, vector<18x1x128xbf16> -> vector<18x18x128xbf16>
    %17 = vector.extract_strided_slice %16 {offsets = [0, 0, 0], sizes = [16, 16, 128], strides = [1, 1, 1]} : vector<18x18x128xbf16> to vector<16x16x128xbf16>
    %18 = vector.shape_cast %17 : vector<16x16x128xbf16> to vector<256x128xbf16>
    %19 = vector.extract_strided_slice %16 {offsets = [0, 1, 0], sizes = [16, 16, 128], strides = [1, 1, 1]} : vector<18x18x128xbf16> to vector<16x16x128xbf16>
    %20 = vector.shape_cast %19 : vector<16x16x128xbf16> to vector<256x128xbf16>
    %21 = vector.extract_strided_slice %16 {offsets = [0, 2, 0], sizes = [16, 16, 128], strides = [1, 1, 1]} : vector<18x18x128xbf16> to vector<16x16x128xbf16>
    %22 = vector.shape_cast %21 : vector<16x16x128xbf16> to vector<256x128xbf16>
    %23 = vector.extract_strided_slice %16 {offsets = [1, 0, 0], sizes = [16, 16, 128], strides = [1, 1, 1]} : vector<18x18x128xbf16> to vector<16x16x128xbf16>
    %24 = vector.shape_cast %23 : vector<16x16x128xbf16> to vector<256x128xbf16>
    %25 = vector.extract_strided_slice %16 {offsets = [1, 1, 0], sizes = [16, 16, 128], strides = [1, 1, 1]} : vector<18x18x128xbf16> to vector<16x16x128xbf16>
    %26 = vector.shape_cast %25 : vector<16x16x128xbf16> to vector<256x128xbf16>
    %27 = vector.extract_strided_slice %16 {offsets = [1, 2, 0], sizes = [16, 16, 128], strides = [1, 1, 1]} : vector<18x18x128xbf16> to vector<16x16x128xbf16>
    %28 = vector.shape_cast %27 : vector<16x16x128xbf16> to vector<256x128xbf16>
    %29 = vector.extract_strided_slice %16 {offsets = [2, 0, 0], sizes = [16, 16, 128], strides = [1, 1, 1]} : vector<18x18x128xbf16> to vector<16x16x128xbf16>
    %30 = vector.shape_cast %29 : vector<16x16x128xbf16> to vector<256x128xbf16>
    %31 = vector.extract_strided_slice %16 {offsets = [2, 1, 0], sizes = [16, 16, 128], strides = [1, 1, 1]} : vector<18x18x128xbf16> to vector<16x16x128xbf16>
    %32 = vector.shape_cast %31 : vector<16x16x128xbf16> to vector<256x128xbf16>
    %33 = vector.extract_strided_slice %16 {offsets = [2, 2, 0], sizes = [16, 16, 128], strides = [1, 1, 1]} : vector<18x18x128xbf16> to vector<16x16x128xbf16>
    %34 = vector.shape_cast %33 : vector<16x16x128xbf16> to vector<256x128xbf16>
    %35 = tpu.concatenate %18, %20, %22, %24, %26, %28, %30, %32, %34 in 1 : vector<256x128xbf16>, vector<256x128xbf16>, vector<256x128xbf16>, vector<256x128xbf16>, vector<256x128xbf16>, vector<256x128xbf16>, vector<256x128xbf16>, vector<256x128xbf16>, vector<256x128xbf16> -> vector<256x1152xbf16>
    %c0_9 = arith.constant 0 : index
    %c0_10 = arith.constant 0 : index
    %36 = vector.load %arg4[%c0_9, %c0_10] : memref<1152x128xbf16, #tpu.memory_space<vmem>>, vector<1152x128xbf16>
    %cst_11 = arith.constant dense<0.000000e+00> : vector<256x128xf32>
    %37 = tpu.matmul %35, %36, %cst_11 {dimension_numbers = #tpu.dot_dimension_numbers<[1], [0], [0], [1], [0, 0, 1, 1], [], []>} : vector<256x1152xbf16>, vector<1152x128xbf16>, vector<256x128xf32> -> vector<256x128xf32>
    %38 = vector.shape_cast %37 : vector<256x128xf32> to vector<16x16x128xf32>
    %c0_12 = arith.constant 0 : index
    %c0_13 = arith.constant 0 : index
    %c0_14 = arith.constant 0 : index
    %c0_15 = arith.constant 0 : index
    %39 = vector.load %arg5[%c0_12, %c0_13, %c0_14, %c0_15] : memref<1x16x16x128xf32, #tpu.memory_space<vmem>>, vector<1x16x16x128xf32>
    %40 = vector.shape_cast %39 : vector<1x16x16x128xf32> to vector<16x16x128xf32>
    %41 = vector.shape_cast %38 : vector<16x16x128xf32> to vector<1x16x16x128xf32>
    tpu.vector_store %arg5[%c0_12, %c0_13, %c0_14, %c0_15], %41 {strides = array<i32>} : memref<1x16x16x128xf32, #tpu.memory_space<vmem>>, vector<1x16x16x128xf32>,
    %cst_16 = arith.constant dense<0.000000e+00> : vector<128xf32>
    %42 = vector.multi_reduction <add>, %37, %cst_16 [0] : vector<256x128xf32> to vector<128xf32>
    %43 = vector.shape_cast %42 : vector<128xf32> to vector<1x128xf32>
    %c0_17 = arith.constant 0 : index
    %c0_18 = arith.constant 0 : index
    %c0_19 = arith.constant 0 : index
    %44 = vector.load %arg6[%c0_17, %c0_18, %c0_19] : memref<1x2x128xf32, #tpu.memory_space<vmem>>, vector<1x1x128xf32>
    %45 = vector.shape_cast %44 : vector<1x1x128xf32> to vector<1x128xf32>
    %46 = vector.shape_cast %43 : vector<1x128xf32> to vector<1x1x128xf32>
    tpu.vector_store %arg6[%c0_17, %c0_18, %c0_19], %46 {strides = array<i32>} : memref<1x2x128xf32, #tpu.memory_space<vmem>>, vector<1x1x128xf32>,
    %47 = arith.mulf %37, %37 : vector<256x128xf32>
    %cst_20 = arith.constant dense<0.000000e+00> : vector<128xf32>
    %48 = vector.multi_reduction <add>, %47, %cst_20 [0] : vector<256x128xf32> to vector<128xf32>
    %49 = vector.shape_cast %48 : vector<128xf32> to vector<1x128xf32>
    %c0_21 = arith.constant 0 : index
    %c1 = arith.constant 1 : index
    %c0_22 = arith.constant 0 : index
    %50 = vector.load %arg6[%c0_21, %c1, %c0_22] : memref<1x2x128xf32, #tpu.memory_space<vmem>>, vector<1x1x128xf32>
    %51 = vector.shape_cast %50 : vector<1x1x128xf32> to vector<1x128xf32>
    %52 = vector.shape_cast %49 : vector<1x128xf32> to vector<1x1x128xf32>
    tpu.vector_store %arg6[%c0_21, %c1, %c0_22], %52 {strides = array<i32>} : memref<1x2x128xf32, #tpu.memory_space<vmem>>, vector<1x1x128xf32>,
    return
  }
  func.func @transform_0(%arg0: i32) -> (i32, i32, i32, i32) {
    %c0_i32 = arith.constant 0 : i32
    %c0_i32_0 = arith.constant 0 : i32
    %c0_i32_1 = arith.constant 0 : i32
    %c0_i32_2 = arith.constant 0 : i32
    return %arg0, %c0_i32, %c0_i32_0, %c0_i32_1 : i32, i32, i32, i32
  }
  func.func @transform_1(%arg0: i32) -> (i32, i32) {
    %c0_i32 = arith.constant 0 : i32
    %c0_i32_0 = arith.constant 0 : i32
    %c0_i32_1 = arith.constant 0 : i32
    return %c0_i32, %c0_i32_0 : i32, i32
  }
  func.func @transform_2(%arg0: i32) -> (i32, i32) {
    %c0_i32 = arith.constant 0 : i32
    %c0_i32_0 = arith.constant 0 : i32
    %c0_i32_1 = arith.constant 0 : i32
    return %c0_i32, %c0_i32_0 : i32, i32
  }
  func.func @transform_3(%arg0: i32) -> (i32, i32) {
    %c0_i32 = arith.constant 0 : i32
    %c0_i32_0 = arith.constant 0 : i32
    %c0_i32_1 = arith.constant 0 : i32
    return %c0_i32, %c0_i32_0 : i32, i32
  }
  func.func @transform_4(%arg0: i32) -> (i32, i32, i32, i32) {
    %c0_i32 = arith.constant 0 : i32
    %c0_i32_0 = arith.constant 0 : i32
    %c0_i32_1 = arith.constant 0 : i32
    %c0_i32_2 = arith.constant 0 : i32
    return %arg0, %c0_i32, %c0_i32_0, %c0_i32_1 : i32, i32, i32, i32
  }
  func.func @transform_5(%arg0: i32) -> (i32, i32, i32) {
    %c0_i32 = arith.constant 0 : i32
    %c0_i32_0 = arith.constant 0 : i32
    %c0_i32_1 = arith.constant 0 : i32
    return %arg0, %c0_i32, %c0_i32_0 : i32, i32, i32
  }
}

</mosaic_0001>

<bundles_post_ra>
// kernel: basic_block_pallas.5
= control target key start
LH: loop header
LB: loop body
LE: loop exit
PB: predicated region body
PF: predicated region fallthrough
CT: control target
= control target key end

     0   :  { %s1446_s0 = inlined_call_operand.hbm [shape: f32[2,16,16,128], index: 0, kind: input, shape index: {}]   ;;  %s1447_s1 = inlined_call_operand.hbm [shape: f32[2,16,16,128], index: 1, kind: input, shape index: {}]   ;;  %s1448_s2 = inlined_call_operand.hbm [shape: f32[1,128], index: 2, kind: input, shape index: {}]   ;;  %s1449_s3 = inlined_call_operand.hbm [shape: f32[1,128], index: 3, kind: input, shape index: {}]   ;;  %s1450_s4 = inlined_call_operand.hbm [shape: f32[2,16,16,128], index: 4, kind: output, shape index: {}]  }
   0x1   :  { %1456 = sst [smem:[#allocation16_spill]] %s1446_s0 }
   0x2   :  { %9 = vsyncpa [#allocation3], 0 }
   0x3   :  { %11 = vsyncpa [#allocation3 + $0x1], 0 }
   0x4   :  { %12 = vsyncpa [#allocation6], 0 }
   0x5   :  { %14 = vsyncpa [#allocation6 + $0x1], 0 }
   0x6   :  { %15 = vsyncpa [#allocation9], 0 }
   0x7   :  { %16 = vsyncpa [#allocation4], 0 }
   0x8   :  { %18 = vsyncpa [#allocation4 + $0x1], 0  ;;  %s981_s15 = smov 0   ;;  %s983_s16 = smov 0  }
   0x9   :  { %s985_s17 = smov 0   ;;  %s987_s18 = smov 0  }
   0xa LB: > { %s1002_s19 = sadd.s32 4294967295, %s945_s18   ;;  %s648_s20 = sadd.s32 4294967294, %s945_s18   ;;  %s945_s18 = sphi %s987_s18, %s1479_s18   ;;  %s941_s17 = sphi %s985_s17, %s1478_s17   ;;  %s937_s16 = sphi %s983_s16, %s1477_s16   ;;  %s933_s15 = sphi %s981_s15, %s1476_s15  }
   0xb   : > { %s1006_s21 = sadd.s32 1, %s945_s18   ;;  %s31_s22 = sadd.s32 1, %s941_s17 }
   0xc   : > { %s28_s23 = ssub.s32 %s945_s18, %s1006_s21  ;;  %p38_p0 = scmp.ne.s32.totalorder %s941_s17, %s937_s16 }
   0xd   : > { %p29_p1 = scmp.eq.s32.totalorder %s28_s23, 0  ;;  %p39_p2 = scmp.eq.s32.totalorder %s945_s18, 0 }
   0xe   : > { %p44_p3 = scmp.ne.s32.totalorder %s937_s16, %s933_s15  ;;  %p1451_p4 = scmp.eq.s32.totalorder %s1002_s19, 0 }
   0xf   : > { %s1018_s24 = scalar_select %p29_p1, %s941_s17, %s31_s22  }
  0x10   : > { %p1020_p5 = por %p39_p2, %p38_p0  ;;  %p1026_p6 = por %p1451_p4, %p44_p3 }
  0x11   : > { %p136_p7 = scmp.eq.s32.totalorder %s1002_s19, 1  ;;  %p142_p8 = scmp.eq.s32.totalorder %s648_s20, 1 }
  0x12   : > { %s1458_s26 = scalar_select %p1026_p6, 1, 0 }
  0x13   : > { %p649_p9 = scmp.ge.s32.totalorder %s945_s18, 1  ;;  %p149_p10 = scmp.lt.s32.totalorder %s945_s18, 3 }
  0x14   : > { %p1033_p11 = por %p136_p7, %p38_p0  ;;  %p1037_p12 = por %p142_p8, %p44_p3 }
  0x15   : > { %p1041_p13 = pnand %p649_p9, %p149_p10  ;;  %s947_s30 = smov [#allocation7]  }
  0x16   : > { %s1459_s27 = scalar_select %p1033_p11, 1, 0 }
  0x17   : > { %s1460_s28 = scalar_select %p1037_p12, 1, 0 }
  0x18   : > { %s1461_s29 = scalar_select %p1041_p13, 1, 0 }
  0x19   : > { %p689_p2 = pneg %p1041_p13  ;;  %s162_s5 = sshll.u32 %s947_s30, 4  ;;  %s163_s5 = int_to_ptr.vmem [resolvable:$true] %s162_s5 }
  0x1a   : > { %p709_p4 = scmp.lt.s32.totalorder %s945_s18, 2  ;;  %p1462_p0 = scmp.eq.s32.totalorder %s1002_s19, 0 }
  0x1b   : > { %s948_s8 = smov [#allocation8]   ;;  %s751_s12 = scalar_lea.hbm %s1448_s2, 16 }
  0x1c   : > { %p1051_p7 = pnand %p689_p2, %p1462_p0  ;;  %p1057_p3 = pnand %p709_p4, %p1020_p5 }
  0x1d   : > { %s173_s9 = sshll.u32 %s948_s8, 4  ;;  %p752_p8 = scmp.ne.s32.totalorder %s1448_s2, %s751_s12  ;;  %s1061_s9 = int_to_ptr.vmem [resolvable:$true] %s173_s9 }
  0x1e   : > { %s1464_s7 = scalar_select %p1057_p3, 1, 0 }
  0x1f   : > { %p753_p9 = pneg %p1051_p7  ;;  %p758_p10 = scmp.lt.u32.totalorder %s751_s12, %s1448_s2 }
  0x21   : > { %p754_p4 = pnand %p753_p9, %p752_p8 }
  0x23   : > { %p755_p5 = pneg %p754_p4 }
  0x25   : > { %p760_p2 = pnand %p758_p10, %p755_p5 }
  0x27   : > { %763 = shalt.err (!%p760_p2)
}
  0x28   : > { %s764_s23 = scalar_lea.vmem %s163_s5, 16  ;;  %s771_s25 = scalar_lea.vmem %s163_s5, 32 }
  0x29   : > { %p765_p0 = scmp.ne.s32.totalorder %s163_s5, %s764_s23  ;;  %p772_p11 = scmp.lt.s32.totalorder %s163_s5, %s163_s5 }
  0x2a   : > { %p773_p6 = scmp.lt.s32.totalorder %s771_s25, %s764_s23 }
  0x2b   : > { %p767_p1 = pnand %p765_p0, %p753_p9 }
  0x2c   : > { %p774_p13 = por %p773_p6, %p772_p11 }
  0x2d   : > { %p768_p12 = pneg %p767_p1 }
  0x2f   : > { %p775_p3 = pnand %p774_p13, %p768_p12 }
  0x31   : > { %778 = shalt.err (!%p775_p3)
}
  0x32   : > { %692 = dma.hbm_to_vmem [thread:$0]  (!%p1051_p7), %s1448_s2, 16, %s163_s5, [#allocation6]  }
  0x33   : > { %s184_s10 = sand.u32 1, %s941_s17   ;;  %s779_s13 = scalar_lea.hbm %s1449_s3, 16 }
  0x34   : > { %p780_p1 = scmp.ne.s32.totalorder %s1449_s3, %s779_s13  ;;  %p786_p12 = scmp.lt.u32.totalorder %s779_s13, %s1449_s3 }
  0x36   : > { %p782_p6 = pnand %p780_p1, %p753_p9 }
  0x38   : > { %p783_p11 = pneg %p782_p6 }
  0x3a   : > { %p788_p13 = pnand %p786_p12, %p783_p11 }
  0x3c   : > { %791 = shalt.err (!%p788_p13)
}
  0x3d   : > { %s792_s5 = scalar_lea.vmem %s1061_s9, 16  ;;  %s799_s25 = scalar_lea.vmem %s1061_s9, 32 }
  0x3e   : > { %p793_p3 = scmp.ne.s32.totalorder %s1061_s9, %s792_s5  ;;  %p800_p5 = scmp.lt.s32.totalorder %s1061_s9, %s1061_s9 }
  0x3f   : > { %p801_p10 = scmp.lt.s32.totalorder %s799_s25, %s792_s5 }
  0x40   : > { %p795_p8 = pnand %p793_p3, %p753_p9 }
  0x41   : > { %p802_p2 = por %p801_p10, %p800_p5 }
  0x42   : > { %p796_p4 = pneg %p795_p8 }
  0x44   : > { %p803_p0 = pnand %p802_p2, %p796_p4 }
  0x46   : > { %806 = shalt.err (!%p803_p0)
}
  0x47   : > { %695 = dma.hbm_to_vmem [thread:$0]  (!%p1051_p7), %s1449_s3, 16, %s1061_s9, [#allocation9]  }
  0x48   : > { %s1112_s11 = sshll.u32 %s184_s10, 8  ;;  %s672_s12 = sshll.u32 %s945_s18, 12 }
  0x49   : > { %s1465_s0 = sld [smem:[#allocation16_spill]]  ;;  %s188_s6 = scalar_lea.vmem [#allocation2], %s1112_s11 }
  0x4a   : > { %s195_s22 = sshll.u32 %s188_s6, 4  ;;  %s1125_s23 = scalar_lea.sflag [#allocation3], %s184_s10  ;;  %s1123_s22 = int_to_ptr.vmem [resolvable:$true] %s195_s22 }
  0x4b   : > { %p1466_p9 = scmp.ne.s32.totalorder %s1464_s7, 0 }
  0x4d   : > { %p809_p1 = pneg %p1466_p9 }
  0x4f   : > { %s1120_s20 = scalar_lea.hbm %s1465_s0, %s672_s12  ;;  %s812_s30 = scalar_lea.hbm %s1465_s0, 8192 }
  0x50   : > { %s807_s9 = scalar_lea.hbm %s1120_s20, 4096  ;;  %p813_p12 = scmp.lt.u32.totalorder %s1120_s20, %s1465_s0 }
  0x51   : > { %p808_p7 = scmp.ne.s32.totalorder %s1120_s20, %s807_s9  ;;  %p814_p13 = scmp.lt.u32.totalorder %s812_s30, %s807_s9 }
  0x52   : > { %p816_p8 = scmp.lt.u32.totalorder %s807_s9, %s1120_s20 }
  0x53   : > { %p810_p6 = pnand %p809_p1, %p808_p7  ;;  %p815_p3 = por %p814_p13, %p813_p12 }
  0x55   : > { %p811_p11 = pneg %p810_p6  ;;  %p817_p4 = por %p816_p8, %p815_p3 }
  0x57   : > { %p818_p5 = pnand %p817_p4, %p811_p11 }
  0x59   : > { %821 = shalt.err (!%p818_p5)
}
  0x5a   : > { %s822_s10 = scalar_lea.vmem %s1123_s22, 4096  ;;  %s949_s14 = smov [#allocation2]  }
  0x5b   : > { %p823_p10 = scmp.ne.s32.totalorder %s1123_s22, %s822_s10  ;;  %s827_s6 = sshll.u32 %s949_s14, 4  ;;  %s828_s6 = int_to_ptr.vmem [resolvable:$false] %s827_s6 }
  0x5c   : > { %s829_s5 = scalar_lea.vmem %s828_s6, 8192  ;;  %p830_p7 = scmp.lt.s32.totalorder %s1123_s22, %s828_s6 }
  0x5d   : > { %p825_p2 = pnand %p823_p10, %p809_p1  ;;  %p831_p6 = scmp.lt.s32.totalorder %s829_s5, %s822_s10 }
  0x5f   : > { %p826_p0 = pneg %p825_p2  ;;  %p832_p12 = por %p831_p6, %p830_p7 }
  0x61   : > { %p833_p13 = pnand %p832_p12, %p826_p0 }
  0x63   : > { %836 = shalt.err (!%p833_p13)
}
  0x64   : > { %s950_s9 = smov 128   ;;  %s951_s25 = smov 8  }
  0x65   : > { %699 = dma.hbm_to_vmem [thread:$0]  (!%p1466_p9), %s1120_s20, 4096, %s1123_s22, %s1125_s23, %s950_s9, %s950_s9, %s951_s25  }
  0x66   : > { %s1161_s13 = scalar_lea.hbm %s1447_s1, %s672_s12  ;;  %s209_s10 = scalar_lea.vmem [#allocation5], %s1112_s11 }
  0x67   : > { %s216_s14 = sshll.u32 %s209_s10, 4  ;;  %s205_s6 = sand.u32 1, %s945_s18   ;;  %s1164_s14 = int_to_ptr.vmem [resolvable:$true] %s216_s14 }
  0x68   : > { %s1167_s5 = scalar_lea.sflag [#allocation6], %s205_s6  ;;  %s837_s0 = scalar_lea.hbm %s1161_s13, 4096 }
  0x69   : > { %p838_p11 = scmp.ne.s32.totalorder %s1161_s13, %s837_s0  ;;  %s842_s22 = scalar_lea.hbm %s1447_s1, 8192 }
  0x6a   : > { %p843_p4 = scmp.lt.u32.totalorder %s1161_s13, %s1447_s1  ;;  %p844_p5 = scmp.lt.u32.totalorder %s842_s22, %s837_s0 }
  0x6b   : > { %p840_p3 = pnand %p838_p11, %p809_p1  ;;  %p846_p2 = scmp.lt.u32.totalorder %s837_s0, %s1161_s13 }
  0x6c   : > { %p845_p10 = por %p844_p5, %p843_p4 }
  0x6d   : > { %p841_p8 = pneg %p840_p3 }
  0x6e   : > { %p847_p0 = por %p846_p2, %p845_p10 }
  0x70   : > { %p848_p7 = pnand %p847_p0, %p841_p8 }
  0x72   : > { %851 = shalt.err (!%p848_p7)
}
  0x73   : > { %s852_s11 = scalar_lea.vmem %s1164_s14, 4096  ;;  %s952_s8 = smov [#allocation5]  }
  0x74   : > { %p853_p6 = scmp.ne.s32.totalorder %s1164_s14, %s852_s11  ;;  %s857_s10 = sshll.u32 %s952_s8, 4  ;;  %s858_s10 = int_to_ptr.vmem [resolvable:$false] %s857_s10 }
  0x75   : > { %s859_s6 = scalar_lea.vmem %s858_s10, 8192  ;;  %p860_p11 = scmp.lt.s32.totalorder %s1164_s14, %s858_s10 }
  0x76   : > { %p855_p12 = pnand %p853_p6, %p809_p1  ;;  %p861_p3 = scmp.lt.s32.totalorder %s859_s6, %s852_s11 }
  0x78   : > { %p856_p13 = pneg %p855_p12  ;;  %p862_p4 = por %p861_p3, %p860_p11 }
  0x7a   : > { %p863_p5 = pnand %p862_p4, %p856_p13 }
  0x7c   : > { %866 = shalt.err (!%p863_p5)
}
  0x7d   : > { %702 = dma.hbm_to_vmem [thread:$0]  (!%p1466_p9), %s1161_s13, 4096, %s1164_s14, %s1167_s5, %s950_s9, %s950_s9, %s951_s25  }
  0x7e   : > { %p1467_p1 = scmp.ne.s32.totalorder %s1461_s29, 0 }
  0x7f   : > { %s1199_s0 = sand.u32 (!%p1467_p1), 1, %s937_s16   ;;  %p1468_p8 = scmp.ne.s32.totalorder (!%p1467_p1), %s1458_s26, 0 }
  0x80   : > { %228 = sbr.rel (%p1467_p1) target bundleno = 199 (0xc7), region = 36  ;;  %s1202_s20 = sshll.u32 (!%p1467_p1), %s1199_s0, 8 }
  0x81   : > { %s231_s7 = scalar_lea.sflag (!%p1467_p1), [#allocation3], %s1199_s0  ;;  %s1206_s12 = scalar_lea.vmem (!%p1467_p1), [#allocation2], %s1202_s20 }
  0x87   : > { %912 = dma.done.wait (%p1468_p8), %s231_s7, 4096  }
  0x88   : > { %914 = vsyncadd (%p1468_p8), %s231_s7, 4294963200  ;;  %s239_s29 = sand.u32 1, %s1002_s19   ;;  %s1214_s25 = scalar_lea.vmem [#allocation5], %s1202_s20 }
  0x89   : > { %s240_s9 = scalar_lea.sflag [#allocation6], %s239_s29 }
  0x8a   : > { %916 = dma.done.wait (%p1468_p8), %s240_s9, 4096  }
  0x8b   : > { %918 = vsyncadd (%p1468_p8), %s240_s9, 4294963200  ;;  %p1469_p9 = scmp.eq.s32.totalorder %s1002_s19, 0 }
  0x8d   : > { %920 = dma.done.wait (%p1469_p9), [#allocation6], 16   ;;  %p1470_p10 = pmov %p1469_p9 }
  0x8e   : > { %p1471_p2 = pmov %p1469_p9 }
  0x8f   : > { %922 = vsyncadd (%p1470_p10), [#allocation6], 4294967280 }
  0x90   : > { %924 = dma.done.wait (%p1471_p2), [#allocation9], 16   ;;  %p1472_p0 = pmov %p1471_p2 }
  0x91   : > { %v1228_v0 = vld [vmem:[#allocation7] ss:$0 sm:$0xff]  ;;  %v1230_v1 = vld [vmem:[#allocation8] ss:$0 sm:$0xff]  ;;  %v284_v4 = vld [vmem:[%s1206_s12 + $0x8] sm:$0xff]  ;;  %s1269_s26 = scalar_lea.vmem [#allocation10], %s1202_s20 }
  0x92   : > { %926 = vsyncadd (%p1472_p0), [#allocation9], 4294967280  ;;  %v283_v2 = vld [vmem:[%s1206_s12] sm:$0xff]  ;;  %v322_v6 = vmul.f32 %v1228_v0, %v284_v4  ;;  %v285_v7 = vld [vmem:[%s1206_s12 + $0x10] sm:$0xff]  ;;  %s674_s13 = sshll.u32 %s1002_s19, 12  ;;  %s533_s14 = sshll.u32 %s1269_s26, 4  ;;  %s1398_s14 = int_to_ptr.vmem [resolvable:$true] %s533_s14 }
  0x93   : > { %v321_v3 = vmul.f32 %v1228_v0, %v283_v2  ;;  %v391_v5 = vld [vmem:[%s1214_s25] sm:$0xff]  ;;  %v286_v8 = vld [vmem:[%s1206_s12 + $0x18] sm:$0xff]  ;;  %v392_v10 = vld [vmem:[%s1214_s25 + $0x8] sm:$0xff]  ;;  %v323_v11 = vmul.f32 %v1228_v0, %v285_v7  ;;  %s1396_s19 = scalar_lea.hbm %s1450_s4, %s674_s13  ;;  %s520_s23 = scalar_lea.sflag [#allocation4], %s1199_s0 }
  0x94   : > { %v393_v12 = vld [vmem:[%s1214_s25 + $0x10] sm:$0xff]  ;;  %v324_v13 = vmul.f32 %v1228_v0, %v286_v8  ;;  %v287_v14 = vld [vmem:[%s1206_s12 + $0x20] sm:$0xff]  ;;  %v360_v15 = vadd.f32 %v1230_v1, %v322_v6  ;;  %v394_v16 = vld [vmem:[%s1214_s25 + $0x18] sm:$0xff]  ;;  %s867_s30 = scalar_lea.vmem %s1398_s14, 4096  ;;  %p1473_p6 = scmp.ne.s32.totalorder %s1459_s27, 0 }
  0x95   : > { %v359_v9 = vadd.f32 %v1230_v1, %v321_v3  ;;  %v325_v17 = vmul.f32 %v1228_v0, %v287_v14  ;;  %v288_v18 = vld [vmem:[%s1206_s12 + $0x28] sm:$0xff]  ;;  %v289_v19 = vld [vmem:[%s1206_s12 + $0x30] sm:$0xff]  ;;  %v361_v21 = vadd.f32 %v1230_v1, %v323_v11  ;;  %v395_v23 = vld [vmem:[%s1214_s25 + $0x20] sm:$0xff]  ;;  %p868_p7 = scmp.ne.s32.totalorder %s1398_s14, %s867_s30  ;;  %s953_s11 = smov [#allocation10]  }
  0x96   : > { %v362_v22 = vadd.f32 %v1230_v1, %v324_v13  ;;  %v326_v24 = vmul.f32 %v1228_v0, %v288_v18  ;;  %v290_v25 = vld [vmem:[%s1206_s12 + $0x38] sm:$0xff]  ;;  %v424_v26 = vadd.f32 %v392_v10, %v360_v15  ;;  %v396_v28 = vld [vmem:[%s1214_s25 + $0x28] sm:$0xff]  ;;  %v327_v29 = vmul.f32 %v1228_v0, %v289_v19  ;;  %v291_v31 = vld [vmem:[%s1206_s12 + $0x40] sm:$0xff]  ;;  %s871_s8 = sshll.u32 %s953_s11, 4  ;;  %s872_s8 = int_to_ptr.vmem [resolvable:$false] %s871_s8 }
  0x97   : > { %v423_v20 = vadd.f32 %v391_v5, %v359_v9  ;;  %v363_v27 = vadd.f32 %v1230_v1, %v325_v17  ;;  %v328_v30 = vmul.f32 %v1228_v0, %v290_v25  ;;  %v425_v33 = vadd.f32 %v393_v12, %v361_v21  ;;  %v397_v36 = vld [vmem:[%s1214_s25 + $0x30] sm:$0xff]  ;;  %v398_v37 = vld [vmem:[%s1214_s25 + $0x38] sm:$0xff]  ;;  %v292_v38 = vld [vmem:[%s1206_s12 + $0x48] sm:$0xff]  ;;  %p869_p12 = pnand %p868_p7, %p1473_p6  ;;  %s873_s10 = scalar_lea.vmem %s872_s8, 8192 }
  0x98   : > { %v426_v34 = vadd.f32 %v394_v16, %v362_v22  ;;  %v364_v35 = vadd.f32 %v1230_v1, %v326_v24  ;;  %v456_v39 = vmax.f32 %v424_v26, 0.0  ;;  %v365_v41 = vadd.f32 %v1230_v1, %v327_v29  ;;  %v293_v43 = vld [vmem:[%s1206_s12 + $0x50] sm:$0xff]  ;;  %v294_v44 = vld [vmem:[%s1206_s12 + $0x58] sm:$0xff]  ;;  %v295_v49 = vld [vmem:[%s1206_s12 + $0x60] sm:$0xff]  ;;  %p874_p11 = scmp.lt.s32.totalorder %s1398_s14, %s872_s8  ;;  %p875_p3 = scmp.lt.s32.totalorder %s873_s10, %s867_s30 }
  0x99   : > { %v455_v32 = vmax.f32 %v423_v20, 0.0  ;;  %v427_v40 = vadd.f32 %v395_v23, %v363_v27  ;;  %v366_v42 = vadd.f32 %v1230_v1, %v328_v30  ;;  %v457_v45 = vmax.f32 %v425_v33, 0.0  ;;  %v399_v53 = vld [vmem:[%s1214_s25 + $0x40] sm:$0xff]  ;;  %v296_v55 = vld [vmem:[%s1206_s12 + $0x68] sm:$0xff]  ;;  %v297_v61 = vld [vmem:[%s1206_s12 + $0x70] sm:$0xff]  ;;  %p870_p13 = pneg %p869_p12 }
  0x9a   : > { %v458_v46 = vmax.f32 %v426_v34, 0.0  ;;  %v428_v47 = vadd.f32 %v396_v28, %v364_v35  ;;  %v329_v48 = vmul.f32 %v1228_v0, %v291_v31  ;;  %488 = vst [vmem:[%s1269_s26 + $0x8] sm:$0xff] %v456_v39  ;;  %v429_v51 = vadd.f32 %v397_v36, %v365_v41  ;;  %v400_v58 = vld [vmem:[%s1214_s25 + $0x48] sm:$0xff]  ;;  %v298_v62 = vld [vmem:[%s1206_s12 + $0x78] sm:$0xff]  ;;  %v401_v4 = vld [vmem:[%s1214_s25 + $0x50] sm:$0xff]  ;;  %p876_p4 = por %p875_p3, %p874_p11 }
  0x9b   : > { %487 = vst [vmem:[%s1269_s26] sm:$0xff] %v455_v32  ;;  %v459_v50 = vmax.f32 %v427_v40, 0.0  ;;  %v430_v52 = vadd.f32 %v398_v37, %v366_v42  ;;  %v330_v54 = vmul.f32 %v1228_v0, %v292_v38  ;;  %489 = vst [vmem:[%s1269_s26 + $0x10] sm:$0xff] %v457_v45  ;;  %v331_v59 = vmul.f32 %v1228_v0, %v293_v43  ;;  %v402_v5 = vld [vmem:[%s1214_s25 + $0x58] sm:$0xff]  ;;  %v403_v10 = vld [vmem:[%s1214_s25 + $0x60] sm:$0xff] }
  0x9c   : > { %490 = vst [vmem:[%s1269_s26 + $0x18] sm:$0xff] %v458_v46  ;;  %v460_v56 = vmax.f32 %v428_v47, 0.0  ;;  %v367_v57 = vadd.f32 %v1230_v1, %v329_v48  ;;  %v332_v60 = vmul.f32 %v1228_v0, %v294_v44  ;;  %v461_v63 = vmax.f32 %v429_v51, 0.0  ;;  %v404_v14 = vld [vmem:[%s1214_s25 + $0x68] sm:$0xff]  ;;  %v299_v17 = vld [vmem:[%s1206_s12 + $0x80] sm:$0xff]  ;;  %v405_v22 = vld [vmem:[%s1214_s25 + $0x70] sm:$0xff]  ;;  %p877_p5 = pnand %p876_p4, %p870_p13 }
  0x9d   : > { %491 = vst [vmem:[%s1269_s26 + $0x20] sm:$0xff] %v459_v50  ;;  %v462_v2 = vmax.f32 %v430_v52, 0.0  ;;  %v368_v3 = vadd.f32 %v1230_v1, %v330_v54  ;;  %v333_v6 = vmul.f32 %v1228_v0, %v295_v49  ;;  %v369_v8 = vadd.f32 %v1230_v1, %v331_v59  ;;  %v406_v23 = vld [vmem:[%s1214_s25 + $0x78] sm:$0xff]  ;;  %v300_v24 = vld [vmem:[%s1206_s12 + $0x88] sm:$0xff]  ;;  %v301_v29 = vld [vmem:[%s1206_s12 + $0x90] sm:$0xff] }
  0x9e   : > { %492 = vst [vmem:[%s1269_s26 + $0x28] sm:$0xff] %v460_v56  ;;  %v431_v7 = vadd.f32 %v399_v53, %v367_v57  ;;  %v370_v9 = vadd.f32 %v1230_v1, %v332_v60  ;;  %v334_v11 = vmul.f32 %v1228_v0, %v296_v55  ;;  %493 = vst [vmem:[%s1269_s26 + $0x30] sm:$0xff] %v461_v63  ;;  %v302_v30 = vld [vmem:[%s1206_s12 + $0x98] sm:$0xff]  ;;  %v303_v35 = vld [vmem:[%s1206_s12 + $0xa0] sm:$0xff] }
  0x9f   : > { %494 = vst [vmem:[%s1269_s26 + $0x38] sm:$0xff] %v462_v2  ;;  %v432_v12 = vadd.f32 %v400_v58, %v368_v3  ;;  %v371_v13 = vadd.f32 %v1230_v1, %v333_v6  ;;  %v335_v15 = vmul.f32 %v1228_v0, %v297_v61  ;;  %v336_v16 = vmul.f32 %v1228_v0, %v298_v62  ;;  %v407_v39 = vld [vmem:[%s1214_s25 + $0x80] sm:$0xff]  ;;  %v304_v41 = vld [vmem:[%s1206_s12 + $0xa8] sm:$0xff]  ;;  %v305_v47 = vld [vmem:[%s1206_s12 + $0xb0] sm:$0xff] }
  0xa0   : > { %v463_v18 = vmax.f32 %v431_v7, 0.0  ;;  %v433_v19 = vadd.f32 %v401_v4, %v369_v8  ;;  %v434_v20 = vadd.f32 %v402_v5, %v370_v9  ;;  %v372_v21 = vadd.f32 %v1230_v1, %v334_v11  ;;  %v408_v44 = vld [vmem:[%s1214_s25 + $0x88] sm:$0xff]  ;;  %v306_v48 = vld [vmem:[%s1206_s12 + $0xb8] sm:$0xff]  ;;  %v409_v52 = vld [vmem:[%s1214_s25 + $0x90] sm:$0xff] }
  0xa1   : > { %v464_v25 = vmax.f32 %v432_v12, 0.0  ;;  %v435_v26 = vadd.f32 %v403_v10, %v371_v13  ;;  %v373_v27 = vadd.f32 %v1230_v1, %v335_v15  ;;  %v374_v28 = vadd.f32 %v1230_v1, %v336_v16  ;;  %v410_v53 = vld [vmem:[%s1214_s25 + $0x98] sm:$0xff]  ;;  %v411_v58 = vld [vmem:[%s1214_s25 + $0xa0] sm:$0xff]  ;;  %v412_v62 = vld [vmem:[%s1214_s25 + $0xa8] sm:$0xff] }
  0xa2   : > { %495 = vst [vmem:[%s1269_s26 + $0x40] sm:$0xff] %v463_v18  ;;  %v465_v31 = vmax.f32 %v433_v19, 0.0  ;;  %v466_v32 = vmax.f32 %v434_v20, 0.0  ;;  %v436_v33 = vadd.f32 %v404_v14, %v372_v21  ;;  %v337_v34 = vmul.f32 %v1228_v0, %v299_v17  ;;  %v307_v3 = vld [vmem:[%s1206_s12 + $0xc0] sm:$0xff]  ;;  %v413_v8 = vld [vmem:[%s1214_s25 + $0xb0] sm:$0xff]  ;;  %v414_v9 = vld [vmem:[%s1214_s25 + $0xb8] sm:$0xff] }
  0xa3   : > { %496 = vst [vmem:[%s1269_s26 + $0x48] sm:$0xff] %v464_v25  ;;  %v467_v36 = vmax.f32 %v435_v26, 0.0  ;;  %v437_v37 = vadd.f32 %v405_v22, %v373_v27  ;;  %v438_v38 = vadd.f32 %v406_v23, %v374_v28  ;;  %v338_v40 = vmul.f32 %v1228_v0, %v300_v24  ;;  %v308_v10 = vld [vmem:[%s1206_s12 + $0xc8] sm:$0xff]  ;;  %v309_v15 = vld [vmem:[%s1206_s12 + $0xd0] sm:$0xff]  ;;  %v310_v16 = vld [vmem:[%s1206_s12 + $0xd8] sm:$0xff] }
  0xa4   : > { %497 = vst [vmem:[%s1269_s26 + $0x50] sm:$0xff] %v465_v31  ;;  %498 = vst [vmem:[%s1269_s26 + $0x58] sm:$0xff] %v466_v32  ;;  %v468_v42 = vmax.f32 %v436_v33, 0.0  ;;  %v375_v43 = vadd.f32 %v1230_v1, %v337_v34  ;;  %v339_v45 = vmul.f32 %v1228_v0, %v301_v29  ;;  %v340_v46 = vmul.f32 %v1228_v0, %v302_v30  ;;  %v311_v21 = vld [vmem:[%s1206_s12 + $0xe0] sm:$0xff]  ;;  %v312_v27 = vld [vmem:[%s1206_s12 + $0xe8] sm:$0xff] }
  0xa5   : > { %499 = vst [vmem:[%s1269_s26 + $0x60] sm:$0xff] %v467_v36  ;;  %v469_v49 = vmax.f32 %v437_v37, 0.0  ;;  %v470_v50 = vmax.f32 %v438_v38, 0.0  ;;  %v376_v51 = vadd.f32 %v1230_v1, %v338_v40  ;;  %v341_v54 = vmul.f32 %v1228_v0, %v303_v35  ;;  %v415_v25 = vld [vmem:[%s1214_s25 + $0xc0] sm:$0xff]  ;;  %v416_v30 = vld [vmem:[%s1214_s25 + $0xc8] sm:$0xff]  ;;  %v313_v33 = vld [vmem:[%s1206_s12 + $0xf0] sm:$0xff] }
  0xa6   : > { %500 = vst [vmem:[%s1269_s26 + $0x68] sm:$0xff] %v468_v42  ;;  %v439_v55 = vadd.f32 %v407_v39, %v375_v43  ;;  %v377_v56 = vadd.f32 %v1230_v1, %v339_v45  ;;  %v378_v57 = vadd.f32 %v1230_v1, %v340_v46  ;;  %v342_v59 = vmul.f32 %v1228_v0, %v304_v41  ;;  %v314_v34 = vld [vmem:[%s1206_s12 + $0xf8] sm:$0xff]  ;;  %v417_v38 = vld [vmem:[%s1214_s25 + $0xd0] sm:$0xff] }
  0xa7   : > { %501 = vst [vmem:[%s1269_s26 + $0x70] sm:$0xff] %v469_v49  ;;  %502 = vst [vmem:[%s1269_s26 + $0x78] sm:$0xff] %v470_v50  ;;  %v440_v60 = vadd.f32 %v408_v44, %v376_v51  ;;  %v379_v61 = vadd.f32 %v1230_v1, %v341_v54  ;;  %v343_v63 = vmul.f32 %v1228_v0, %v305_v47  ;;  %v418_v39 = vld [vmem:[%s1214_s25 + $0xd8] sm:$0xff]  ;;  %v419_v44 = vld [vmem:[%s1214_s25 + $0xe0] sm:$0xff] }
  0xa8   : > { %v344_v2 = vmul.f32 %v1228_v0, %v306_v48  ;;  %v471_v4 = vmax.f32 %v439_v55, 0.0  ;;  %v441_v5 = vadd.f32 %v409_v52, %v377_v56  ;;  %v442_v6 = vadd.f32 %v410_v53, %v378_v57  ;;  %v420_v48 = vld [vmem:[%s1214_s25 + $0xe8] sm:$0xff]  ;;  %v421_v55 = vld [vmem:[%s1214_s25 + $0xf0] sm:$0xff]  ;;  %v422_v56 = vld [vmem:[%s1214_s25 + $0xf8] sm:$0xff] }
  0xa9   : > { %v380_v7 = vadd.f32 %v1230_v1, %v342_v59  ;;  %v472_v11 = vmax.f32 %v440_v60, 0.0  ;;  %v443_v12 = vadd.f32 %v411_v58, %v379_v61  ;;  %v381_v13 = vadd.f32 %v1230_v1, %v343_v63 }
  0xaa   : > { %v382_v14 = vadd.f32 %v1230_v1, %v344_v2  ;;  %503 = vst [vmem:[%s1269_s26 + $0x80] sm:$0xff] %v471_v4  ;;  %v473_v17 = vmax.f32 %v441_v5, 0.0  ;;  %v474_v18 = vmax.f32 %v442_v6, 0.0  ;;  %v345_v20 = vmul.f32 %v1228_v0, %v307_v3 }
  0xab   : > { %v444_v19 = vadd.f32 %v412_v62, %v380_v7  ;;  %504 = vst [vmem:[%s1269_s26 + $0x88] sm:$0xff] %v472_v11  ;;  %v475_v22 = vmax.f32 %v443_v12, 0.0  ;;  %v445_v23 = vadd.f32 %v413_v8, %v381_v13  ;;  %v346_v26 = vmul.f32 %v1228_v0, %v308_v10 }
  0xac   : > { %v446_v24 = vadd.f32 %v414_v9, %v382_v14  ;;  %505 = vst [vmem:[%s1269_s26 + $0x90] sm:$0xff] %v473_v17  ;;  %506 = vst [vmem:[%s1269_s26 + $0x98] sm:$0xff] %v474_v18  ;;  %v383_v29 = vadd.f32 %v1230_v1, %v345_v20  ;;  %v347_v31 = vmul.f32 %v1228_v0, %v309_v15 }
  0xad   : > { %v476_v28 = vmax.f32 %v444_v19, 0.0  ;;  %v348_v32 = vmul.f32 %v1228_v0, %v310_v16  ;;  %507 = vst [vmem:[%s1269_s26 + $0xa0] sm:$0xff] %v475_v22  ;;  %v477_v35 = vmax.f32 %v445_v23, 0.0  ;;  %v384_v37 = vadd.f32 %v1230_v1, %v346_v26 }
  0xae   : > { %v478_v36 = vmax.f32 %v446_v24, 0.0  ;;  %v349_v40 = vmul.f32 %v1228_v0, %v311_v21  ;;  %v447_v41 = vadd.f32 %v415_v25, %v383_v29  ;;  %v385_v42 = vadd.f32 %v1230_v1, %v347_v31 }
  0xaf   : > { %508 = vst [vmem:[%s1269_s26 + $0xa8] sm:$0xff] %v476_v28  ;;  %v386_v43 = vadd.f32 %v1230_v1, %v348_v32  ;;  %v350_v45 = vmul.f32 %v1228_v0, %v312_v27  ;;  %509 = vst [vmem:[%s1269_s26 + $0xb0] sm:$0xff] %v477_v35  ;;  %v448_v46 = vadd.f32 %v416_v30, %v384_v37 }
  0xb0   : > { %510 = vst [vmem:[%s1269_s26 + $0xb8] sm:$0xff] %v478_v36  ;;  %v387_v47 = vadd.f32 %v1230_v1, %v349_v40  ;;  %v351_v49 = vmul.f32 %v1228_v0, %v313_v33  ;;  %v352_v50 = vmul.f32 %v1228_v0, %v314_v34  ;;  %v479_v51 = vmax.f32 %v447_v41, 0.0 }
  0xb1   : > { %v449_v52 = vadd.f32 %v417_v38, %v385_v42  ;;  %v450_v53 = vadd.f32 %v418_v39, %v386_v43  ;;  %v388_v54 = vadd.f32 %v1230_v1, %v350_v45  ;;  %v480_v57 = vmax.f32 %v448_v46, 0.0 }
  0xb2   : > { %v451_v58 = vadd.f32 %v419_v44, %v387_v47  ;;  %v389_v59 = vadd.f32 %v1230_v1, %v351_v49  ;;  %v390_v60 = vadd.f32 %v1230_v1, %v352_v50  ;;  %511 = vst [vmem:[%s1269_s26 + $0xc0] sm:$0xff] %v479_v51 }
  0xb3   : > { %v481_v0 = vmax.f32 %v449_v52, 0.0  ;;  %v482_v61 = vmax.f32 %v450_v53, 0.0  ;;  %v452_v62 = vadd.f32 %v420_v48, %v388_v54  ;;  %512 = vst [vmem:[%s1269_s26 + $0xc8] sm:$0xff] %v480_v57 }
  0xb4   : > { %v483_v63 = vmax.f32 %v451_v58, 0.0  ;;  %v453_v2 = vadd.f32 %v421_v55, %v389_v59  ;;  %v454_v3 = vadd.f32 %v422_v56, %v390_v60 }
  0xb5   : > { %513 = vst [vmem:[%s1269_s26 + $0xd0] sm:$0xff] %v481_v0  ;;  %514 = vst [vmem:[%s1269_s26 + $0xd8] sm:$0xff] %v482_v61  ;;  %v484_v4 = vmax.f32 %v452_v62, 0.0 }
  0xb6   : > { %515 = vst [vmem:[%s1269_s26 + $0xe0] sm:$0xff] %v483_v63  ;;  %v485_v1 = vmax.f32 %v453_v2, 0.0  ;;  %v486_v5 = vmax.f32 %v454_v3, 0.0 }
  0xb7   : > { %516 = vst [vmem:[%s1269_s26 + $0xe8] sm:$0xff] %v484_v4 }
  0xb8   : > { %517 = vst [vmem:[%s1269_s26 + $0xf0] sm:$0xff] %v485_v1  ;;  %518 = vst [vmem:[%s1269_s26 + $0xf8] sm:$0xff] %v486_v5 }
  0xb9   : > { %880 = shalt.err (!%p877_p5)
}
  0xba   : > { %s881_s6 = scalar_lea.hbm %s1396_s19, 4096  ;;  %s885_s12 = scalar_lea.hbm %s1450_s4, 8192 }
  0xbb   : > { %p882_p1 = scmp.ne.s32.totalorder %s1396_s19, %s881_s6  ;;  %p886_p10 = scmp.lt.u32.totalorder %s1396_s19, %s1450_s4 }
  0xbc   : > { %p887_p2 = scmp.lt.u32.totalorder %s885_s12, %s881_s6  ;;  %p889_p7 = scmp.lt.u32.totalorder %s881_s6, %s1396_s19 }
  0xbd   : > { %p883_p8 = pnand %p882_p1, %p1473_p6 }
  0xbe   : > { %p888_p0 = por %p887_p2, %p886_p10 }
  0xbf   : > { %p884_p9 = pneg %p883_p8 }
  0xc0   : > { %p890_p12 = por %p889_p7, %p888_p0 }
  0xc2   : > { %p891_p13 = pnand %p890_p12, %p884_p9 }
  0xc4   : > { %894 = shalt.err (!%p891_p13)
}
  0xc5   : > { %s954_s25 = smov 128   ;;  %s955_s26 = smov 8  }
  0xc6   : > { %687 = dma.vmem_to_hbm [thread:$0]  (%p1473_p6), %s1398_s14, 4096, %s1396_s19, %s520_s23, %s954_s25, %s954_s25, %s955_s26  }
  0xc7 PF: > { %s548_s13 = sand.u32 1, %s933_s15   ;;  %p1474_p11 = scmp.ne.s32.totalorder %s1460_s28, 0 }
  0xc8   : > { %p1475_p3 = scmp.ge.s32.totalorder %s945_s18, 2  ;;  %s549_s5 = scalar_lea.sflag [#allocation4], %s548_s13 }
  0xca   : > { %p704_p4 = pnand %p1475_p3, %p1474_p11 }
  0xcc   : > { %928 = dma.done.wait (!%p704_p4), %s549_s5, 4096  }
  0xcd   : > { %930 = vsyncadd (!%p704_p4), %s549_s5, 4294963200  ;;  %p21_p5 = scmp.ge.s32.totalorder %s1006_s21, 4   ;;  %s1476_s15 = smov %s937_s16 }
  0xce   : > { %s1477_s16 = smov %s941_s17  ;;  %s1478_s17 = smov %s1018_s24 }
  0xcf   : > { %s1479_s18 = smov %s1006_s21  ;;  %23 = sbr.rel (!%p21_p5) target bundleno = 10 (0xa), region = 102 }
  0xd6   :  { %554 = vsyncpa [#allocation3], 1 }
  0xd7   :  { %556 = vsyncpa [#allocation3 + $0x1], 1 }
  0xd8   :  { %557 = vsyncpa [#allocation6], 1 }
  0xd9   :  { %559 = vsyncpa [#allocation6 + $0x1], 1 }
  0xda   :  { %560 = vsyncpa [#allocation9], 1 }
  0xdb   :  { %561 = vsyncpa [#allocation4], 1 }
  0xdc   :  { %563 = vsyncpa [#allocation4 + $0x1], 1 }

// kernel: basic_block_pallas.4
= control target key start
LH: loop header
LB: loop body
LE: loop exit
PB: predicated region body
PF: predicated region fallthrough
CT: control target
= control target key end

     0   :  { %11 = vsyncpa [#allocation3], 0  ;;  %s4980_s0 = inlined_call_operand.hbm [shape: f32[2,16,16,128], index: 0, kind: input, shape index: {}]   ;;  %s4981_s1 = inlined_call_operand.hbm [shape: f32[1,128], index: 1, kind: input, shape index: {}]   ;;  %s4982_s2 = inlined_call_operand.hbm [shape: f32[1,128], index: 2, kind: input, shape index: {}]   ;;  %s4983_s3 = inlined_call_operand.hbm [shape: bf16[1152,128], index: 3, kind: input, shape index: {}]   ;;  %s4984_s4 = inlined_call_operand.hbm [shape: f32[2,16,16,128], index: 4, kind: output, shape index: {0}]   ;;  %s4985_s5 = inlined_call_operand.hbm [shape: f32[2,2,128], index: 5, kind: output, shape index: {1}]  }
   0x1   :  { %13 = vsyncpa [#allocation3 + $0x1], 0 }
   0x2   :  { %14 = vsyncpa [#allocation6], 0 }
   0x3   :  { %15 = vsyncpa [#allocation9], 0 }
   0x4   :  { %16 = vsyncpa [#allocation4], 0 }
   0x5   :  { %18 = vsyncpa [#allocation4 + $0x1], 0 }
   0x6   :  { %19 = vsyncpa [#allocation12], 0 }
   0x7   :  { %21 = vsyncpa [#allocation12 + $0x1], 0  ;;  %s3718_s18 = smov 0   ;;  %s3720_s19 = smov 0  }
   0x8   :  { %s3722_s20 = smov 0   ;;  %s3724_s21 = smov 0  }
   0x9 LB: > { %s3739_s22 = sadd.s32 4294967295, %s3673_s21   ;;  %s2655_s23 = sadd.s32 4294967294, %s3673_s21   ;;  %s3673_s21 = sphi %s3724_s21, %s5011_s21   ;;  %s3669_s20 = sphi %s3722_s20, %s5010_s20   ;;  %s3665_s19 = sphi %s3720_s19, %s5009_s19   ;;  %s3661_s18 = sphi %s3718_s18, %s5008_s18  }
   0xa   : > { %p47_p0 = scmp.ne.s32.totalorder %s3665_s19, %s3661_s18  ;;  %p4986_p1 = scmp.eq.s32.totalorder %s3739_s22, 0 }
   0xb   : > { %p140_p3 = scmp.eq.s32.totalorder %s2655_s23, 1  ;;  %p2656_p5 = scmp.ge.s32.totalorder %s3673_s21, 1 }
   0xc   : > { %p3748_p4 = por %p4986_p1, %p47_p0  ;;  %p173_p7 = scmp.lt.s32.totalorder %s3673_s21, 3 }
   0xd   : > { %p3753_p6 = por %p140_p3, %p47_p0  ;;  %s3675_s27 = smov [#allocation5]  }
   0xe   : > { %s4989_s24 = scalar_select %p3748_p4, 1, 0 }
   0xf   : > { %s4990_s25 = scalar_select %p3753_p6, 1, 0 }
  0x10   : > { %p3758_p8 = pnand %p2656_p5, %p173_p7  ;;  %s186_s28 = sshll.u32 %s3675_s27, 4  ;;  %s187_s28 = int_to_ptr.vmem [resolvable:$true] %s186_s28 }
  0x11   : > { %s3676_s29 = smov [#allocation7]   ;;  %s3677_s7 = smov [#allocation8]  }
  0x12   : > { %s4991_s26 = scalar_select %p3758_p8, 1, 0 }
  0x13   : > { %p3308_p10 = pneg %p3758_p8  ;;  %s197_s30 = sshll.u32 %s3676_s29, 4  ;;  %s3771_s30 = int_to_ptr.vmem [resolvable:$true] %s197_s30 }
  0x14   : > { %s207_s8 = sshll.u32 %s3677_s7, 4  ;;  %s3453_s11 = scalar_lea.hbm %s4981_s1, 16  ;;  %s3773_s8 = int_to_ptr.vmem [resolvable:$true] %s207_s8 }
  0x15   : > { %p3767_p11 = pnand %p3308_p10, %p4986_p1  ;;  %p3454_p12 = scmp.ne.s32.totalorder %s4981_s1, %s3453_s11 }
  0x16   : > { %p3460_p5 = scmp.lt.u32.totalorder %s3453_s11, %s4981_s1 }
  0x17   : > { %p3783_p13 = pneg %p3767_p11 }
  0x19   : > { %p3456_p0 = pnand %p3783_p13, %p3454_p12 }
  0x1b   : > { %p3457_p3 = pneg %p3456_p0 }
  0x1d   : > { %p3462_p7 = pnand %p3460_p5, %p3457_p3 }
  0x1f   : > { %3465 = shalt.err (!%p3462_p7)
}
  0x20   : > { %s3466_s17 = scalar_lea.vmem %s187_s28, 16  ;;  %s3473_s23 = scalar_lea.vmem %s187_s28, 32 }
  0x21   : > { %p3467_p10 = scmp.ne.s32.totalorder %s187_s28, %s3466_s17  ;;  %p3474_p2 = scmp.lt.s32.totalorder %s187_s28, %s187_s28 }
  0x22   : > { %p3475_p6 = scmp.lt.s32.totalorder %s3473_s23, %s3466_s17 }
  0x23   : > { %p3469_p9 = pnand %p3467_p10, %p3783_p13 }
  0x24   : > { %p3476_p4 = por %p3475_p6, %p3474_p2 }
  0x25   : > { %p3470_p1 = pneg %p3469_p9 }
  0x27   : > { %p3477_p8 = pnand %p3476_p4, %p3470_p1 }
  0x29   : > { %3480 = shalt.err (!%p3477_p8)
}
  0x2a   : > { %3311 = dma.hbm_to_vmem [thread:$0]  (!%p3767_p11), %s4981_s1, 16, %s187_s28, [#allocation6]  }
  0x2b   : > { %s3481_s10 = scalar_lea.hbm %s4982_s2, 16 }
  0x2c   : > { %p3482_p9 = scmp.ne.s32.totalorder %s4982_s2, %s3481_s10  ;;  %p3488_p1 = scmp.lt.u32.totalorder %s3481_s10, %s4982_s2 }
  0x2e   : > { %p3484_p12 = pnand %p3482_p9, %p3783_p13 }
  0x30   : > { %p3485_p2 = pneg %p3484_p12 }
  0x32   : > { %p3490_p4 = pnand %p3488_p1, %p3485_p2 }
  0x34   : > { %3493 = shalt.err (!%p3490_p4)
}
  0x35   : > { %s3494_s28 = scalar_lea.vmem %s3771_s30, 16  ;;  %s3501_s16 = scalar_lea.vmem %s3771_s30, 32 }
  0x36   : > { %p3495_p6 = scmp.ne.s32.totalorder %s3771_s30, %s3494_s28  ;;  %p3502_p3 = scmp.lt.s32.totalorder %s3771_s30, %s3771_s30 }
  0x37   : > { %p3503_p5 = scmp.lt.s32.totalorder %s3501_s16, %s3494_s28 }
  0x38   : > { %p3497_p8 = pnand %p3495_p6, %p3783_p13 }
  0x39   : > { %p3504_p7 = por %p3503_p5, %p3502_p3 }
  0x3a   : > { %p3498_p0 = pneg %p3497_p8 }
  0x3c   : > { %p3505_p10 = pnand %p3504_p7, %p3498_p0 }
  0x3e   : > { %3508 = shalt.err (!%p3505_p10)
}
  0x3f   : > { %3314 = dma.hbm_to_vmem [thread:$0]  (!%p3767_p11), %s4982_s2, 16, %s3771_s30, [#allocation6]  }
  0x40   : > { %s3509_s7 = scalar_lea.hbm %s4983_s3, 9216 }
  0x41   : > { %p3510_p9 = scmp.ne.s32.totalorder %s4983_s3, %s3509_s7  ;;  %p3516_p1 = scmp.lt.u32.totalorder %s3509_s7, %s4983_s3 }
  0x43   : > { %p3512_p12 = pnand %p3510_p9, %p3783_p13 }
  0x45   : > { %p3513_p2 = pneg %p3512_p12 }
  0x47   : > { %p3518_p4 = pnand %p3516_p1, %p3513_p2 }
  0x49   : > { %3521 = shalt.err (!%p3518_p4)
}
  0x4a   : > { %s3522_s30 = scalar_lea.vmem %s3773_s8, 9216  ;;  %p3530_p3 = scmp.lt.s32.totalorder %s3773_s8, %s3773_s8 }
  0x4b   : > { %p3523_p6 = scmp.ne.s32.totalorder %s3773_s8, %s3522_s30  ;;  %p3531_p5 = scmp.lt.s32.totalorder %s3522_s30, %s3522_s30 }
  0x4d   : > { %p3525_p8 = pnand %p3523_p6, %p3783_p13  ;;  %p3532_p7 = por %p3531_p5, %p3530_p3 }
  0x4f   : > { %p3526_p0 = pneg %p3525_p8 }
  0x51   : > { %p3533_p10 = pnand %p3532_p7, %p3526_p0 }
  0x53   : > { %3536 = shalt.err (!%p3533_p10)
}
  0x54   : > { %s3678_s13 = smov 64   ;;  %s3679_s14 = smov 4  }
  0x55   : > { %3317 = dma.hbm_to_vmem [thread:$0]  (!%p3767_p11), %s4983_s3, 9216, %s3773_s8, [#allocation9], %s3678_s13, %s3678_s13, %s3679_s14  }
  0x56   : > { %s3847_s16 = sadd.s32 1, %s3673_s21   ;;  %s34_s23 = sadd.s32 1, %s3669_s20 }
  0x57   : > { %s31_s17 = ssub.s32 %s3673_s21, %s3847_s16  ;;  %p41_p9 = scmp.ne.s32.totalorder %s3669_s20, %s3665_s19 }
  0x58   : > { %p32_p13 = scmp.eq.s32.totalorder %s31_s17, 0  ;;  %p42_p12 = scmp.eq.s32.totalorder %s3673_s21, 0 }
  0x59   : > { %p3332_p2 = scmp.lt.s32.totalorder %s3673_s21, 2  ;;  %p4994_p4 = scmp.eq.s32.totalorder %s3739_s22, 1 }
  0x5a   : > { %s3857_s27 = scalar_select %p32_p13, %s3669_s20, %s34_s23  }
  0x5b   : > { %p43_p1 = por %p42_p12, %p41_p9  ;;  %p3861_p6 = por %p4994_p4, %p41_p9 }
  0x5c   : > { %s221_s6 = sand.u32 1, %s3669_s20   ;;  %s2752_s7 = sshll.u32 %s3673_s21, 12 }
  0x5d   : > { %s2661_s8 = sshll.u32 %s221_s6, 8  ;;  %s3870_s11 = scalar_lea.hbm %s4980_s0, %s2752_s7 }
  0x5e   : > { %s225_s12 = scalar_lea.vmem [#allocation2], %s2661_s8  ;;  %p3872_p11 = pnand %p3332_p2, %p43_p1 }
  0x5f   : > { %s232_s30 = sshll.u32 %s225_s12, 4  ;;  %s3878_s14 = scalar_lea.sflag [#allocation3], %s221_s6  ;;  %s3876_s30 = int_to_ptr.vmem [resolvable:$true] %s232_s30 }
  0x60   : > { %s3537_s15 = scalar_lea.hbm %s3870_s11, 4096  ;;  %p3539_p0 = pneg %p3872_p11 }
  0x61   : > { %p3538_p8 = scmp.ne.s32.totalorder %s3870_s11, %s3537_s15  ;;  %s3542_s23 = scalar_lea.hbm %s4980_s0, 8192 }
  0x62   : > { %p3543_p7 = scmp.lt.u32.totalorder %s3870_s11, %s4980_s0  ;;  %p3544_p10 = scmp.lt.u32.totalorder %s3542_s23, %s3537_s15 }
  0x63   : > { %p3540_p3 = pnand %p3539_p0, %p3538_p8  ;;  %p3546_p9 = scmp.lt.u32.totalorder %s3537_s15, %s3870_s11 }
  0x64   : > { %p3545_p13 = por %p3544_p10, %p3543_p7 }
  0x65   : > { %p3541_p5 = pneg %p3540_p3 }
  0x66   : > { %p3547_p12 = por %p3546_p9, %p3545_p13 }
  0x68   : > { %p3548_p2 = pnand %p3547_p12, %p3541_p5 }
  0x6a   : > { %3551 = shalt.err (!%p3548_p2)
}
  0x6b   : > { %s3552_s6 = scalar_lea.vmem %s3876_s30, 4096  ;;  %s3680_s9 = smov [#allocation2]  }
  0x6c   : > { %p3553_p1 = scmp.ne.s32.totalorder %s3876_s30, %s3552_s6  ;;  %s3557_s10 = sshll.u32 %s3680_s9, 4  ;;  %s3558_s10 = int_to_ptr.vmem [resolvable:$false] %s3557_s10 }
  0x6d   : > { %s3559_s12 = scalar_lea.vmem %s3558_s10, 8192  ;;  %p3560_p3 = scmp.lt.s32.totalorder %s3876_s30, %s3558_s10 }
  0x6e   : > { %p3555_p4 = pnand %p3553_p1, %p3539_p0  ;;  %p3561_p7 = scmp.lt.s32.totalorder %s3559_s12, %s3552_s6 }
  0x70   : > { %p3556_p8 = pneg %p3555_p4  ;;  %p3562_p10 = por %p3561_p7, %p3560_p3 }
  0x72   : > { %p3563_p13 = pnand %p3562_p10, %p3556_p8 }
  0x74   : > { %3566 = shalt.err (!%p3563_p13)
}
  0x75   : > { %s3681_s15 = smov 128   ;;  %s3682_s28 = smov 8  }
  0x76   : > { %3321 = dma.hbm_to_vmem [thread:$0]  (!%p3872_p11), %s3870_s11, 4096, %s3876_s30, %s3878_s14, %s3681_s15, %s3681_s15, %s3682_s28  }
  0x77   : > { %p4997_p0 = scmp.ne.s32.totalorder %s4991_s26, 0 }
  0x78   : > { %s3909_s17 = sand.u32 (!%p4997_p0), 1, %s3665_s19   ;;  %p4998_p5 = scmp.ne.s32.totalorder (!%p4997_p0), %s4989_s24, 0 }
  0x79   : > { %244 = sbr.rel (%p4997_p0) target bundleno = 716 (0x2cc), region = 36  ;;  %s2665_s23 = sshll.u32 (!%p4997_p0), %s3909_s17, 8 }
  0x7a   : > { %s247_s7 = scalar_lea.sflag (!%p4997_p0), [#allocation3], %s3909_s17  ;;  %s3915_s8 = scalar_lea.vmem (!%p4997_p0), [#allocation2], %s2665_s23 }
  0x80   : > { %3640 = dma.done.wait (%p4998_p5), %s247_s7, 4096  }
  0x81   : > { %3642 = vsyncadd (%p4998_p5), %s247_s7, 4294963200  ;;  %p4999_p11 = scmp.eq.s32.totalorder %s3739_s22, 0 }
  0x83   : > { %3644 = dma.done.wait (%p4999_p11), [#allocation6], 32   ;;  %p5000_p9 = pmov %p4999_p11 }
  0x85   : > { %3646 = vsyncadd (%p5000_p9), [#allocation6], 4294967264  ;;  %p5001_p12 = pmov %p5000_p9 }
  0x86   : > { %p5002_p2 = pmov %p5000_p9 }
  0x87   : > { %3648 = dma.done.wait (%p5001_p12), [#allocation9], 9216  }
  0x88   : > { %3650 = vsyncadd (%p5002_p2), [#allocation9], 4294958080  ;;  %vm606_vm0 = vcmask 1040384   ;;  %vm607_vm1 = vsmask.f32 256  ;;  %v3683_v0 = vmov 0  }
  0x89   : > { %v456_v1 = vrot.slane %v3683_v0, 7  ;;  %vm3929_vm2 = vmand %vm606_vm0, %vm607_vm1  ;;  %vm643_vm3 = vsmask.f32 7424  ;;  %v3379_v10 = vld [vmem:[#allocation8 + $0x40] sm:$0xff]   ;;  %v3381_v13 = vld [vmem:[#allocation8 + $0x48] sm:$0xff]   ;;  %vm884_vm4 = vcmask 1046528  }
  0x8a   : > { %v3380_v11 = vld [vmem:[#allocation8] sm:$0xff]   ;;  %2754 = vmatprep.subr.bf16.mxu0 %v3379_v10  ;;  %3274 = vmatprep.subr.bf16.mxu1 %v3379_v10  ;;  %v3382_v14 = vld [vmem:[#allocation8 + $0x8] sm:$0xff]   ;;  %v3383_v16 = vld [vmem:[#allocation8 + $0x50] sm:$0xff]   ;;  %s4816_s24 = scalar_lea.vmem [#allocation10], %s2665_s23  ;;  %s2753_s26 = sshll.u32 %s3739_s22, 12 }
  0x8b   : > { %v3935_v3 = vsel %vm3929_vm2, 0, %v456_v1  ;;  %v3939_v4 = vsel %vm3929_vm2, %v456_v1, 0  ;;  %2755 = vmatpush3.bf16.msra.mxu0 %v3380_v11  ;;  %3282 = vmatpush3.bf16.msra.mxu1 %v3380_v11  ;;  %v3384_v17 = vld [vmem:[#allocation8 + $0x10] sm:$0xff]   ;;  %v3385_v18 = vld [vmem:[#allocation8 + $0x58] sm:$0xff]   ;;  %v3387_v20 = vld [vmem:[#allocation8 + $0x60] sm:$0xff]   ;;  %s2508_s11 = sshll.u32 %s4816_s24, 4  ;;  %s4901_s14 = scalar_lea.hbm %s4984_s4, %s2753_s26  ;;  %s4903_s11 = int_to_ptr.vmem [resolvable:$true] %s2508_s11 }
  0x8c   : > { %v645_v5 = vshrl.u32 %v3935_v3, 16  ;;  %v647_v6 = vshll.u32 %v3935_v3, 16  ;;  %v652_v7 = vshll.u32 %v3939_v4, 16  ;;  %2756 = vmatprep.subr.bf16.mxu0 %v3381_v13  ;;  %3275 = vmatprep.subr.bf16.mxu1 %v3381_v13  ;;  %v3386_v19 = vld [vmem:[#allocation8 + $0x18] sm:$0xff]   ;;  %v3388_v21 = vld [vmem:[#allocation8 + $0x20] sm:$0xff]   ;;  %v3389_v22 = vld [vmem:[#allocation8 + $0x68] sm:$0xff]  }
  0x8d   : > { %v3948_v23 = vld [vmem:[#allocation5] ss:$0 sm:$0xff]  ;;  %v3950_v24 = vld [vmem:[#allocation7] ss:$0 sm:$0xff]  ;;  %v319_v25 = vld [vmem:[%s3915_s8 + $0xb0] sm:$0xff]  ;;  %s2490_s6 = scalar_lea.sflag [#allocation4], %s3909_s17 }
  0x8e   : > { %v649_v8 = vrot.slane %v647_v6, 1  ;;  %v654_v9 = vrot.slane %v652_v7, 1  ;;  %v320_v26 = vld [vmem:[%s3915_s8 + $0xb8] sm:$0xff]  ;;  %v357_v27 = vmul.f32 %v3948_v23, %v319_v25  ;;  %v3390_v29 = vld [vmem:[#allocation8 + $0x28] sm:$0xff]   ;;  %v297_v37 = vld [vmem:[%s3915_s8] sm:$0xff]  ;;  %s3567_s9 = scalar_lea.vmem %s4903_s11, 4096 }
  0x8f   : > { %2757 = vmatpush3.bf16.msra.mxu0 %v3382_v14  ;;  %3283 = vmatpush3.bf16.msra.mxu1 %v3382_v14  ;;  %v358_v28 = vmul.f32 %v3948_v23, %v320_v26  ;;  %v3391_v31 = vld [vmem:[#allocation8 + $0x70] sm:$0xff]   ;;  %v3393_v36 = vld [vmem:[#allocation8 + $0x78] sm:$0xff]   ;;  %v298_v38 = vld [vmem:[%s3915_s8 + $0x8] sm:$0xff]  ;;  %v335_v40 = vmul.f32 %v3948_v23, %v297_v37  ;;  %p3568_p1 = scmp.ne.s32.totalorder %s4903_s11, %s3567_s9  ;;  %s3684_s10 = smov [#allocation10]  }
  0x90   : > { %v650_v12 = vor.u32 %v649_v8, %v645_v5  ;;  %2758 = vmatprep.subr.bf16.mxu0 %v3383_v16  ;;  %3276 = vmatprep.subr.bf16.mxu1 %v3383_v16  ;;  %v395_v30 = vadd.f32 %v3950_v24, %v357_v27  ;;  %v3392_v34 = vld [vmem:[#allocation8 + $0x30] sm:$0xff]   ;;  %v336_v41 = vmul.f32 %v3948_v23, %v298_v38  ;;  %v321_v42 = vld [vmem:[%s3915_s8 + $0xc0] sm:$0xff]  ;;  %v322_v43 = vld [vmem:[%s3915_s8 + $0xc8] sm:$0xff]  ;;  %s3571_s12 = sshll.u32 %s3684_s10, 4  ;;  %s3572_s12 = int_to_ptr.vmem [resolvable:$false] %s3571_s12 }
  0x91   : > { %v396_v32 = vadd.f32 %v3950_v24, %v358_v28  ;;  %v359_v44 = vmul.f32 %v3948_v23, %v321_v42  ;;  %v360_v45 = vmul.f32 %v3948_v23, %v322_v43  ;;  %v3394_v46 = vld [vmem:[#allocation8 + $0x38] sm:$0xff]   ;;  %v3395_v49 = vld [vmem:[#allocation8 + $0xc0] sm:$0xff]   ;;  %v373_v50 = vadd.f32 %v3950_v24, %v335_v40  ;;  %v299_v5 = vld [vmem:[%s3915_s8 + $0x10] sm:$0xff]  ;;  %p3569_p4 = pnand %p3568_p1, %p3861_p6  ;;  %s3573_s15 = scalar_lea.vmem %s3572_s12, 8192 }
  0x92   : > { %v3945_v15 = vsel %vm643_vm3, %v650_v12, %v654_v9  ;;  %v427_v33 = vmax.f32 %v395_v30, 0.0  ;;  %v374_v51 = vadd.f32 %v3950_v24, %v336_v41  ;;  %v3396_v55 = vld [vmem:[#allocation8 + $0x140] sm:$0xff]   ;;  %v300_v6 = vld [vmem:[%s3915_s8 + $0x18] sm:$0xff]  ;;  %v3404_v10 = vld [vmem:[#allocation8 + $0x148] sm:$0xff]   ;;  %v337_v11 = vmul.f32 %v3948_v23, %v299_v5  ;;  %p3574_p3 = scmp.lt.s32.totalorder %s4903_s11, %s3572_s12  ;;  %p3575_p7 = scmp.lt.s32.totalorder %s3573_s15, %s3567_s9 }
  0x93   : > { %1576 = vmatprep.mubr.bf16.mxu0 %v3945_v15  ;;  %2759 = vmatpush3.bf16.msra.mxu0 %v3384_v17  ;;  %v428_v35 = vmax.f32 %v396_v32, 0.0  ;;  %v397_v52 = vadd.f32 %v3950_v24, %v359_v44  ;;  %v398_v53 = vadd.f32 %v3950_v24, %v360_v45  ;;  %v405_v56 = vmax.f32 %v373_v50, 0.0  ;;  %v3398_v0 = vld [vmem:[#allocation8 + $0x100] sm:$0xff]   ;;  %v323_v12 = vld [vmem:[%s3915_s8 + $0xd0] sm:$0xff]  ;;  %v324_v13 = vld [vmem:[%s3915_s8 + $0xd8] sm:$0xff]  ;;  %p3570_p8 = pneg %p3569_p4 }
  0x94   : > { %3284 = vmatpush3.bf16.msra.mxu1 %v3384_v17  ;;  %2760 = vmatprep.subr.bf16.mxu0 %v3385_v18  ;;  %v406_v57 = vmax.f32 %v374_v51, 0.0  ;;  %v3406_v27 = vld [vmem:[#allocation8 + $0x108] sm:$0xff]   ;;  %v361_v28 = vmul.f32 %v3948_v23, %v323_v12  ;;  %v3397_v38 = vld [vmem:[#allocation8 + $0x80] sm:$0xff]   ;;  %v3412_v5 = vld [vmem:[#allocation8 + $0x150] sm:$0xff]   ;;  %p3576_p10 = por %p3575_p7, %p3574_p3 }
  0x95   : > { %3277 = vmatprep.subr.bf16.mxu1 %v3385_v18  ;;  %v448_v39 = vpack.c.bf16 %v428_v35, %v427_v33  ;;  %v429_v58 = vmax.f32 %v397_v52, 0.0  ;;  %v430_v59 = vmax.f32 %v398_v53, 0.0  ;;  %v301_v44 = vld [vmem:[%s3915_s8 + $0x20] sm:$0xff]  ;;  %v326_v51 = vld [vmem:[%s3915_s8 + $0xe8] sm:$0xff] }
  0x96   : > { %v437_v62 = vpack.c.bf16 %v406_v57, %v405_v56  ;;  %v399_v43 = vadd.f32 %v3950_v24, %v361_v28  ;;  %v325_v50 = vld [vmem:[%s3915_s8 + $0xe0] sm:$0xff]  ;;  %v3400_v52 = vld [vmem:[#allocation8 + $0x88] sm:$0xff]   ;;  %p3577_p13 = pnand %p3576_p10, %p3570_p8 }
  0x97   : > { %2761 = vmatpush3.bf16.msra.mxu0 %v3386_v19  ;;  %v538_v47 = vshrl.u32 %v448_v39, 16  ;;  %v541_v48 = vshll.u32 %v448_v39, 16  ;;  %v449_v1 = vpack.c.bf16 %v430_v59, %v429_v58  ;;  %v3399_v39 = vld [vmem:[#allocation8 + $0xc8] sm:$0xff]  }
  0x98   : > { %3285 = vmatpush3.bf16.msra.mxu1 %v3386_v19  ;;  %2762 = vmatprep.subr.bf16.mxu0 %v3387_v20  ;;  %v461_v8 = vshrl.u32 %v437_v62, 16  ;;  %v464_v9 = vshll.u32 %v437_v62, 16 }
  0x99   : > { %3278 = vmatprep.subr.bf16.mxu1 %v3387_v20  ;;  %v540_v54 = vrot.slane %v538_v47, 7  ;;  %v545_v18 = vshrl.u32 %v449_v1, 16  ;;  %v548_v20 = vshll.u32 %v449_v1, 16  ;;  %v339_v1 = vmul.f32 %v3948_v23, %v301_v44 }
  0x9a   : > { %v463_v19 = vrot.slane %v461_v8, 7 }
  0x9b   : > { %2763 = vmatpush3.bf16.msra.mxu0 %v3388_v21  ;;  %v543_v60 = vor.u32 %v541_v48, %v540_v54  ;;  %v3972_v61 = vsel %vm3929_vm2, %v540_v54, 0  ;;  %v547_v26 = vrot.slane %v545_v18, 7 }
  0x9c   : > { %3286 = vmatpush3.bf16.msra.mxu1 %v3388_v21  ;;  %2764 = vmatprep.subr.bf16.mxu0 %v3389_v22  ;;  %v796_v63 = vshll.u32 %v3972_v61, 16  ;;  %v338_v21 = vmul.f32 %v3948_v23, %v300_v6  ;;  %v466_v30 = vor.u32 %v464_v9, %v463_v19  ;;  %v3401_v9 = vld [vmem:[#allocation8 + $0xd0] sm:$0xff]  }
  0x9d   : > { %3279 = vmatprep.subr.bf16.mxu1 %v3389_v22  ;;  %v3979_v7 = vsel %vm3929_vm2, 0, %v543_v60  ;;  %v375_v22 = vadd.f32 %v3950_v24, %v337_v11  ;;  %v3999_v37 = vsel %vm3929_vm2, %v547_v26, 0  ;;  %v431_v60 = vmax.f32 %v399_v43, 0.0 }
  0x9e   : > { %v789_v14 = vshrl.u32 %v3979_v7, 16  ;;  %v791_v16 = vshll.u32 %v3979_v7, 16  ;;  %v798_v17 = vrot.slane %v796_v63, 1  ;;  %v376_v32 = vadd.f32 %v3950_v24, %v338_v21 }
  0x9f   : > { %2765 = vmatpush3.bf16.msra.mxu0 %v3390_v29  ;;  %v407_v33 = vmax.f32 %v375_v22, 0.0  ;;  %v4003_v40 = vsel %vm3929_vm2, 0, %v466_v30  ;;  %v808_v41 = vshll.u32 %v3999_v37, 16  ;;  %v363_v11 = vmul.f32 %v3948_v23, %v325_v50 }
  0xa0   : > { %3287 = vmatpush3.bf16.msra.mxu1 %v3390_v29  ;;  %2766 = vmatprep.subr.bf16.mxu0 %v3391_v31  ;;  %v793_v25 = vrot.slane %v791_v16, 1  ;;  %v362_v29 = vmul.f32 %v3948_v23, %v324_v13  ;;  %v408_v42 = vmax.f32 %v376_v32, 0.0  ;;  %v659_v47 = vshll.u32 %v4003_v40, 16 }
  0xa1   : > { %3280 = vmatprep.subr.bf16.mxu1 %v3391_v31  ;;  %v3993_v31 = vsel %vm3929_vm2, %v463_v19, 0  ;;  %v810_v54 = vrot.slane %v808_v41, 1  ;;  %v364_v16 = vmul.f32 %v3948_v23, %v326_v51  ;;  %v401_v22 = vadd.f32 %v3950_v24, %v363_v11  ;;  %v305_v11 = vld [vmem:[%s3915_s8 + $0x40] sm:$0xff] }
  0xa2   : > { %v664_v35 = vshll.u32 %v3993_v31, 16  ;;  %v400_v56 = vadd.f32 %v3950_v24, %v362_v29  ;;  %v661_v57 = vrot.slane %v659_v47, 1 }
  0xa3   : > { %2767 = vmatpush3.bf16.msra.mxu0 %v3392_v34  ;;  %v402_v41 = vadd.f32 %v3950_v24, %v364_v16 }
  0xa4   : > { %3288 = vmatpush3.bf16.msra.mxu1 %v3392_v34  ;;  %2768 = vmatprep.subr.bf16.mxu0 %v3393_v36  ;;  %v794_v34 = vor.u32 %v793_v25, %v789_v14  ;;  %v666_v48 = vrot.slane %v664_v35, 1  ;;  %v377_v14 = vadd.f32 %v3950_v24, %v339_v1  ;;  %v3403_v25 = vld [vmem:[#allocation8 + $0xd8] sm:$0xff]   ;;  %v303_v35 = vld [vmem:[%s3915_s8 + $0x30] sm:$0xff] }
  0xa5   : > { %3281 = vmatprep.subr.bf16.mxu1 %v3393_v36  ;;  %v550_v36 = vor.u32 %v548_v20, %v547_v26  ;;  %v3402_v20 = vld [vmem:[#allocation8 + $0x90] sm:$0xff]   ;;  %v434_v51 = vmax.f32 %v402_v41, 0.0 }
  0xa6   : > { %v4009_v45 = vsel %vm643_vm3, %v794_v34, %v798_v17  ;;  %v3414_v17 = vld [vmem:[#allocation8 + $0x110] sm:$0xff]  }
  0xa7   : > { %2769 = vmatpush3.bf16.msra.mxu0 %v3394_v46  ;;  %1672 = vmatprep.mubr.bf16.mxu1 %v4009_v45  ;;  %v4019_v53 = vsel %vm3929_vm2, 0, %v550_v36  ;;  %v3405_v36 = vld [vmem:[#allocation8 + $0x98] sm:$0xff]  }
  0xa8   : > { %3289 = vmatpush3.bf16.msra.mxu1 %v3394_v46  ;;  %2978 = vmatprep.subr.bf16.mxu0 %v3396_v55  ;;  %v657_v46 = vshrl.u32 %v4003_v40, 16  ;;  %v438_v55 = vpack.c.bf16 %v408_v42, %v407_v33  ;;  %v801_v58 = vshrl.u32 %v4019_v53, 16  ;;  %v803_v59 = vshll.u32 %v4019_v53, 16 }
  0xa9   : > { %2866 = vmatprep.subr.bf16.mxu1 %v3395_v49  ;;  %v302_v49 = vld [vmem:[%s3915_s8 + $0x28] sm:$0xff]  ;;  %v409_v33 = vmax.f32 %v377_v14, 0.0  ;;  %v433_v42 = vmax.f32 %v401_v22, 0.0 }
  0xaa   : > { %1577 = vmatmul.mubr.bf16.vlgmr.msra.gmra.mrb[0].mxu0 %v3935_v3  ;;  %v468_v62 = vshrl.u32 %v438_v55, 16  ;;  %v471_v63 = vshll.u32 %v438_v55, 16  ;;  %v662_v6 = vor.u32 %v661_v57, %v657_v46  ;;  %v805_v8 = vrot.slane %v803_v59, 1  ;;  %v3419_v59 = vld [vmem:[#allocation8 + $0x158] sm:$0xff]  }
  0xab   : > { %2979 = vmatpush3.bf16.msra.mxu0 %v3398_v0  ;;  %1673 = vmatmul.mubr.bf16.vlgmr.msra.gmra.mrb[0].mxu1 %v3979_v7  ;;  %v432_v0 = vmax.f32 %v400_v56, 0.0  ;;  %v3407_v56 = vld [vmem:[#allocation8 + $0xe0] sm:$0xff]  }
  0xac   : > { %2980 = vmatprep.subr.bf16.mxu0 %v3404_v10  ;;  %2867 = vmatpush3.bf16.msra.mxu1 %v3397_v38  ;;  %v340_v10 = vmul.f32 %v3948_v23, %v302_v49  ;;  %v470_v12 = vrot.slane %v468_v62, 7  ;;  %v4031_v18 = vsel %vm643_vm3, %v662_v6, %v666_v48  ;;  %v806_v19 = vor.u32 %v805_v8, %v801_v58  ;;  %v304_v48 = vld [vmem:[%s3915_s8 + $0x38] sm:$0xff]  ;;  %v3408_v62 = vld [vmem:[#allocation8 + $0xa0] sm:$0xff]  }
  0xad   : > { %2868 = vmatprep.subr.bf16.mxu1 %v3399_v39  ;;  %v450_v13 = vpack.c.bf16 %v432_v0, %v431_v60  ;;  %1584 = vmatprep.mubr.bf16.mxu0 %v4031_v18  ;;  %v342_v0 = vmul.f32 %v3948_v23, %v304_v48 }
  0xae   : > { %v378_v21 = vadd.f32 %v3950_v24, %v340_v10  ;;  %v473_v26 = vor.u32 %v471_v63, %v470_v12  ;;  %v4041_v30 = vsel %vm643_vm3, %v806_v19, %v810_v54  ;;  %v451_v63 = vpack.c.bf16 %v434_v51, %v433_v42 }
  0xaf   : > { %2981 = vmatpush3.bf16.msra.mxu0 %v3406_v27  ;;  %v4038_v27 = vsel %vm3929_vm2, %v470_v12, 0  ;;  %v552_v28 = vshrl.u32 %v450_v13, 16  ;;  %v555_v29 = vshll.u32 %v450_v13, 16  ;;  %1680 = vmatprep.mubr.bf16.mxu1 %v4041_v30  ;;  %v380_v16 = vadd.f32 %v3950_v24, %v342_v0 }
  0xb0   : > { %2982 = vmatprep.subr.bf16.mxu0 %v3412_v5  ;;  %2869 = vmatpush3.bf16.msra.mxu1 %v3400_v52  ;;  %v676_v32 = vshll.u32 %v4038_v27, 16  ;;  %v410_v34 = vmax.f32 %v378_v21, 0.0  ;;  %v4049_v38 = vsel %vm3929_vm2, 0, %v473_v26  ;;  %v341_v52 = vmul.f32 %v3948_v23, %v303_v35  ;;  %v3420_v5 = vld [vmem:[#allocation8 + $0x118] sm:$0xff]   ;;  %v3409_v21 = vld [vmem:[#allocation8 + $0xe8] sm:$0xff]  }
  0xb1   : > { %2870 = vmatprep.subr.bf16.mxu1 %v3401_v9  ;;  %v554_v39 = vrot.slane %v552_v28, 7  ;;  %v669_v43 = vshrl.u32 %v4049_v38, 16  ;;  %v671_v44 = vshll.u32 %v4049_v38, 16  ;;  %v559_v13 = vshrl.u32 %v451_v63, 16  ;;  %v3410_v26 = vld [vmem:[#allocation8 + $0xa8] sm:$0xff]  }
  0xb2   : > { %1585 = vmatmul.mubr.bf16.gmra.mrb[4].mxu0 %v4003_v40  ;;  %v678_v46 = vrot.slane %v676_v32, 1  ;;  %v439_v47 = vpack.c.bf16 %v410_v34, %v409_v33  ;;  %v379_v1 = vadd.f32 %v3950_v24, %v341_v52  ;;  %v562_v14 = vshll.u32 %v451_v63, 16  ;;  %v3421_v34 = vld [vmem:[#allocation8 + $0x160] sm:$0xff]  }
  0xb3   : > { %2983 = vmatpush3.bf16.msra.mxu0 %v3414_v17  ;;  %1681 = vmatmul.mubr.bf16.gmra.mrb[4].mxu1 %v4019_v53  ;;  %v557_v49 = vor.u32 %v555_v29, %v554_v39  ;;  %v4058_v50 = vsel %vm3929_vm2, %v554_v39, 0  ;;  %v673_v54 = vrot.slane %v671_v44, 1  ;;  %v306_v17 = vld [vmem:[%s3915_s8 + $0x48] sm:$0xff]  ;;  %v561_v32 = vrot.slane %v559_v13, 7  ;;  %v3411_v39 = vld [vmem:[#allocation8 + $0xf0] sm:$0xff]  }
  0xb4   : > { %2871 = vmatpush3.bf16.msra.mxu1 %v3402_v20  ;;  %v820_v55 = vshll.u32 %v4058_v50, 16  ;;  %v475_v57 = vshrl.u32 %v439_v47, 16  ;;  %v478_v58 = vshll.u32 %v439_v47, 16  ;;  %2984 = vmatprep.subr.bf16.mxu0 %v3419_v59  ;;  %v411_v22 = vmax.f32 %v379_v1, 0.0  ;;  %v307_v1 = vld [vmem:[%s3915_s8 + $0x50] sm:$0xff] }
  0xb5   : > { %2872 = vmatprep.subr.bf16.mxu1 %v3403_v25  ;;  %v4064_v60 = vsel %vm3929_vm2, 0, %v557_v49  ;;  %v674_v6 = vor.u32 %v673_v54, %v669_v43  ;;  %v343_v25 = vmul.f32 %v3948_v23, %v305_v11  ;;  %v412_v33 = vmax.f32 %v380_v16, 0.0  ;;  %v3423_v54 = vld [vmem:[#allocation8 + $0x120] sm:$0xff]   ;;  %v3425_v16 = vld [vmem:[#allocation8 + $0x168] sm:$0xff]  }
  0xb6   : > { %v813_v8 = vshrl.u32 %v4064_v60, 16  ;;  %v815_v9 = vshll.u32 %v4064_v60, 16  ;;  %v822_v10 = vrot.slane %v820_v55, 1  ;;  %v477_v12 = vrot.slane %v475_v57, 7 }
  0xb7   : > { %2985 = vmatpush3.bf16.msra.mxu0 %v3420_v5  ;;  %v4074_v19 = vsel %vm643_vm3, %v674_v6, %v678_v46  ;;  %v344_v41 = vmul.f32 %v3948_v23, %v306_v17  ;;  %v381_v42 = vadd.f32 %v3950_v24, %v343_v25  ;;  %v564_v44 = vor.u32 %v562_v14, %v561_v32  ;;  %v308_v5 = vld [vmem:[%s3915_s8 + $0x58] sm:$0xff]  ;;  %v3426_v25 = vld [vmem:[#allocation8 + $0x128] sm:$0xff]  }
  0xb8   : > { %2873 = vmatpush3.bf16.msra.mxu1 %v3405_v36  ;;  %v817_v20 = vrot.slane %v815_v9, 1  ;;  %1592 = vmatprep.mubr.bf16.mxu0 %v4074_v19  ;;  %v480_v28 = vor.u32 %v478_v58, %v477_v12  ;;  %v4080_v29 = vsel %vm3929_vm2, %v477_v12, 0  ;;  %v4092_v46 = vsel %vm3929_vm2, %v561_v32, 0  ;;  %v3413_v6 = vld [vmem:[#allocation8 + $0xb0] sm:$0xff]   ;;  %v3416_v32 = vld [vmem:[#allocation8 + $0xb8] sm:$0xff]  }
  0xb9   : > { %2874 = vmatprep.subr.bf16.mxu1 %v3407_v56  ;;  %v688_v36 = vshll.u32 %v4080_v29, 16  ;;  %v440_v47 = vpack.c.bf16 %v412_v33, %v411_v22  ;;  %2986 = vmatprep.subr.bf16.mxu0 %v3421_v34  ;;  %v4102_v55 = vsel %vm3929_vm2, 0, %v564_v44  ;;  %v832_v56 = vshll.u32 %v4092_v46, 16 }
  0xba   : > { %v818_v35 = vor.u32 %v817_v20, %v813_v8  ;;  %1593 = vmatmul.mubr.bf16.gmra.mrb[8].mxu0 %v4049_v38  ;;  %v4088_v43 = vsel %vm3929_vm2, 0, %v480_v28  ;;  %v827_v63 = vshll.u32 %v4102_v55, 16  ;;  %v382_v0 = vadd.f32 %v3950_v24, %v344_v41  ;;  %v3415_v8 = vld [vmem:[#allocation8 + $0xf8] sm:$0xff]  }
  0xbb   : > { %v681_v49 = vshrl.u32 %v4088_v43, 16  ;;  %v683_v51 = vshll.u32 %v4088_v43, 16  ;;  %v690_v52 = vrot.slane %v688_v36, 1  ;;  %v482_v57 = vshrl.u32 %v440_v47, 16  ;;  %2987 = vmatpush3.bf16.msra.mxu0 %v3423_v54  ;;  %v309_v41 = vld [vmem:[%s3915_s8 + $0x60] sm:$0xff] }
  0xbc   : > { %2875 = vmatpush3.bf16.msra.mxu1 %v3408_v62  ;;  %v4095_v48 = vsel %vm643_vm3, %v818_v35, %v822_v10  ;;  %v485_v58 = vshll.u32 %v440_v47, 16  ;;  %v825_v62 = vshrl.u32 %v4102_v55, 16  ;;  %v413_v10 = vmax.f32 %v381_v42, 0.0  ;;  %2988 = vmatprep.subr.bf16.mxu0 %v3425_v16 }
  0xbd   : > { %2876 = vmatprep.subr.bf16.mxu1 %v3409_v21  ;;  %1688 = vmatprep.mubr.bf16.mxu1 %v4095_v48  ;;  %v685_v59 = vrot.slane %v683_v51, 1  ;;  %v484_v9 = vrot.slane %v482_v57, 7  ;;  %v829_v12 = vrot.slane %v827_v63, 1  ;;  %v834_v13 = vrot.slane %v832_v56, 1  ;;  %v310_v51 = vld [vmem:[%s3915_s8 + $0x68] sm:$0xff] }
  0xbe   : > { %1689 = vmatmul.mubr.bf16.gmra.mrb[8].mxu1 %v4064_v60  ;;  %v414_v14 = vmax.f32 %v382_v0, 0.0  ;;  %v345_v21 = vmul.f32 %v3948_v23, %v307_v1  ;;  %v346_v22 = vmul.f32 %v3948_v23, %v308_v5  ;;  %v347_v63 = vmul.f32 %v3948_v23, %v309_v41  ;;  %v3429_v0 = vld [vmem:[#allocation8 + $0x170] sm:$0xff]  }
  0xbf   : > { %v686_v11 = vor.u32 %v685_v59, %v681_v49  ;;  %v487_v17 = vor.u32 %v485_v58, %v484_v9  ;;  %v4113_v20 = vsel %vm3929_vm2, %v484_v9, 0  ;;  %v830_v28 = vor.u32 %v829_v12, %v825_v62  ;;  %v3417_v49 = vld [vmem:[#allocation8 + $0x1c0] sm:$0xff]   ;;  %2989 = vmatpush3.bf16.msra.mxu0 %v3426_v25  ;;  %v311_v12 = vld [vmem:[%s3915_s8 + $0x70] sm:$0xff] }
  0xc0   : > { %2877 = vmatpush3.bf16.msra.mxu1 %v3410_v26  ;;  %v700_v33 = vshll.u32 %v4113_v20, 16  ;;  %v441_v34 = vpack.c.bf16 %v414_v14, %v413_v10  ;;  %v383_v36 = vadd.f32 %v3950_v24, %v345_v21  ;;  %v886_v58 = vrot.slane %v3939_v4, 1  ;;  %2990 = vmatprep.subr.bf16.mxu0 %v3429_v0  ;;  %v3418_v25 = vld [vmem:[#allocation8 + $0x180] sm:$0xff]  }
  0xc1   : > { %2878 = vmatprep.subr.bf16.mxu1 %v3411_v39  ;;  %v4118_v26 = vsel %vm643_vm3, %v686_v11, %v690_v52  ;;  %v4124_v35 = vsel %vm3929_vm2, 0, %v487_v17  ;;  %v384_v39 = vadd.f32 %v3950_v24, %v346_v22  ;;  %v4130_v42 = vsel %vm643_vm3, %v830_v28, %v834_v13  ;;  %v3430_v13 = vld [vmem:[#allocation8 + $0x130] sm:$0xff]  }
  0xc2   : > { %1600 = vmatprep.mubr.bf16.mxu0 %v4118_v26  ;;  %v693_v44 = vshrl.u32 %v4124_v35, 16  ;;  %v695_v47 = vshll.u32 %v4124_v35, 16  ;;  %1696 = vmatprep.mubr.bf16.mxu1 %v4130_v42  ;;  %v489_v52 = vshrl.u32 %v441_v34, 16  ;;  %v492_v54 = vshll.u32 %v441_v34, 16 }
  0xc3   : > { %1601 = vmatmul.mubr.bf16.gmra.mrb[12].mxu0 %v4088_v43  ;;  %v415_v56 = vmax.f32 %v383_v36, 0.0  ;;  %v416_v57 = vmax.f32 %v384_v39, 0.0  ;;  %v702_v62 = vrot.slane %v700_v33, 1  ;;  %v885_v1 = vrot.slane %v3935_v3, 1 }
  0xc4   : > { %2879 = vmatpush3.bf16.msra.mxu1 %v3413_v6  ;;  %v697_v59 = vrot.slane %v695_v47, 1  ;;  %v491_v5 = vrot.slane %v489_v52, 7  ;;  %v888_v4 = vrot.slane %v4003_v40, 1  ;;  %v889_v10 = vrot.slane %v3993_v31, 1  ;;  %2991 = vmatpush3.bf16.msra.mxu0 %v3430_v13  ;;  %v3422_v47 = vld [vmem:[#allocation8 + $0x1c8] sm:$0xff]  }
  0xc5   : > { %2880 = vmatprep.subr.bf16.mxu1 %v3415_v8  ;;  %v442_v6 = vpack.c.bf16 %v416_v57, %v415_v56  ;;  %v348_v8 = vmul.f32 %v3948_v23, %v310_v51  ;;  %v385_v11 = vadd.f32 %v3950_v24, %v347_v63  ;;  %v4159_v33 = vsel %vm884_vm4, %v885_v1, %v886_v58  ;;  %v3433_v58 = vld [vmem:[#allocation8 + $0x178] sm:$0xff]   ;;  %v314_v13 = vld [vmem:[%s3915_s8 + $0x88] sm:$0xff] }
  0xc6   : > { %1697 = vmatmul.mubr.bf16.gmra.mrb[12].mxu1 %v4102_v55  ;;  %v698_v9 = vor.u32 %v697_v59, %v693_v44  ;;  %v494_v14 = vor.u32 %v492_v54, %v491_v5  ;;  %v4149_v16 = vsel %vm3929_vm2, %v491_v5, 0  ;;  %v349_v39 = vmul.f32 %v3948_v23, %v311_v12  ;;  %v3424_v54 = vld [vmem:[#allocation8 + $0x188] sm:$0xff]   ;;  %v3434_v1 = vld [vmem:[#allocation8 + $0x138] sm:$0xff]   ;;  %2992 = vmatprep.subr.bf16.mxu0 %v3433_v58 }
  0xc7   : > { %1737 = vmatprep.mubr.bf16.mxu1 %v4003_v40  ;;  %v496_v17 = vshrl.u32 %v442_v6, 16  ;;  %v499_v21 = vshll.u32 %v442_v6, 16  ;;  %v712_v40 = vshll.u32 %v4149_v16, 16  ;;  %v386_v31 = vadd.f32 %v3950_v24, %v348_v8  ;;  %v313_v12 = vld [vmem:[%s3915_s8 + $0x80] sm:$0xff] }
  0xc8   : > { %2881 = vmatpush3.bf16.msra.mxu1 %v3416_v32  ;;  %v4152_v22 = vsel %vm643_vm3, %v698_v9, %v702_v62  ;;  %v417_v28 = vmax.f32 %v385_v11, 0.0  ;;  %v312_v32 = vld [vmem:[%s3915_s8 + $0x78] sm:$0xff]  ;;  %v4163_v34 = vsel %vm3929_vm2, 0, %v494_v14  ;;  %v387_v57 = vadd.f32 %v3950_v24, %v349_v39  ;;  %2993 = vmatpush3.bf16.msra.mxu0 %v3434_v1 }
  0xc9   : > { %3090 = vmatprep.subr.bf16.mxu1 %v3417_v49  ;;  %1608 = vmatprep.mubr.bf16.mxu0 %v4152_v22  ;;  %v498_v36 = vrot.slane %v496_v17, 7  ;;  %v705_v41 = vshrl.u32 %v4163_v34, 16  ;;  %v707_v44 = vshll.u32 %v4163_v34, 16  ;;  %v418_v49 = vmax.f32 %v386_v31, 0.0  ;;  %v3427_v11 = vld [vmem:[#allocation8 + $0x1d0] sm:$0xff]  }
  0xca   : > { %v350_v56 = vmul.f32 %v3948_v23, %v312_v32  ;;  %v714_v62 = vrot.slane %v712_v40, 1  ;;  %v4179_v5 = vsel %vm884_vm4, %v888_v4, %v889_v10  ;;  %v419_v9 = vmax.f32 %v387_v57, 0.0  ;;  %v4191_v4 = vld [vmem:[#allocation8 + $0x200] sm:$0xff]  }
  0xcb   : > { %1609 = vmatmul.mubr.bf16.gmra.mrb[16].mxu0 %v4124_v35  ;;  %v501_v51 = vor.u32 %v499_v21, %v498_v36  ;;  %v4171_v52 = vsel %vm3929_vm2, %v498_v36, 0  ;;  %v709_v59 = vrot.slane %v707_v44, 1  ;;  %v443_v0 = vpack.c.bf16 %v418_v49, %v417_v28  ;;  %3226 = vmatprep.subr.bf16.mxu0 %v4191_v4  ;;  %v4246_v49 = vld [vmem:[#allocation5] ss:$0 sm:$0xff] }
  0xcc   : > { %v724_v63 = vshll.u32 %v4171_v52, 16  ;;  %v388_v8 = vadd.f32 %v3950_v24, %v350_v56  ;;  %v351_v39 = vmul.f32 %v3948_v23, %v313_v12  ;;  %v892_v44 = vrot.slane %v4038_v27, 1  ;;  %v3428_v56 = vld [vmem:[#allocation8 + $0x190] sm:$0xff]  }
  0xcd   : > { %v4183_v6 = vsel %vm3929_vm2, 0, %v501_v51  ;;  %v710_v14 = vor.u32 %v709_v59, %v705_v41  ;;  %v503_v40 = vshrl.u32 %v443_v0, 16  ;;  %v506_v31 = vshll.u32 %v443_v0, 16 }
  0xce   : > { %1738 = vmatmul.mubr.bf16.vlgmr.msra.gmra.mrb[16].mxu1 %v4159_v33  ;;  %v717_v17 = vshrl.u32 %v4183_v6, 16  ;;  %v719_v21 = vshll.u32 %v4183_v6, 16  ;;  %v726_v10 = vrot.slane %v724_v63, 1  ;;  %v420_v28 = vmax.f32 %v388_v8, 0.0  ;;  %v315_v63 = vld [vmem:[%s3915_s8 + $0x90] sm:$0xff]  ;;  %v3431_v8 = vld [vmem:[#allocation8 + $0x1d8] sm:$0xff]  }
  0xcf   : > { %3091 = vmatpush3.bf16.msra.mxu1 %v3418_v25  ;;  %1745 = vmatprep.mubr.bf16.mxu1 %v4049_v38  ;;  %v891_v25 = vrot.slane %v4049_v38, 1  ;;  %v4194_v32 = vsel %vm643_vm3, %v710_v14, %v714_v62  ;;  %v352_v41 = vmul.f32 %v3948_v23, %v314_v13  ;;  %v895_v58 = vrot.slane %v4080_v29, 1  ;;  %v316_v14 = vld [vmem:[%s3915_s8 + $0x98] sm:$0xff] }
  0xd0   : > { %3092 = vmatprep.subr.bf16.mxu1 %v3422_v47  ;;  %v721_v36 = vrot.slane %v719_v21, 1  ;;  %1616 = vmatprep.mubr.bf16.mxu0 %v4194_v32  ;;  %v505_v47 = vrot.slane %v503_v40, 7  ;;  %v444_v51 = vpack.c.bf16 %v420_v28, %v419_v9  ;;  %v389_v59 = vadd.f32 %v3950_v24, %v351_v39  ;;  %v3432_v39 = vld [vmem:[#allocation8 + $0x198] sm:$0xff]  }
  0xd1   : > { %v390_v62 = vadd.f32 %v3950_v24, %v352_v41  ;;  %v353_v40 = vmul.f32 %v3948_v23, %v315_v63  ;;  %v317_v41 = vld [vmem:[%s3915_s8 + $0xa0] sm:$0xff] }
  0xd2   : > { %v722_v57 = vor.u32 %v721_v36, %v717_v17  ;;  %v508_v0 = vor.u32 %v506_v31, %v505_v47  ;;  %v4209_v27 = vsel %vm3929_vm2, %v505_v47, 0  ;;  %v513_v1 = vshll.u32 %v444_v51, 16  ;;  %v3444_v29 = vld [vmem:[#allocation8 + $0x1f8] sm:$0xff]  }
  0xd3   : > { %3093 = vmatpush3.bf16.msra.mxu1 %v3424_v54  ;;  %1617 = vmatmul.mubr.bf16.gmra.mrb[20].mxu0 %v4163_v34  ;;  %v510_v54 = vshrl.u32 %v444_v51, 16  ;;  %v421_v12 = vmax.f32 %v389_v59, 0.0  ;;  %v422_v13 = vmax.f32 %v390_v62, 0.0  ;;  %v391_v59 = vadd.f32 %v3950_v24, %v353_v40 }
  0xd4   : > { %3094 = vmatprep.subr.bf16.mxu1 %v3427_v11  ;;  %v4213_v9 = vsel %vm643_vm3, %v722_v57, %v726_v10  ;;  %v736_v11 = vshll.u32 %v4209_v27, 16  ;;  %v4221_v17 = vsel %vm3929_vm2, 0, %v508_v0  ;;  %v4225_v10 = vsel %vm884_vm4, %v891_v25, %v892_v44  ;;  %v3435_v25 = vld [vmem:[#allocation8 + $0x1e0] sm:$0xff]  }
  0xd5   : > { %1624 = vmatprep.mubr.bf16.mxu0 %v4213_v9  ;;  %v512_v21 = vrot.slane %v510_v54, 7  ;;  %v729_v31 = vshrl.u32 %v4221_v17, 16  ;;  %v731_v28 = vshll.u32 %v4221_v17, 16  ;;  %v445_v36 = vpack.c.bf16 %v422_v13, %v421_v12  ;;  %v318_v13 = vld [vmem:[%s3915_s8 + $0xa8] sm:$0xff] }
  0xd6   : > { %1746 = vmatmul.mubr.bf16.gmra.mrb[20].mxu1 %v4179_v5  ;;  %v354_v57 = vmul.f32 %v3948_v23, %v316_v14  ;;  %v738_v62 = vrot.slane %v736_v11, 1  ;;  %v423_v12 = vmax.f32 %v391_v59, 0.0  ;;  %v3437_v11 = vld [vmem:[#allocation8 + $0x1a0] sm:$0xff]  }
  0xd7   : > { %1753 = vmatprep.mubr.bf16.mxu1 %v4088_v43  ;;  %3095 = vmatpush3.bf16.msra.mxu1 %v3428_v56  ;;  %v515_v47 = vor.u32 %v513_v1, %v512_v21  ;;  %v4232_v51 = vsel %vm3929_vm2, %v512_v21, 0  ;;  %v733_v44 = vrot.slane %v731_v28, 1  ;;  %v517_v56 = vshrl.u32 %v445_v36, 16  ;;  %v3438_v21 = vld [vmem:[#allocation8 + $0x1e8] sm:$0xff]  }
  0xd8   : > { %3096 = vmatprep.subr.bf16.mxu1 %v3431_v8  ;;  %v748_v63 = vshll.u32 %v4232_v51, 16  ;;  %v520_v54 = vshll.u32 %v445_v36, 16  ;;  %v392_v1 = vadd.f32 %v3950_v24, %v354_v57  ;;  %v355_v36 = vmul.f32 %v4246_v49, %v317_v41 }
  0xd9   : > { %v4239_v0 = vsel %vm3929_vm2, 0, %v515_v47  ;;  %v734_v23 = vor.u32 %v733_v44, %v729_v31  ;;  %v519_v40 = vrot.slane %v517_v56, 7  ;;  %v356_v57 = vmul.f32 %v4246_v49, %v318_v13 }
  0xda   : > { %v741_v8 = vshrl.u32 %v4239_v0, 16  ;;  %v743_v14 = vshll.u32 %v4239_v0, 16  ;;  %v424_v28 = vmax.f32 %v392_v1, 0.0  ;;  %v750_v47 = vrot.slane %v748_v63, 1  ;;  %v3440_v63 = vld [vmem:[#allocation8 + $0x1a8] sm:$0xff]   ;;  %v3441_v1 = vld [vmem:[#allocation8 + $0x1f0] sm:$0xff]  }
  0xdb   : > { %1625 = vmatmul.mubr.bf16.gmra.mrb[24].mxu0 %v4183_v6  ;;  %3097 = vmatpush3.bf16.msra.mxu1 %v3432_v39  ;;  %v4251_v24 = vsel %vm643_vm3, %v734_v23, %v738_v62  ;;  %v522_v39 = vor.u32 %v520_v54, %v519_v40  ;;  %v4258_v59 = vsel %vm3929_vm2, %v519_v40, 0 }
  0xdc   : > { %3098 = vmatprep.subr.bf16.mxu1 %v3435_v25  ;;  %v745_v31 = vrot.slane %v743_v14, 1  ;;  %1632 = vmatprep.mubr.bf16.mxu0 %v4251_v24  ;;  %v446_v41 = vpack.c.bf16 %v424_v28, %v423_v12  ;;  %v4260_v25 = vld [vmem:[#allocation7] ss:$0 sm:$0xff]  ;;  %v760_v28 = vshll.u32 %v4258_v59, 16 }
  0xdd   : > { %v393_v44 = vadd.f32 %v4260_v25, %v355_v36  ;;  %v394_v56 = vadd.f32 %v4260_v25, %v356_v57  ;;  %v4266_v13 = vsel %vm3929_vm2, 0, %v522_v39  ;;  %v897_v39 = vrot.slane %v4124_v35, 1 }
  0xde   : > { %1754 = vmatmul.mubr.bf16.gmra.mrb[24].mxu1 %v4225_v10  ;;  %v746_v62 = vor.u32 %v745_v31, %v741_v8  ;;  %v524_v54 = vshrl.u32 %v446_v41, 16  ;;  %v527_v23 = vshll.u32 %v446_v41, 16  ;;  %v753_v40 = vshrl.u32 %v4266_v13, 16 }
  0xdf   : > { %1761 = vmatprep.mubr.bf16.mxu1 %v4124_v35  ;;  %3099 = vmatpush3.bf16.msra.mxu1 %v3437_v11  ;;  %v425_v14 = vmax.f32 %v393_v44, 0.0  ;;  %v755_v8 = vshll.u32 %v4266_v13, 16  ;;  %v5005_v11 = vrot.slane %v4088_v43, 1  ;;  %v426_v57 = vmax.f32 %v394_v56, 0.0 }
  0xe0   : > { %3100 = vmatprep.subr.bf16.mxu1 %v3438_v21  ;;  %v4269_v12 = vsel %vm643_vm3, %v746_v62, %v750_v47  ;;  %v526_v31 = vrot.slane %v524_v54, 7  ;;  %v3443_v47 = vld [vmem:[#allocation8 + $0x1b0] sm:$0xff]   ;;  %v762_v54 = vrot.slane %v760_v28, 1 }
  0xe1   : > { %v4279_v36 = vsel %vm884_vm4, %v5005_v11, %v895_v58  ;;  %v757_v21 = vrot.slane %v755_v8, 1  ;;  %v447_v44 = vpack.c.bf16 %v426_v57, %v425_v14  ;;  %v898_v58 = vrot.slane %v4113_v20, 1  ;;  %v3446_v8 = vld [vmem:[#allocation8 + $0x1b8] sm:$0xff]  }
  0xe2   : > { %v529_v41 = vor.u32 %v527_v23, %v526_v31 }
  0xe3   : > { %1633 = vmatmul.mubr.bf16.gmra.mrb[28].mxu0 %v4221_v17  ;;  %3101 = vmatpush3.bf16.msra.mxu1 %v3440_v63  ;;  %v758_v62 = vor.u32 %v757_v21, %v753_v40  ;;  %v4293_v63 = vsel %vm3929_vm2, %v526_v31, 0  ;;  %v531_v23 = vshrl.u32 %v447_v44, 16  ;;  %v534_v14 = vshll.u32 %v447_v44, 16 }
  0xe4   : > { %1640 = vmatprep.mubr.bf16.mxu0 %v4269_v12  ;;  %3102 = vmatprep.subr.bf16.mxu1 %v3441_v1  ;;  %v4289_v56 = vsel %vm3929_vm2, 0, %v529_v41  ;;  %v772_v57 = vshll.u32 %v4293_v63, 16  ;;  %v4302_v21 = vsel %vm884_vm4, %v897_v39, %v898_v58  ;;  %v900_v39 = vrot.slane %v4163_v34, 1 }
  0xe5   : > { %v767_v1 = vshll.u32 %v4289_v56, 16  ;;  %v533_v11 = vrot.slane %v531_v23, 7  ;;  %v4297_v20 = vsel %vm643_vm3, %v758_v62, %v762_v54  ;;  %v765_v40 = vshrl.u32 %v4289_v56, 16 }
  0xe6   : > { %1762 = vmatmul.mubr.bf16.gmra.mrb[28].mxu1 %v4279_v36  ;;  %v774_v44 = vrot.slane %v772_v57, 1  ;;  %v901_v58 = vrot.slane %v4149_v16, 1 }
  0xe7   : > { %1769 = vmatprep.mubr.bf16.mxu1 %v4163_v34  ;;  %3103 = vmatpush3.bf16.msra.mxu1 %v3443_v47  ;;  %v769_v28 = vrot.slane %v767_v1, 1  ;;  %v536_v31 = vor.u32 %v534_v14, %v533_v11  ;;  %v4317_v62 = vsel %vm3929_vm2, %v533_v11, 0 }
  0xe8   : > { %3104 = vmatprep.subr.bf16.mxu1 %v3444_v29  ;;  %v784_v1 = vshll.u32 %v4317_v62, 16 }
  0xe9   : > { %v4308_v47 = vsel %vm3929_vm2, 0, %v536_v31  ;;  %v770_v41 = vor.u32 %v769_v28, %v765_v40  ;;  %v903_v40 = vrot.slane %v4183_v6, 1  ;;  %v904_v28 = vrot.slane %v4171_v52, 1 }
  0xea   : > { %v779_v29 = vshll.u32 %v4308_v47, 16  ;;  %v777_v23 = vshrl.u32 %v4308_v47, 16  ;;  %v786_v11 = vrot.slane %v784_v1, 1 }
  0xeb   : > { %1641 = vmatmul.mubr.bf16.gmra.mrb[32].mxu0 %v4239_v0  ;;  %3105 = vmatpush3.bf16.msra.mxu1 %v3446_v8  ;;  %v4320_v54 = vsel %vm643_vm3, %v770_v41, %v774_v44  ;;  %v4325_v8 = vsel %vm884_vm4, %v900_v39, %v901_v58  ;;  %v4337_v31 = vsel %vm884_vm4, %v903_v40, %v904_v28  ;;  %v906_v41 = vrot.slane %v4221_v17, 1  ;;  %v3439_v58 = vld [vmem:[#allocation8 + $0x208] sm:$0xff]   ;;  %v328_v28 = vld [vmem:[%s3915_s8 + $0xf8] sm:$0xff] }
  0xec   : > { %1648 = vmatprep.mubr.bf16.mxu0 %v4297_v20  ;;  %v781_v14 = vrot.slane %v779_v29, 1  ;;  %v907_v44 = vrot.slane %v4209_v27, 1  ;;  %v909_v29 = vrot.slane %v4239_v0, 1  ;;  %v910_v39 = vrot.slane %v4232_v51, 1  ;;  %v327_v40 = vld [vmem:[%s3915_s8 + $0xf0] sm:$0xff] }
  0xed   : > { %v912_v27 = vrot.slane %v4266_v13, 1  ;;  %v913_v51 = vrot.slane %v4258_v59, 1  ;;  %v916_v59 = vrot.slane %v4293_v63, 1  ;;  %v918_v63 = vrot.slane %v4308_v47, 1 }
  0xee   : > { %1770 = vmatmul.mubr.bf16.gmra.mrb[32].mxu1 %v4302_v21  ;;  %v782_v16 = vor.u32 %v781_v14, %v777_v23  ;;  %v4346_v52 = vsel %vm884_vm4, %v906_v41, %v907_v44  ;;  %v4355_v23 = vsel %vm884_vm4, %v909_v29, %v910_v39  ;;  %v3445_v14 = vld [vmem:[#allocation8 + $0x218] sm:$0xff]   ;;  %v3449_v41 = vld [vmem:[#allocation8 + $0x230] sm:$0xff]   ;;  %v919_v44 = vrot.slane %v4317_v62, 1 }
  0xef   : > { %1777 = vmatprep.mubr.bf16.mxu1 %v4183_v6  ;;  %v4365_v1 = vsel %vm884_vm4, %v912_v27, %v913_v51  ;;  %v365_v29 = vmul.f32 %v4246_v49, %v327_v40  ;;  %v366_v39 = vmul.f32 %v4246_v49, %v328_v28  ;;  %v921_v49 = vrot.slane %v3979_v7, 1 }
  0xf0   : > { %v4334_v57 = vsel %vm643_vm3, %v782_v16, %v786_v11  ;;  %v3448_v16 = vld [vmem:[#allocation8 + $0x228] sm:$0xff]   ;;  %v922_v62 = vrot.slane %v3972_v61, 1 }
  0xf1   : > { %v403_v27 = vadd.f32 %v4260_v25, %v365_v29  ;;  %v404_v51 = vadd.f32 %v4260_v25, %v366_v39 }
  0xf3   : > { %1649 = vmatmul.mubr.bf16.gmra.mrb[36].mxu0 %v4266_v13 }
  0xf4   : > { %1656 = vmatprep.mubr.bf16.mxu0 %v4320_v54 }
  0xf6   : > { %1778 = vmatmul.mubr.bf16.gmra.mrb[36].mxu1 %v4325_v8 }
  0xf7   : > { %1785 = vmatprep.mubr.bf16.mxu1 %v4221_v17 }
  0xfb   : > { %1657 = vmatmul.mubr.bf16.gmra.mrb[40].mxu0 %v4289_v56 }
  0xfc   : > { %1664 = vmatprep.mubr.bf16.mxu0 %v4334_v57 }
  0xfe   : > { %1786 = vmatmul.mubr.bf16.gmra.mrb[40].mxu1 %v4337_v31 }
  0xff   : > { %1793 = vmatprep.mubr.bf16.mxu1 %v4239_v0 }
 0x103   : > { %1665 = vmatmul.mubr.bf16.gmra.mrb[44].mxu0 %v4308_v47 }
 0x104   : > { %1898 = vmatprep.mubr.bf16.mxu0 %v4179_v5  ;;  %v3442_v5 = vld [vmem:[#allocation8 + $0x210] sm:$0xff]  }
 0x106   : > { %1794 = vmatmul.mubr.bf16.gmra.mrb[44].mxu1 %v4346_v52 }
 0x107   : > { %1801 = vmatprep.mubr.bf16.mxu1 %v4266_v13 }
 0x10b   : > { %1899 = vmatmul.mubr.bf16.vlgmr.msra.gmra.mrb[48].mxu0 %v4031_v18  ;;  %v3447_v18 = vld [vmem:[#allocation8 + $0x220] sm:$0xff]  }
 0x10c   : > { %3227 = vmatpush3.bf16.msra.mxu0 %v4191_v4  ;;  %1906 = vmatprep.mubr.bf16.mxu0 %v4225_v10  ;;  %v915_v4 = vrot.slane %v4289_v56, 1 }
 0x10d   : > { %3228 = vmatprep.subr.bf16.mxu0 %v3439_v58 }
 0x10e   : > { %1802 = vmatmul.mubr.bf16.gmra.mrb[48].mxu1 %v4355_v23  ;;  %v4374_v11 = vsel %vm884_vm4, %v915_v4, %v916_v59  ;;  %v4398_v4 = vsel %vm884_vm4, %v921_v49, %v922_v62  ;;  %v924_v59 = vrot.slane %v4019_v53, 1 }
 0x10f   : > { %1809 = vmatprep.mubr.bf16.mxu1 %v4289_v56 }
 0x110   : > { %3229 = vmatpush3.bf16.msra.mxu0 %v3439_v58  ;;  %v3450_v58 = vld [vmem:[#allocation8 + $0x238] sm:$0xff]  }
 0x111   : > { %3230 = vmatprep.subr.bf16.mxu0 %v3442_v5 }
 0x113   : > { %1907 = vmatmul.mubr.bf16.gmra.mrb[52].mxu0 %v4074_v19 }
 0x114   : > { %1914 = vmatprep.mubr.bf16.mxu0 %v4279_v36  ;;  %3231 = vmatpush3.bf16.msra.mxu0 %v3442_v5  ;;  %v4387_v5 = vsel %vm884_vm4, %v918_v63, %v919_v44  ;;  %v927_v63 = vrot.slane %v4064_v60, 1  ;;  %v928_v44 = vrot.slane %v4058_v50, 1  ;;  %v931_v50 = vrot.slane %v4092_v46, 1 }
 0x115   : > { %3232 = vmatprep.subr.bf16.mxu0 %v3445_v14 }
 0x116   : > { %1810 = vmatmul.mubr.bf16.gmra.mrb[52].mxu1 %v4365_v1 }
 0x117   : > { %1817 = vmatprep.mubr.bf16.mxu1 %v4308_v47 }
 0x118   : > { %3233 = vmatpush3.bf16.msra.mxu0 %v3445_v14  ;;  %v435_v14 = vmax.f32 %v403_v27, 0.0 }
 0x119   : > { %3234 = vmatprep.subr.bf16.mxu0 %v3447_v18 }
 0x11b   : > { %1915 = vmatmul.mubr.bf16.gmra.mrb[56].mxu0 %v4118_v26 }
 0x11c   : > { %1922 = vmatprep.mubr.bf16.mxu0 %v4302_v21  ;;  %3235 = vmatpush3.bf16.msra.mxu0 %v3447_v18  ;;  %v436_v18 = vmax.f32 %v404_v51, 0.0 }
 0x11d   : > { %3236 = vmatprep.subr.bf16.mxu0 %v3448_v16 }
 0x11e   : > { %1818 = vmatmul.mubr.bf16.gmra.mrb[56].mxu1 %v4374_v11  ;;  %v452_v25 = vpack.c.bf16 %v436_v18, %v435_v14 }
 0x11f   : > { %1825 = vmatprep.mubr.bf16.mxu1 %v3979_v7 }
 0x120   : > { %3237 = vmatpush3.bf16.msra.mxu0 %v3448_v16  ;;  %v925_v16 = vrot.slane %v3999_v37, 1  ;;  %v566_v61 = vshrl.u32 %v452_v25, 16  ;;  %v4416_v37 = vsel %vm884_vm4, %v927_v63, %v928_v44 }
 0x121   : > { %3238 = vmatprep.subr.bf16.mxu0 %v3449_v41 }
 0x122   : > { %v4407_v40 = vsel %vm884_vm4, %v924_v59, %v925_v16  ;;  %v568_v28 = vrot.slane %v566_v61, 7 }
 0x123   : > { %1923 = vmatmul.mubr.bf16.gmra.mrb[60].mxu0 %v4152_v22 }
 0x124   : > { %1930 = vmatprep.mubr.bf16.mxu0 %v4325_v8  ;;  %3239 = vmatpush3.bf16.msra.mxu0 %v3449_v41  ;;  %v569_v41 = vshll.u32 %v452_v25, 16 }
 0x125   : > { %3240 = vmatprep.subr.bf16.mxu0 %v3450_v58 }
 0x126   : > { %1826 = vmatmul.mubr.bf16.gmra.mrb[60].mxu1 %v4387_v5  ;;  %v571_v29 = vor.u32 %v569_v41, %v568_v28 }
 0x127   : > { %1833 = vmatprep.mubr.bf16.mxu1 %v4019_v53 }
 0x128   : > { %3241 = vmatpush3.bf16.msra.mxu0 %v3450_v58  ;;  %v4421_v39 = vsel %vm3929_vm2, 0, %v571_v29  ;;  %v930_v58 = vrot.slane %v4102_v55, 1 }
 0x129   : > { %v964_v46 = vrot.slane %v4421_v39, 1 }
 0x12a   : > { %v4429_v27 = vsel %vm884_vm4, %v930_v58, %v931_v50 }
 0x12b   : > { %1931 = vmatmul.mubr.bf16.gmra.mrb[64].mxu0 %v4194_v32 }
 0x12c   : > { %1938 = vmatprep.mubr.bf16.mxu0 %v4337_v31 }
 0x12e   : > { %1834 = vmatmul.mubr.bf16.gmra.mrb[64].mxu1 %v4398_v4 }
 0x12f   : > { %1841 = vmatprep.mubr.bf16.mxu1 %v4064_v60 }
 0x133   : > { %1939 = vmatmul.mubr.bf16.gmra.mrb[68].mxu0 %v4213_v9 }
 0x134   : > { %1946 = vmatprep.mubr.bf16.mxu0 %v4346_v52 }
 0x136   : > { %1842 = vmatmul.mubr.bf16.gmra.mrb[68].mxu1 %v4407_v40 }
 0x137   : > { %1849 = vmatprep.mubr.bf16.mxu1 %v4102_v55 }
 0x13b   : > { %1947 = vmatmul.mubr.bf16.gmra.mrb[72].mxu0 %v4251_v24 }
 0x13c   : > { %1954 = vmatprep.mubr.bf16.mxu0 %v4355_v23 }
 0x13e   : > { %1850 = vmatmul.mubr.bf16.gmra.mrb[72].mxu1 %v4416_v37 }
 0x13f   : > { %1857 = vmatprep.mubr.bf16.mxu1 %v4421_v39 }
 0x143   : > { %1955 = vmatmul.mubr.bf16.gmra.mrb[76].mxu0 %v4269_v12 }
 0x144   : > { %1962 = vmatprep.mubr.bf16.mxu0 %v4365_v1 }
 0x146   : > { %1858 = vmatmul.mubr.bf16.gmra.mrb[76].mxu1 %v4429_v27 }
 0x147   : > { %2059 = vmatprep.mubr.bf16.mxu1 %v4074_v19  ;;  %v952_v19 = vshll.u32 %v4421_v39, 16 }
 0x14b   : > { %1963 = vmatmul.mubr.bf16.gmra.mrb[80].mxu0 %v4297_v20 }
 0x14c   : > { %1970 = vmatprep.mubr.bf16.mxu0 %v4374_v11 }
 0x14e   : > { %2060 = vmatmul.mubr.bf16.vlgmr.msra.gmra.mrb[80].mxu1 %v4049_v38  ;;  %v642_v38 = vsel %vm3929_vm2, %v568_v28, 0 }
 0x14f   : > { %2067 = vmatprep.mubr.bf16.mxu1 %v4118_v26  ;;  %v965_v26 = vrot.slane %v642_v38, 1 }
 0x151   : > { %v4469_v51 = vsel %vm884_vm4, %v964_v46, %v965_v26 }
 0x153   : > { %1971 = vmatmul.mubr.bf16.gmra.mrb[84].mxu0 %v4320_v54 }
 0x154   : > { %1978 = vmatprep.mubr.bf16.mxu0 %v4387_v5 }
 0x156   : > { %2068 = vmatmul.mubr.bf16.gmra.mrb[84].mxu1 %v4088_v43 }
 0x157   : > { %2075 = vmatprep.mubr.bf16.mxu1 %v4152_v22 }
 0x15b   : > { %1979 = vmatmul.mubr.bf16.gmra.mrb[88].mxu0 %v4334_v57 }
 0x15c   : > { %1986 = vmatprep.mubr.bf16.mxu0 %v4398_v4 }
 0x15e   : > { %2076 = vmatmul.mubr.bf16.gmra.mrb[88].mxu1 %v4124_v35 }
 0x15f   : > { %2083 = vmatprep.mubr.bf16.mxu1 %v4194_v32  ;;  %v954_v32 = vrot.slane %v952_v19, 1 }
 0x163   : > { %1987 = vmatmul.mubr.bf16.gmra.mrb[92].mxu0 %v4009_v45 }
 0x164   : > { %1994 = vmatprep.mubr.bf16.mxu0 %v4407_v40 }
 0x166   : > { %2084 = vmatmul.mubr.bf16.gmra.mrb[92].mxu1 %v4163_v34 }
 0x167   : > { %2091 = vmatprep.mubr.bf16.mxu1 %v4213_v9  ;;  %v957_v9 = vshll.u32 %v642_v38, 16 }
 0x169   : > { %v959_v49 = vrot.slane %v957_v9, 1 }
 0x16b   : > { %1995 = vmatmul.mubr.bf16.gmra.mrb[96].mxu0 %v4041_v30 }
 0x16c   : > { %2002 = vmatprep.mubr.bf16.mxu0 %v4416_v37 }
 0x16e   : > { %2092 = vmatmul.mubr.bf16.gmra.mrb[96].mxu1 %v4183_v6  ;;  %v950_v6 = vshrl.u32 %v4421_v39, 16 }
 0x16f   : > { %2099 = vmatprep.mubr.bf16.mxu1 %v4251_v24 }
 0x173   : > { %2003 = vmatmul.mubr.bf16.gmra.mrb[100].mxu0 %v4095_v48 }
 0x174   : > { %2010 = vmatprep.mubr.bf16.mxu0 %v4429_v27 }
 0x176   : > { %2100 = vmatmul.mubr.bf16.gmra.mrb[100].mxu1 %v4221_v17 }
 0x177   : > { %2107 = vmatprep.mubr.bf16.mxu1 %v4269_v12  ;;  %v955_v12 = vor.u32 %v954_v32, %v950_v6 }
 0x179   : > { %v4480_v16 = vsel %vm643_vm3, %v955_v12, %v959_v49 }
 0x17b   : > { %2011 = vmatmul.mubr.bf16.gmra.mrb[104].mxu0 %v4130_v42 }
 0x17c   : > { %2018 = vmatprep.mubr.bf16.mxu0 %v4469_v51 }
 0x17d   : > { %v2770_v43 = vpop.f32.mrb[0].mxu0 }
 0x17e   : > { %v2771_v35 = vpop.f32.mrb[1].mxu0  ;;  %v2842_v17 = vpop.f32.mrb[0].mxu1  ;;  %2108 = vmatmul.mubr.bf16.gmra.mrb[104].mxu1 %v4239_v0 }
 0x17f   : > { %v4463_v22 = vadd.f32 %v2771_v35, %v2770_v43  ;;  %v2773_v34 = vpop.f32.mrb[2].mxu0  ;;  %v2843_v62 = vpop.f32.mrb[1].mxu1  ;;  %2115 = vmatprep.mubr.bf16.mxu1 %v4297_v20 }
 0x180   : > { %v2774_v2 = vpop.f32.mrb[3].mxu0  ;;  %v4474_v14 = vadd.f32 %v2843_v62, %v2842_v17  ;;  %v2845_v18 = vpop.f32.mrb[2].mxu1 }
 0x181   : > { %v4466_v24 = vadd.f32 %v2774_v2, %v2773_v34  ;;  %v2846_v25 = vpop.f32.mrb[3].mxu1 }
 0x182   : > { %v4477_v59 = vadd.f32 %v2846_v25, %v2845_v18 }
 0x183   : > { %2019 = vmatmul.mubr.bf16.gmra.mrb[108].mxu0 %v4480_v16 }
 0x184   : > { %3242 = vmatprep.mubr.bf16.mxu0 %v4225_v10 }
 0x185   : > { %v2776_v61 = vpop.f32.mrb[4].mxu0 }
 0x186   : > { %v2777_v28 = vpop.f32.mrb[5].mxu0  ;;  %v2848_v41 = vpop.f32.mrb[4].mxu1  ;;  %2116 = vmatmul.mubr.bf16.gmra.mrb[108].mxu1 %v4266_v13 }
 0x187   : > { %v4483_v63 = vadd.f32 %v2777_v28, %v2776_v61  ;;  %v2779_v0 = vpop.f32.mrb[6].mxu0  ;;  %v2849_v44 = vpop.f32.mrb[5].mxu1  ;;  %2123 = vmatprep.mubr.bf16.mxu1 %v4320_v54 }
 0x188   : > { %v2780_v20 = vpop.f32.mrb[7].mxu0  ;;  %v4487_v29 = vadd.f32 %v2849_v44, %v2848_v41  ;;  %v2851_v58 = vpop.f32.mrb[6].mxu1 }
 0x189   : > { %v4489_v50 = vadd.f32 %v2780_v20, %v2779_v0  ;;  %v2852_v38 = vpop.f32.mrb[7].mxu1 }
 0x18a   : > { %v4492_v19 = vadd.f32 %v2852_v38, %v2851_v58 }
 0x18b   : > { %3243 = vmatmul.mubr.bf16.vlgmr.msra.gmra.mrb[112].mxu0 %v4279_v36 }
 0x18c   : > { %3246 = vmatprep.mubr.bf16.mxu0 %v4302_v21 }
 0x18d   : > { %v2782_v43 = vpop.f32.mrb[8].mxu0 }
 0x18e   : > { %2124 = vmatmul.mubr.bf16.gmra.mrb[112].mxu1 %v4289_v56  ;;  %v2783_v10 = vpop.f32.mrb[9].mxu0 }
 0x18f   : > { %v4497_v13 = vadd.f32 %v2783_v10, %v2782_v43  ;;  %v2785_v46 = vpop.f32.mrb[10].mxu0  ;;  %2131 = vmatprep.mubr.bf16.mxu1 %v4334_v57 }
 0x190   : > { %v2786_v26 = vpop.f32.mrb[11].mxu0 }
 0x191   : > { %v2854_v35 = vpop.f32.mrb[8].mxu1  ;;  %v4500_v34 = vadd.f32 %v2786_v26, %v2785_v46 }
 0x192   : > { %v2855_v54 = vpop.f32.mrb[9].mxu1 }
 0x193   : > { %v4502_v2 = vadd.f32 %v2855_v54, %v2854_v35  ;;  %v2857_v6 = vpop.f32.mrb[10].mxu1  ;;  %3247 = vmatmul.mubr.bf16.gmra.mrb[116].mxu0 %v4325_v8 }
 0x194   : > { %v2858_v36 = vpop.f32.mrb[11].mxu1  ;;  %3250 = vmatprep.mubr.bf16.mxu0 %v4337_v31 }
 0x195   : > { %v4505_v21 = vadd.f32 %v2858_v36, %v2857_v6 }
 0x196   : > { %2132 = vmatmul.mubr.bf16.gmra.mrb[116].mxu1 %v4308_v47  ;;  %v2788_v56 = vpop.f32.mrb[12].mxu0 }
 0x197   : > { %2139 = vmatprep.mubr.bf16.mxu1 %v4009_v45  ;;  %v2789_v57 = vpop.f32.mrb[13].mxu0 }
 0x198   : > { %v4510_v9 = vadd.f32 %v2789_v57, %v2788_v56  ;;  %v2791_v17 = vpop.f32.mrb[14].mxu0 }
 0x199   : > { %v2860_v32 = vpop.f32.mrb[12].mxu1  ;;  %v2792_v49 = vpop.f32.mrb[15].mxu0 }
 0x19a   : > { %v2861_v12 = vpop.f32.mrb[13].mxu1  ;;  %v4514_v8 = vadd.f32 %v2792_v49, %v2791_v17 }
 0x19b   : > { %v4512_v62 = vadd.f32 %v2861_v12, %v2860_v32  ;;  %v2863_v18 = vpop.f32.mrb[14].mxu1  ;;  %3251 = vmatmul.mubr.bf16.gmra.mrb[120].mxu0 %v4346_v52 }
 0x19c   : > { %v2864_v25 = vpop.f32.mrb[15].mxu1  ;;  %3254 = vmatprep.mubr.bf16.mxu0 %v4355_v23 }
 0x19d   : > { %v4517_v31 = vadd.f32 %v2864_v25, %v2863_v18 }
 0x19e   : > { %2140 = vmatmul.mubr.bf16.gmra.mrb[120].mxu1 %v3979_v7  ;;  %v2794_v45 = vpop.f32.mrb[16].mxu0 }
 0x19f   : > { %2147 = vmatprep.mubr.bf16.mxu1 %v4041_v30  ;;  %v2795_v47 = vpop.f32.mrb[17].mxu0 }
 0x1a0   : > { %v4522_v28 = vadd.f32 %v2795_v47, %v2794_v45  ;;  %v2797_v41 = vpop.f32.mrb[18].mxu0 }
 0x1a1   : > { %v2882_v61 = vpop.f32.mrb[16].mxu1  ;;  %v2798_v44 = vpop.f32.mrb[19].mxu0 }
 0x1a2   : > { %v2883_v0 = vpop.f32.mrb[17].mxu1  ;;  %v4524_v38 = vadd.f32 %v2798_v44, %v2797_v41 }
 0x1a3   : > { %v2884_v20 = vadd.f32 %v2883_v0, %v2882_v61  ;;  %v2885_v58 = vpop.f32.mrb[18].mxu1  ;;  %3255 = vmatmul.mubr.bf16.gmra.mrb[124].mxu0 %v4365_v1 }
 0x1a4   : > { %v2886_v52 = vpop.f32.mrb[19].mxu1  ;;  %3258 = vmatprep.mubr.bf16.mxu0 %v4374_v11 }
 0x1a5   : > { %v4528_v23 = vadd.f32 %v2884_v20, %v4463_v22  ;;  %v2887_v7 = vadd.f32 %v2886_v52, %v2885_v58 }
 0x1a6   : > { %2148 = vmatmul.mubr.bf16.gmra.mrb[124].mxu1 %v4019_v53  ;;  %v2800_v43 = vpop.f32.mrb[20].mxu0 }
 0x1a7   : > { %v4533_v30 = vadd.f32 %v2887_v7, %v4466_v24  ;;  %2155 = vmatprep.mubr.bf16.mxu1 %v4095_v48  ;;  %v2801_v10 = vpop.f32.mrb[21].mxu0 }
 0x1a8   : > { %v4536_v26 = vadd.f32 %v2801_v10, %v2800_v43  ;;  %v2803_v35 = vpop.f32.mrb[22].mxu0 }
 0x1a9   : > { %v2888_v46 = vpop.f32.mrb[20].mxu1  ;;  %v2804_v54 = vpop.f32.mrb[23].mxu0 }
 0x1aa   : > { %v2889_v1 = vpop.f32.mrb[21].mxu1  ;;  %v4538_v36 = vadd.f32 %v2804_v54, %v2803_v35 }
 0x1ab   : > { %v2890_v22 = vadd.f32 %v2889_v1, %v2888_v46  ;;  %v2891_v6 = vpop.f32.mrb[22].mxu1  ;;  %3259 = vmatmul.mubr.bf16.gmra.mrb[128].mxu0 %v4387_v5 }
 0x1ac   : > { %v2892_v11 = vpop.f32.mrb[23].mxu1  ;;  %3262 = vmatprep.mubr.bf16.mxu0 %v4398_v4 }
 0x1ad   : > { %v4542_v53 = vadd.f32 %v2890_v22, %v4483_v63  ;;  %v2893_v24 = vadd.f32 %v2892_v11, %v2891_v6 }
 0x1ae   : > { %2156 = vmatmul.mubr.bf16.gmra.mrb[128].mxu1 %v4064_v60  ;;  %v2806_v56 = vpop.f32.mrb[24].mxu0 }
 0x1af   : > { %v4547_v48 = vadd.f32 %v2893_v24, %v4489_v50  ;;  %2163 = vmatprep.mubr.bf16.mxu1 %v4130_v42  ;;  %v2807_v57 = vpop.f32.mrb[25].mxu0 }
 0x1b0   : > { %v4550_v17 = vadd.f32 %v2807_v57, %v2806_v56  ;;  %v2809_v12 = vpop.f32.mrb[26].mxu0 }
 0x1b1   : > { %v2894_v32 = vpop.f32.mrb[24].mxu1  ;;  %v2810_v49 = vpop.f32.mrb[27].mxu0 }
 0x1b2   : > { %v2895_v5 = vpop.f32.mrb[25].mxu1  ;;  %v4552_v25 = vadd.f32 %v2810_v49, %v2809_v12 }
 0x1b3   : > { %v2896_v63 = vadd.f32 %v2895_v5, %v2894_v32  ;;  %v2897_v18 = vpop.f32.mrb[26].mxu1  ;;  %3263 = vmatmul.mubr.bf16.gmra.mrb[132].mxu0 %v4407_v40 }
 0x1b4   : > { %v2898_v4 = vpop.f32.mrb[27].mxu1  ;;  %3266 = vmatprep.mubr.bf16.mxu0 %v4416_v37 }
 0x1b5   : > { %v4556_v60 = vadd.f32 %v2896_v63, %v4497_v13  ;;  %v2899_v50 = vadd.f32 %v2898_v4, %v2897_v18 }
 0x1b6   : > { %2164 = vmatmul.mubr.bf16.gmra.mrb[132].mxu1 %v4102_v55  ;;  %v2812_v45 = vpop.f32.mrb[28].mxu0 }
 0x1b7   : > { %v4561_v42 = vadd.f32 %v2899_v50, %v4500_v34  ;;  %2171 = vmatprep.mubr.bf16.mxu1 %v4480_v16  ;;  %v2813_v47 = vpop.f32.mrb[29].mxu0 }
 0x1b8   : > { %v4564_v41 = vadd.f32 %v2813_v47, %v2812_v45  ;;  %v2815_v0 = vpop.f32.mrb[30].mxu0 }
 0x1b9   : > { %v2900_v61 = vpop.f32.mrb[28].mxu1  ;;  %v2816_v44 = vpop.f32.mrb[31].mxu0 }
 0x1ba   : > { %v2901_v40 = vpop.f32.mrb[29].mxu1  ;;  %v4566_v58 = vadd.f32 %v2816_v44, %v2815_v0 }
 0x1bb   : > { %v2902_v13 = vadd.f32 %v2901_v40, %v2900_v61  ;;  %v2903_v20 = vpop.f32.mrb[30].mxu1  ;;  %3267 = vmatmul.mubr.bf16.gmra.mrb[136].mxu0 %v4429_v27 }
 0x1bc   : > { %v2904_v37 = vpop.f32.mrb[31].mxu1  ;;  %3270 = vmatprep.mubr.bf16.mxu0 %v4469_v51 }
 0x1bd   : > { %v4570_v55 = vadd.f32 %v2902_v13, %v4510_v9  ;;  %v2905_v34 = vadd.f32 %v2904_v37, %v2903_v20 }
 0x1be   : > { %2172 = vmatmul.mubr.bf16.gmra.mrb[136].mxu1 %v4421_v39  ;;  %v2818_v52 = vpop.f32.mrb[32].mxu0 }
 0x1bf   : > { %v4575_v16 = vadd.f32 %v2905_v34, %v4514_v8  ;;  %2179 = vmatprep.mubr.bf16.mxu1 %v3945_v15  ;;  %v2819_v7 = vpop.f32.mrb[33].mxu0 }
 0x1c0   : > { %v4578_v10 = vadd.f32 %v2819_v7, %v2818_v52  ;;  %v2821_v46 = vpop.f32.mrb[34].mxu0 }
 0x1c1   : > { %v2906_v43 = vpop.f32.mrb[32].mxu1  ;;  %v2822_v35 = vpop.f32.mrb[35].mxu0 }
 0x1c2   : > { %v2907_v27 = vpop.f32.mrb[33].mxu1  ;;  %v4580_v54 = vadd.f32 %v2822_v35, %v2821_v46 }
 0x1c3   : > { %v2908_v9 = vadd.f32 %v2907_v27, %v2906_v43  ;;  %v2909_v1 = vpop.f32.mrb[34].mxu1  ;;  %3271 = vmatmul.mubr.bf16.gmra.mrb[140].mxu0 %v4159_v33 }
 0x1c4   : > { %v2910_v51 = vpop.f32.mrb[35].mxu1 }
 0x1c5   : > { %v4584_v39 = vadd.f32 %v2908_v9, %v4522_v28  ;;  %v2911_v8 = vadd.f32 %v2910_v51, %v2909_v1 }
 0x1c6   : > { %2180 = vmatmul.mubr.bf16.gmra.mrb[140].mxu1 %v3935_v3  ;;  %v2824_v22 = vpop.f32.mrb[36].mxu0 }
 0x1c7   : > { %v4588_v15 = vadd.f32 %v2911_v8, %v4524_v38  ;;  %v2825_v6 = vpop.f32.mrb[37].mxu0 }
 0x1c8   : > { %v4590_v24 = vadd.f32 %v2825_v6, %v2824_v22  ;;  %v2827_v56 = vpop.f32.mrb[38].mxu0 }
 0x1c9   : > { %v2912_v11 = vpop.f32.mrb[36].mxu1  ;;  %v2828_v32 = vpop.f32.mrb[39].mxu0 }
 0x1ca   : > { %v2913_v57 = vpop.f32.mrb[37].mxu1  ;;  %v4592_v33 = vadd.f32 %v2828_v32, %v2827_v56 }
 0x1cb   : > { %v2914_v12 = vadd.f32 %v2913_v57, %v2912_v11  ;;  %v2915_v5 = vpop.f32.mrb[38].mxu1 }
 0x1cc   : > { %v2916_v28 = vpop.f32.mrb[39].mxu1 }
 0x1cd   : > { %v4595_v49 = vadd.f32 %v2914_v12, %v4536_v26  ;;  %v2917_v3 = vadd.f32 %v2916_v28, %v2915_v5 }
 0x1ce   : > { %v2830_v63 = vpop.f32.mrb[40].mxu0 }
 0x1cf   : > { %v4598_v38 = vadd.f32 %v2917_v3, %v4538_v36  ;;  %v2831_v18 = vpop.f32.mrb[41].mxu0 }
 0x1d0   : > { %v4600_v50 = vadd.f32 %v2831_v18, %v2830_v63  ;;  %v2833_v45 = vpop.f32.mrb[42].mxu0 }
 0x1d1   : > { %v2918_v4 = vpop.f32.mrb[40].mxu1  ;;  %v2834_v61 = vpop.f32.mrb[43].mxu0 }
 0x1d2   : > { %v2919_v47 = vpop.f32.mrb[41].mxu1  ;;  %v4602_v44 = vadd.f32 %v2834_v61, %v2833_v45 }
 0x1d3   : > { %v2920_v0 = vadd.f32 %v2919_v47, %v2918_v4  ;;  %v2921_v40 = vpop.f32.mrb[42].mxu1 }
 0x1d4   : > { %v2922_v13 = vpop.f32.mrb[43].mxu1 }
 0x1d5   : > { %v4605_v26 = vadd.f32 %v2920_v0, %v4550_v17  ;;  %v2923_v20 = vadd.f32 %v2922_v13, %v2921_v40 }
 0x1d6   : > { %v2836_v37 = vpop.f32.mrb[44].mxu0 }
 0x1d7   : > { %v4608_v36 = vadd.f32 %v2923_v20, %v4552_v25  ;;  %v2837_v34 = vpop.f32.mrb[45].mxu0 }
 0x1d8   : > { %v4610_v7 = vadd.f32 %v2837_v34, %v2836_v37  ;;  %v2839_v43 = vpop.f32.mrb[46].mxu0 }
 0x1d9   : > { %v2924_v52 = vpop.f32.mrb[44].mxu1  ;;  %v2840_v27 = vpop.f32.mrb[47].mxu0 }
 0x1da   : > { %v2925_v46 = vpop.f32.mrb[45].mxu1  ;;  %v4612_v1 = vadd.f32 %v2840_v27, %v2839_v43 }
 0x1db   : > { %v2926_v35 = vadd.f32 %v2925_v46, %v2924_v52  ;;  %v2927_v9 = vpop.f32.mrb[46].mxu1 }
 0x1dc   : > { %v2928_v51 = vpop.f32.mrb[47].mxu1 }
 0x1dd   : > { %v4615_v17 = vadd.f32 %v2926_v35, %v4564_v41  ;;  %v2929_v8 = vadd.f32 %v2928_v51, %v2927_v9 }
 0x1de   : > { %v2994_v22 = vpop.f32.mrb[48].mxu0 }
 0x1df   : > { %v4618_v25 = vadd.f32 %v2929_v8, %v4566_v58  ;;  %v2995_v6 = vpop.f32.mrb[49].mxu0 }
 0x1e0   : > { %v2996_v56 = vadd.f32 %v2995_v6, %v2994_v22  ;;  %v2997_v57 = vpop.f32.mrb[50].mxu0 }
 0x1e1   : > { %v2930_v11 = vpop.f32.mrb[48].mxu1  ;;  %v2998_v12 = vpop.f32.mrb[51].mxu0 }
 0x1e2   : > { %v2931_v32 = vpop.f32.mrb[49].mxu1  ;;  %v4621_v28 = vadd.f32 %v2996_v56, %v4528_v23  ;;  %v2999_v63 = vadd.f32 %v2998_v12, %v2997_v57 }
 0x1e3   : > { %v2932_v5 = vadd.f32 %v2931_v32, %v2930_v11  ;;  %v2933_v3 = vpop.f32.mrb[50].mxu1 }
 0x1e4   : > { %v2934_v18 = vpop.f32.mrb[51].mxu1  ;;  %v4627_v58 = vadd.f32 %v2999_v63, %v4533_v30 }
 0x1e5   : > { %v4624_v41 = vadd.f32 %v2932_v5, %v4578_v10  ;;  %v2935_v4 = vadd.f32 %v2934_v18, %v2933_v3 }
 0x1e6   : > { %v3000_v47 = vpop.f32.mrb[52].mxu0 }
 0x1e7   : > { %v4630_v45 = vadd.f32 %v2935_v4, %v4580_v54  ;;  %v3001_v61 = vpop.f32.mrb[53].mxu0 }
 0x1e8   : > { %v3002_v40 = vadd.f32 %v3001_v61, %v3000_v47  ;;  %v3003_v13 = vpop.f32.mrb[54].mxu0 }
 0x1e9   : > { %v2936_v0 = vpop.f32.mrb[52].mxu1  ;;  %v3004_v20 = vpop.f32.mrb[55].mxu0 }
 0x1ea   : > { %v2937_v23 = vpop.f32.mrb[53].mxu1  ;;  %v4633_v34 = vadd.f32 %v3002_v40, %v4542_v53  ;;  %v3005_v52 = vadd.f32 %v3004_v20, %v3003_v13 }
 0x1eb   : > { %v2938_v37 = vadd.f32 %v2937_v23, %v2936_v0  ;;  %v2939_v10 = vpop.f32.mrb[54].mxu1 }
 0x1ec   : > { %v2940_v43 = vpop.f32.mrb[55].mxu1  ;;  %v4639_v54 = vadd.f32 %v3005_v52, %v4547_v48 }
 0x1ed   : > { %v4636_v30 = vadd.f32 %v2938_v37, %v4590_v24  ;;  %v2941_v46 = vadd.f32 %v2940_v43, %v2939_v10 }
 0x1ee   : > { %v3006_v35 = vpop.f32.mrb[56].mxu0 }
 0x1ef   : > { %v4642_v27 = vadd.f32 %v2941_v46, %v4592_v33  ;;  %v3007_v9 = vpop.f32.mrb[57].mxu0 }
 0x1f0   : > { %v3008_v8 = vadd.f32 %v3007_v9, %v3006_v35  ;;  %v3009_v22 = vpop.f32.mrb[58].mxu0 }
 0x1f1   : > { %v2942_v51 = vpop.f32.mrb[56].mxu1  ;;  %v3010_v6 = vpop.f32.mrb[59].mxu0 }
 0x1f2   : > { %v2943_v53 = vpop.f32.mrb[57].mxu1  ;;  %v4645_v56 = vadd.f32 %v3008_v8, %v4556_v60  ;;  %v3011_v57 = vadd.f32 %v3010_v6, %v3009_v22 }
 0x1f3   : > { %v2944_v11 = vadd.f32 %v2943_v53, %v2942_v51  ;;  %v2945_v24 = vpop.f32.mrb[58].mxu1 }
 0x1f4   : > { %v2946_v32 = vpop.f32.mrb[59].mxu1  ;;  %v4651_v33 = vadd.f32 %v3011_v57, %v4561_v42 }
 0x1f5   : > { %v4648_v48 = vadd.f32 %v2944_v11, %v4600_v50  ;;  %v2947_v12 = vadd.f32 %v2946_v32, %v2945_v24 }
 0x1f6   : > { %v3012_v3 = vpop.f32.mrb[60].mxu0 }
 0x1f7   : > { %v4654_v5 = vadd.f32 %v2947_v12, %v4602_v44  ;;  %v3013_v63 = vpop.f32.mrb[61].mxu0 }
 0x1f8   : > { %v3014_v4 = vadd.f32 %v3013_v63, %v3012_v3  ;;  %v3015_v47 = vpop.f32.mrb[62].mxu0 }
 0x1f9   : > { %v2948_v18 = vpop.f32.mrb[60].mxu1  ;;  %v3016_v61 = vpop.f32.mrb[63].mxu0 }
 0x1fa   : > { %v2949_v60 = vpop.f32.mrb[61].mxu1  ;;  %v4657_v40 = vadd.f32 %v3014_v4, %v4570_v55  ;;  %v3017_v13 = vadd.f32 %v3016_v61, %v3015_v47 }
 0x1fb   : > { %v2950_v0 = vadd.f32 %v2949_v60, %v2948_v18  ;;  %v2951_v50 = vpop.f32.mrb[62].mxu1 }
 0x1fc   : > { %v2952_v23 = vpop.f32.mrb[63].mxu1  ;;  %v4663_v44 = vadd.f32 %v3017_v13, %v4575_v16 }
 0x1fd   : > { %v4660_v42 = vadd.f32 %v2950_v0, %v4610_v7  ;;  %v2953_v20 = vadd.f32 %v2952_v23, %v2951_v50 }
 0x1fe   : > { %v3018_v10 = vpop.f32.mrb[64].mxu0 }
 0x1ff   : > { %v4666_v37 = vadd.f32 %v2953_v20, %v4612_v1  ;;  %v3019_v52 = vpop.f32.mrb[65].mxu0 }
 0x200   : > { %v3020_v46 = vadd.f32 %v3019_v52, %v3018_v10  ;;  %v3021_v35 = vpop.f32.mrb[66].mxu0 }
 0x201   : > { %v2954_v43 = vpop.f32.mrb[64].mxu1  ;;  %v3022_v9 = vpop.f32.mrb[67].mxu0 }
 0x202   : > { %v2955_v55 = vpop.f32.mrb[65].mxu1  ;;  %v4669_v8 = vadd.f32 %v3020_v46, %v4584_v39  ;;  %v3023_v22 = vadd.f32 %v3022_v9, %v3021_v35 }
 0x203   : > { %v2956_v51 = vadd.f32 %v2955_v55, %v2954_v43  ;;  %v2957_v7 = vpop.f32.mrb[66].mxu1 }
 0x204   : > { %v2958_v53 = vpop.f32.mrb[67].mxu1  ;;  %v4675_v1 = vadd.f32 %v3023_v22, %v4588_v15 }
 0x205   : > { %v4672_v16 = vadd.f32 %v2956_v51, %v4474_v14  ;;  %v2959_v6 = vadd.f32 %v2958_v53, %v2957_v7 }
 0x206   : > { %v3024_v24 = vpop.f32.mrb[68].mxu0 }
 0x207   : > { %v4678_v11 = vadd.f32 %v2959_v6, %v4477_v59  ;;  %v3025_v57 = vpop.f32.mrb[69].mxu0 }
 0x208   : > { %v3026_v12 = vadd.f32 %v3025_v57, %v3024_v24  ;;  %v3027_v3 = vpop.f32.mrb[70].mxu0 }
 0x209   : > { %v2960_v32 = vpop.f32.mrb[68].mxu1  ;;  %v3028_v63 = vpop.f32.mrb[71].mxu0 }
 0x20a   : > { %v2961_v39 = vpop.f32.mrb[69].mxu1  ;;  %v4681_v4 = vadd.f32 %v3026_v12, %v4595_v49  ;;  %v3029_v47 = vadd.f32 %v3028_v63, %v3027_v3 }
 0x20b   : > { %v2962_v18 = vadd.f32 %v2961_v39, %v2960_v32  ;;  %v2963_v14 = vpop.f32.mrb[70].mxu1 }
 0x20c   : > { %v2964_v60 = vpop.f32.mrb[71].mxu1  ;;  %v4687_v59 = vadd.f32 %v3029_v47, %v4598_v38 }
 0x20d   : > { %v4684_v15 = vadd.f32 %v2962_v18, %v4487_v29  ;;  %v2965_v61 = vadd.f32 %v2964_v60, %v2963_v14 }
 0x20e   : > { %v3030_v50 = vpop.f32.mrb[72].mxu0 }
 0x20f   : > { %v4690_v0 = vadd.f32 %v2965_v61, %v4492_v19  ;;  %v3031_v13 = vpop.f32.mrb[73].mxu0 }
 0x210   : > { %v3032_v20 = vadd.f32 %v3031_v13, %v3030_v50  ;;  %v3033_v10 = vpop.f32.mrb[74].mxu0 }
 0x211   : > { %v2966_v23 = vpop.f32.mrb[72].mxu1  ;;  %v3034_v52 = vpop.f32.mrb[75].mxu0 }
 0x212   : > { %v2967_v49 = vpop.f32.mrb[73].mxu1  ;;  %v4693_v46 = vadd.f32 %v3032_v20, %v4605_v26  ;;  %v3035_v35 = vadd.f32 %v3034_v52, %v3033_v10 }
 0x213   : > { %v2968_v43 = vadd.f32 %v2967_v49, %v2966_v23  ;;  %v2969_v29 = vpop.f32.mrb[74].mxu1 }
 0x214   : > { %v2970_v55 = vpop.f32.mrb[75].mxu1  ;;  %v4699_v19 = vadd.f32 %v3035_v35, %v4608_v36 }
 0x215   : > { %v4696_v38 = vadd.f32 %v2968_v43, %v4502_v2  ;;  %v2971_v9 = vadd.f32 %v2970_v55, %v2969_v29 }
 0x216   : > { %v3036_v7 = vpop.f32.mrb[76].mxu0 }
 0x217   : > { %v4702_v51 = vadd.f32 %v2971_v9, %v4505_v21  ;;  %v3037_v22 = vpop.f32.mrb[77].mxu0 }
 0x218   : > { %v3038_v6 = vadd.f32 %v3037_v22, %v3036_v7  ;;  %v3039_v24 = vpop.f32.mrb[78].mxu0 }
 0x219   : > { %v2972_v53 = vpop.f32.mrb[76].mxu1  ;;  %v3040_v57 = vpop.f32.mrb[79].mxu0 }
 0x21a   : > { %v2973_v26 = vpop.f32.mrb[77].mxu1  ;;  %v4705_v12 = vadd.f32 %v3038_v6, %v4615_v17  ;;  %v3041_v3 = vadd.f32 %v3040_v57, %v3039_v24 }
 0x21b   : > { %v2974_v32 = vadd.f32 %v2973_v26, %v2972_v53  ;;  %v2975_v2 = vpop.f32.mrb[78].mxu1 }
 0x21c   : > { %v2976_v39 = vpop.f32.mrb[79].mxu1  ;;  %v4711_v21 = vadd.f32 %v3041_v3, %v4618_v25 }
 0x21d   : > { %v4708_v36 = vadd.f32 %v2974_v32, %v4512_v62  ;;  %v2977_v63 = vadd.f32 %v2976_v39, %v2975_v2 }
 0x21e   : > { %v3042_v14 = vpop.f32.mrb[80].mxu0 }
 0x21f   : > { %v4714_v18 = vadd.f32 %v2977_v63, %v4517_v31  ;;  %v3043_v47 = vpop.f32.mrb[81].mxu0 }
 0x220   : > { %v3044_v61 = vadd.f32 %v3043_v47, %v3042_v14  ;;  %v3045_v50 = vpop.f32.mrb[82].mxu0 }
 0x221   : > { %v3106_v60 = vpop.f32.mrb[80].mxu1  ;;  %v3046_v13 = vpop.f32.mrb[83].mxu0 }
 0x222   : > { %v3107_v17 = vpop.f32.mrb[81].mxu1  ;;  %v4717_v23 = vadd.f32 %v3044_v61, %v4624_v41  ;;  %v3047_v10 = vadd.f32 %v3046_v13, %v3045_v50 }
 0x223   : > { %v3108_v20 = vadd.f32 %v3107_v17, %v3106_v60  ;;  %v3109_v62 = vpop.f32.mrb[82].mxu1 }
 0x224   : > { %v3110_v49 = vpop.f32.mrb[83].mxu1  ;;  %v4720_v25 = vadd.f32 %v3047_v10, %v4630_v45 }
 0x225   : > { %v3111_v52 = vadd.f32 %v3110_v49, %v3109_v62  ;;  %v4723_v31 = vadd.f32 %v3108_v20, %v4621_v28 }
 0x226   : > { %v3048_v43 = vpop.f32.mrb[84].mxu0 }
 0x227   : > { %v4726_v29 = vadd.f32 %v3111_v52, %v4627_v58  ;;  %v3049_v35 = vpop.f32.mrb[85].mxu0 }
 0x228   : > { %v3050_v9 = vadd.f32 %v3049_v35, %v3048_v43  ;;  %v3051_v41 = vpop.f32.mrb[86].mxu0 }
 0x229   : > { %v3112_v55 = vpop.f32.mrb[84].mxu1  ;;  %v3052_v22 = vpop.f32.mrb[87].mxu0 }
 0x22a   : > { %v3113_v7 = vpop.f32.mrb[85].mxu1  ;;  %v4729_v53 = vadd.f32 %v3050_v9, %v4636_v30  ;;  %v3053_v24 = vadd.f32 %v3052_v22, %v3051_v41 }
 0x22b   : > { %v3114_v6 = vadd.f32 %v3113_v7, %v3112_v55  ;;  %v3115_v45 = vpop.f32.mrb[86].mxu1 }
 0x22c   : > { %v3116_v26 = vpop.f32.mrb[87].mxu1  ;;  %v4732_v28 = vadd.f32 %v3053_v24, %v4642_v27 }
 0x22d   : > { %v3117_v57 = vadd.f32 %v3116_v26, %v3115_v45  ;;  %v4735_v58 = vadd.f32 %v3114_v6, %v4633_v34 }
 0x22e   : > { %v3054_v32 = vpop.f32.mrb[88].mxu0 }
 0x22f   : > { %v4738_v2 = vadd.f32 %v3117_v57, %v4639_v54  ;;  %v3055_v3 = vpop.f32.mrb[89].mxu0 }
 0x230   : > { %v3056_v63 = vadd.f32 %v3055_v3, %v3054_v32  ;;  %v3057_v30 = vpop.f32.mrb[90].mxu0 }
 0x231   : > { %v3118_v39 = vpop.f32.mrb[88].mxu1  ;;  %v3058_v47 = vpop.f32.mrb[91].mxu0 }
 0x232   : > { %v3119_v14 = vpop.f32.mrb[89].mxu1  ;;  %v4741_v60 = vadd.f32 %v3056_v63, %v4648_v48  ;;  %v3059_v50 = vadd.f32 %v3058_v47, %v3057_v30 }
 0x233   : > { %v3120_v61 = vadd.f32 %v3119_v14, %v3118_v39  ;;  %v3121_v27 = vpop.f32.mrb[90].mxu1 }
 0x234   : > { %v3122_v17 = vpop.f32.mrb[91].mxu1  ;;  %v4744_v34 = vadd.f32 %v3059_v50, %v4654_v5 }
 0x235   : > { %v3123_v13 = vadd.f32 %v3122_v17, %v3121_v27  ;;  %v4747_v54 = vadd.f32 %v3120_v61, %v4645_v56 }
 0x236   : > { %v3060_v20 = vpop.f32.mrb[92].mxu0 }
 0x237   : > { %v4750_v62 = vadd.f32 %v3123_v13, %v4651_v33  ;;  %v3061_v10 = vpop.f32.mrb[93].mxu0 }
 0x238   : > { %v3062_v52 = vadd.f32 %v3061_v10, %v3060_v20  ;;  %v3063_v48 = vpop.f32.mrb[94].mxu0 }
 0x239   : > { %v3124_v49 = vpop.f32.mrb[92].mxu1  ;;  %v3064_v35 = vpop.f32.mrb[95].mxu0 }
 0x23a   : > { %v3125_v43 = vpop.f32.mrb[93].mxu1  ;;  %v4753_v55 = vadd.f32 %v3062_v52, %v4660_v42  ;;  %v3065_v41 = vadd.f32 %v3064_v35, %v3063_v48 }
 0x23b   : > { %v3126_v9 = vadd.f32 %v3125_v43, %v3124_v49  ;;  %v3127_v5 = vpop.f32.mrb[94].mxu1 }
 0x23c   : > { %v3128_v7 = vpop.f32.mrb[95].mxu1  ;;  %v4756_v56 = vadd.f32 %v3065_v41, %v4666_v37 }
 0x23d   : > { %v3129_v22 = vadd.f32 %v3128_v7, %v3127_v5  ;;  %v4759_v33 = vadd.f32 %v3126_v9, %v4657_v40 }
 0x23e   : > { %v3066_v6 = vpop.f32.mrb[96].mxu0 }
 0x23f   : > { %v4762_v45 = vadd.f32 %v3129_v22, %v4663_v44  ;;  %v3067_v24 = vpop.f32.mrb[97].mxu0 }
 0x240   : > { %v3068_v57 = vadd.f32 %v3067_v24, %v3066_v6  ;;  %v3069_v42 = vpop.f32.mrb[98].mxu0 }
 0x241   : > { %v3130_v26 = vpop.f32.mrb[96].mxu1  ;;  %v3070_v3 = vpop.f32.mrb[99].mxu0 }
 0x242   : > { %v3131_v32 = vpop.f32.mrb[97].mxu1  ;;  %v4765_v39 = vadd.f32 %v3068_v57, %v4672_v16  ;;  %v3071_v30 = vadd.f32 %v3070_v3, %v3069_v42 }
 0x243   : > { %v3132_v63 = vadd.f32 %v3131_v32, %v3130_v26  ;;  %v3133_v37 = vpop.f32.mrb[98].mxu1 }
 0x244   : > { %v3134_v14 = vpop.f32.mrb[99].mxu1  ;;  %v4768_v40 = vadd.f32 %v3071_v30, %v4678_v11 }
 0x245   : > { %v3135_v47 = vadd.f32 %v3134_v14, %v3133_v37  ;;  %v4771_v44 = vadd.f32 %v3132_v63, %v4669_v8 }
 0x246   : > { %v3072_v61 = vpop.f32.mrb[100].mxu0 }
 0x247   : > { %v4774_v27 = vadd.f32 %v3135_v47, %v4675_v1  ;;  %v3073_v50 = vpop.f32.mrb[101].mxu0 }
 0x248   : > { %v3074_v13 = vadd.f32 %v3073_v50, %v3072_v61  ;;  %v3075_v16 = vpop.f32.mrb[102].mxu0 }
 0x249   : > { %v3136_v17 = vpop.f32.mrb[100].mxu1  ;;  %v3076_v10 = vpop.f32.mrb[103].mxu0 }
 0x24a   : > { %v3137_v20 = vpop.f32.mrb[101].mxu1  ;;  %v4777_v49 = vadd.f32 %v3074_v13, %v4684_v15  ;;  %v3077_v48 = vadd.f32 %v3076_v10, %v3075_v16 }
 0x24b   : > { %v3138_v52 = vadd.f32 %v3137_v20, %v3136_v17  ;;  %v3139_v11 = vpop.f32.mrb[102].mxu1 }
 0x24c   : > { %v3140_v43 = vpop.f32.mrb[103].mxu1  ;;  %v4780_v8 = vadd.f32 %v3077_v48, %v4690_v0 }
 0x24d   : > { %v3141_v35 = vadd.f32 %v3140_v43, %v3139_v11  ;;  %v4783_v1 = vadd.f32 %v3138_v52, %v4681_v4 }
 0x24e   : > { %v3078_v9 = vpop.f32.mrb[104].mxu0 }
 0x24f   : > { %v4786_v5 = vadd.f32 %v3141_v35, %v4687_v59  ;;  %v3079_v41 = vpop.f32.mrb[105].mxu0 }
 0x250   : > { %v3080_v22 = vadd.f32 %v3079_v41, %v3078_v9  ;;  %v3081_v15 = vpop.f32.mrb[106].mxu0 }
 0x251   : > { %v3142_v7 = vpop.f32.mrb[104].mxu1  ;;  %v3082_v24 = vpop.f32.mrb[107].mxu0 }
 0x252   : > { %v3143_v6 = vpop.f32.mrb[105].mxu1  ;;  %v4789_v26 = vadd.f32 %v3080_v22, %v4696_v38  ;;  %v3083_v42 = vadd.f32 %v3082_v24, %v3081_v15 }
 0x253   : > { %v3144_v57 = vadd.f32 %v3143_v6, %v3142_v7  ;;  %v3145_v0 = vpop.f32.mrb[106].mxu1 }
 0x254   : > { %v3146_v32 = vpop.f32.mrb[107].mxu1  ;;  %v4792_v4 = vadd.f32 %v3083_v42, %v4702_v51 }
 0x255   : > { %v3147_v3 = vadd.f32 %v3146_v32, %v3145_v0  ;;  %v4795_v59 = vadd.f32 %v3144_v57, %v4693_v46 }
 0x256   : > { %v3084_v63 = vpop.f32.mrb[108].mxu0 }
 0x257   : > { %v4798_v37 = vadd.f32 %v3147_v3, %v4699_v19  ;;  %v3085_v30 = vpop.f32.mrb[109].mxu0 }
 0x258   : > { %v3086_v47 = vadd.f32 %v3085_v30, %v3084_v63  ;;  %v3087_v38 = vpop.f32.mrb[110].mxu0 }
 0x259   : > { %v3148_v14 = vpop.f32.mrb[108].mxu1  ;;  %v3088_v50 = vpop.f32.mrb[111].mxu0 }
 0x25a   : > { %v3149_v61 = vpop.f32.mrb[109].mxu1  ;;  %v4801_v17 = vadd.f32 %v3086_v47, %v4708_v36  ;;  %v3089_v16 = vadd.f32 %v3088_v50, %v3087_v38 }
 0x25b   : > { %v3150_v51 = vadd.f32 %v3149_v61, %v3148_v14  ;;  %v3151_v13 = vpop.f32.mrb[110].mxu1 }
 0x25c   : > { %v3152_v20 = vpop.f32.mrb[111].mxu1  ;;  %v4804_v46 = vadd.f32 %v3089_v16, %v4714_v18 }
 0x25d   : > { %v3153_v10 = vadd.f32 %v3152_v20, %v3151_v13  ;;  %v4807_v19 = vadd.f32 %v3150_v51, %v4705_v12 }
 0x25e   : > { %v3244_v52 = vpop.f32.mrb[112].mxu0 }
 0x25f   : > { %v4810_v11 = vadd.f32 %v3153_v10, %v4711_v21  ;;  %v2231_v48 = vadd.f32 %v3244_v52, %v4735_v58  ;;  %v2222_v43 = vpop.f32.mrb[113].mxu0 }
 0x260   : > { %v2223_v35 = vadd.f32 %v2222_v43, %v4723_v31  ;;  %v3245_v9 = vpop.f32.mrb[114].mxu0 }
 0x261   : > { %v3154_v36 = vpop.f32.mrb[112].mxu1  ;;  %2351 = vst [vmem:[%s4816_s24 + $0x10] sm:$0xff] %v2231_v48  ;;  %v2234_v18 = vadd.f32 %v3245_v9, %v4738_v2  ;;  %v2225_v21 = vpop.f32.mrb[115].mxu0  ;;  %v2421_v0 = vmul.f32 %v2231_v48, %v2231_v48 }
 0x262   : > { %v3155_v12 = vpop.f32.mrb[113].mxu1  ;;  %2349 = vst [vmem:[%s4816_s24] sm:$0xff] %v2223_v35  ;;  %v2226_v7 = vadd.f32 %v2225_v21, %v4726_v29  ;;  %v2419_v22 = vmul.f32 %v2223_v35, %v2223_v35 }
 0x263   : > { %v3156_v41 = vadd.f32 %v3155_v12, %v3154_v36  ;;  %v3157_v58 = vpop.f32.mrb[114].mxu1  ;;  %2352 = vst [vmem:[%s4816_s24 + $0x18] sm:$0xff] %v2234_v18  ;;  %v2422_v30 = vmul.f32 %v2234_v18, %v2234_v18 }
 0x264   : > { %v3158_v31 = vpop.f32.mrb[115].mxu1  ;;  %2350 = vst [vmem:[%s4816_s24 + $0x8] sm:$0xff] %v2226_v7  ;;  %v2381_v6 = vadd.f32 %v2226_v7, %v2223_v35  ;;  %v2420_v24 = vmul.f32 %v2226_v7, %v2226_v7 }
 0x265   : > { %v3159_v15 = vadd.f32 %v3158_v31, %v3157_v58  ;;  %v4825_v57 = vadd.f32 %v3156_v41, %v4717_v23 }
 0x266   : > { %v2382_v42 = vadd.f32 %v2381_v6, %v2231_v48  ;;  %v2451_v2 = vadd.f32 %v2420_v24, %v2419_v22  ;;  %v3248_v32 = vpop.f32.mrb[116].mxu0 }
 0x267   : > { %v4828_v3 = vadd.f32 %v3159_v15, %v4720_v25  ;;  %v2247_v29 = vadd.f32 %v3248_v32, %v4759_v33  ;;  %v2238_v63 = vpop.f32.mrb[117].mxu0 }
 0x268   : > { %v2452_v14 = vadd.f32 %v2451_v2, %v2421_v0  ;;  %v2239_v38 = vadd.f32 %v2238_v63, %v4747_v54  ;;  %v2383_v61 = vadd.f32 %v2382_v42, %v2234_v18  ;;  %v3249_v23 = vpop.f32.mrb[118].mxu0 }
 0x269   : > { %v3160_v47 = vpop.f32.mrb[116].mxu1  ;;  %2355 = vst [vmem:[%s4816_s24 + $0x30] sm:$0xff] %v2247_v29  ;;  %v2250_v51 = vadd.f32 %v3249_v23, %v4762_v45  ;;  %v2241_v13 = vpop.f32.mrb[119].mxu0  ;;  %v2425_v18 = vmul.f32 %v2247_v29, %v2247_v29 }
 0x26a   : > { %v3161_v50 = vpop.f32.mrb[117].mxu1  ;;  %2353 = vst [vmem:[%s4816_s24 + $0x20] sm:$0xff] %v2239_v38  ;;  %v2384_v25 = vadd.f32 %v2383_v61, %v2239_v38  ;;  %v2423_v20 = vmul.f32 %v2239_v38, %v2239_v38  ;;  %v2453_v33 = vadd.f32 %v2452_v14, %v2422_v30  ;;  %v2242_v48 = vadd.f32 %v2241_v13, %v4750_v62 }
 0x26b   : > { %v3162_v16 = vadd.f32 %v3161_v50, %v3160_v47  ;;  %v3163_v10 = vpop.f32.mrb[118].mxu1  ;;  %2356 = vst [vmem:[%s4816_s24 + $0x38] sm:$0xff] %v2250_v51  ;;  %v2426_v31 = vmul.f32 %v2250_v51, %v2250_v51 }
 0x26c   : > { %v3164_v52 = vpop.f32.mrb[119].mxu1  ;;  %v2454_v43 = vadd.f32 %v2453_v33, %v2423_v20  ;;  %2354 = vst [vmem:[%s4816_s24 + $0x28] sm:$0xff] %v2242_v48  ;;  %v2385_v35 = vadd.f32 %v2384_v25, %v2242_v48  ;;  %v2424_v45 = vmul.f32 %v2242_v48, %v2242_v48 }
 0x26d   : > { %v3165_v54 = vadd.f32 %v3164_v52, %v3163_v10  ;;  %v4838_v36 = vadd.f32 %v3162_v16, %v4729_v53 }
 0x26e   : > { %v3252_v9 = vpop.f32.mrb[120].mxu0  ;;  %v2386_v21 = vadd.f32 %v2385_v35, %v2247_v29  ;;  %v2455_v41 = vadd.f32 %v2454_v43, %v2424_v45 }
 0x26f   : > { %v4842_v12 = vadd.f32 %v3165_v54, %v4732_v28  ;;  %v2263_v58 = vadd.f32 %v3252_v9, %v4783_v1  ;;  %v2254_v62 = vpop.f32.mrb[121].mxu0 }
 0x270   : > { %v2255_v22 = vadd.f32 %v2254_v62, %v4771_v44  ;;  %v3253_v53 = vpop.f32.mrb[122].mxu0  ;;  %v2456_v15 = vadd.f32 %v2455_v41, %v2425_v18  ;;  %v2387_v24 = vadd.f32 %v2386_v21, %v2250_v51 }
 0x271   : > { %v3166_v7 = vpop.f32.mrb[120].mxu1  ;;  %2359 = vst [vmem:[%s4816_s24 + $0x50] sm:$0xff] %v2263_v58  ;;  %v2266_v28 = vadd.f32 %v3253_v53, %v4786_v5  ;;  %v2257_v0 = vpop.f32.mrb[123].mxu0  ;;  %v2429_v50 = vmul.f32 %v2263_v58, %v2263_v58 }
 0x272   : > { %v3167_v6 = vpop.f32.mrb[121].mxu1  ;;  %2357 = vst [vmem:[%s4816_s24 + $0x40] sm:$0xff] %v2255_v22  ;;  %v2427_v2 = vmul.f32 %v2255_v22, %v2255_v22  ;;  %v2258_v1 = vadd.f32 %v2257_v0, %v4774_v27  ;;  %v2388_v29 = vadd.f32 %v2387_v24, %v2255_v22  ;;  %v2457_v63 = vadd.f32 %v2456_v15, %v2426_v31 }
 0x273   : > { %v3168_v42 = vadd.f32 %v3167_v6, %v3166_v7  ;;  %v3169_v32 = vpop.f32.mrb[122].mxu1  ;;  %2360 = vst [vmem:[%s4816_s24 + $0x58] sm:$0xff] %v2266_v28 }
 0x274   : > { %v3170_v44 = vpop.f32.mrb[123].mxu1  ;;  %2358 = vst [vmem:[%s4816_s24 + $0x48] sm:$0xff] %v2258_v1  ;;  %v2428_v14 = vmul.f32 %v2258_v1, %v2258_v1  ;;  %v2458_v38 = vadd.f32 %v2457_v63, %v2427_v2  ;;  %v2389_v5 = vadd.f32 %v2388_v29, %v2258_v1 }
 0x275   : > { %v3171_v30 = vadd.f32 %v3170_v44, %v3169_v32  ;;  %v4853_v47 = vadd.f32 %v3168_v42, %v4741_v60  ;;  %v2430_v60 = vmul.f32 %v2266_v28, %v2266_v28 }
 0x276   : > { %v3256_v61 = vpop.f32.mrb[124].mxu0  ;;  %v2390_v27 = vadd.f32 %v2389_v5, %v2263_v58  ;;  %v2459_v51 = vadd.f32 %v2458_v38, %v2428_v14 }
 0x277   : > { %v4856_v23 = vadd.f32 %v3171_v30, %v4744_v34  ;;  %v2279_v13 = vadd.f32 %v3256_v61, %v4807_v19  ;;  %v2270_v16 = vpop.f32.mrb[125].mxu0 }
 0x278   : > { %v2271_v20 = vadd.f32 %v2270_v16, %v4795_v59  ;;  %v3257_v33 = vpop.f32.mrb[126].mxu0  ;;  %v2460_v10 = vadd.f32 %v2459_v51, %v2429_v50  ;;  %v2391_v48 = vadd.f32 %v2390_v27, %v2266_v28 }
 0x279   : > { %v3172_v25 = vpop.f32.mrb[124].mxu1  ;;  %2363 = vst [vmem:[%s4816_s24 + $0x70] sm:$0xff] %v2279_v13  ;;  %v2282_v34 = vadd.f32 %v3257_v33, %v4810_v11  ;;  %v2273_v43 = vpop.f32.mrb[127].mxu0  ;;  %v2433_v53 = vmul.f32 %v2279_v13, %v2279_v13 }
 0x27a   : > { %v3173_v52 = vpop.f32.mrb[125].mxu1  ;;  %2361 = vst [vmem:[%s4816_s24 + $0x60] sm:$0xff] %v2271_v20  ;;  %v2431_v35 = vmul.f32 %v2271_v20, %v2271_v20  ;;  %v2274_v19 = vadd.f32 %v2273_v43, %v4798_v37  ;;  %v2392_v9 = vadd.f32 %v2391_v48, %v2271_v20  ;;  %v2461_v18 = vadd.f32 %v2460_v10, %v2430_v60 }
 0x27b   : > { %v3174_v54 = vadd.f32 %v3173_v52, %v3172_v25  ;;  %v3175_v45 = vpop.f32.mrb[126].mxu1  ;;  %2364 = vst [vmem:[%s4816_s24 + $0x78] sm:$0xff] %v2282_v34  ;;  %v2434_v42 = vmul.f32 %v2282_v34, %v2282_v34 }
 0x27c   : > { %v3176_v59 = vpop.f32.mrb[127].mxu1  ;;  %2362 = vst [vmem:[%s4816_s24 + $0x68] sm:$0xff] %v2274_v19  ;;  %v2432_v41 = vmul.f32 %v2274_v19, %v2274_v19  ;;  %v2462_v62 = vadd.f32 %v2461_v18, %v2431_v35  ;;  %v2393_v7 = vadd.f32 %v2392_v9, %v2274_v19 }
 0x27d   : > { %v3177_v21 = vadd.f32 %v3176_v59, %v3175_v45  ;;  %v2150_v58 = vadd.f32 %v3174_v54, %v4753_v55 }
 0x27e   : > { %v3260_v11 = vpop.f32.mrb[128].mxu0  ;;  %v2394_v31 = vadd.f32 %v2393_v7, %v2279_v13  ;;  %v2463_v15 = vadd.f32 %v2462_v62, %v2432_v41 }
 0x27f   : > { %v2153_v22 = vadd.f32 %v3177_v21, %v4756_v56  ;;  %v2295_v37 = vadd.f32 %v3260_v11, %v4838_v36  ;;  %v2286_v6 = vpop.f32.mrb[129].mxu0 }
 0x280   : > { %v2287_v28 = vadd.f32 %v2286_v6, %v4825_v57  ;;  %v3261_v0 = vpop.f32.mrb[130].mxu0  ;;  %v2464_v2 = vadd.f32 %v2463_v15, %v2433_v53  ;;  %v2395_v32 = vadd.f32 %v2394_v31, %v2282_v34 }
 0x281   : > { %v3178_v24 = vpop.f32.mrb[128].mxu1  ;;  %2367 = vst [vmem:[%s4816_s24 + $0x90] sm:$0xff] %v2295_v37  ;;  %v2298_v56 = vadd.f32 %v3261_v0, %v4842_v12  ;;  %v2289_v1 = vpop.f32.mrb[131].mxu0  ;;  %v2437_v13 = vmul.f32 %v2295_v37, %v2295_v37 }
 0x282   : > { %v3179_v55 = vpop.f32.mrb[129].mxu1  ;;  %2365 = vst [vmem:[%s4816_s24 + $0x80] sm:$0xff] %v2287_v28  ;;  %v2435_v63 = vmul.f32 %v2287_v28, %v2287_v28  ;;  %v2290_v36 = vadd.f32 %v2289_v1, %v4828_v3  ;;  %v2396_v30 = vadd.f32 %v2395_v32, %v2287_v28  ;;  %v2465_v14 = vadd.f32 %v2464_v2, %v2434_v42 }
 0x283   : > { %v3180_v29 = vadd.f32 %v3179_v55, %v3178_v24  ;;  %v3181_v44 = vpop.f32.mrb[130].mxu1  ;;  %2368 = vst [vmem:[%s4816_s24 + $0x98] sm:$0xff] %v2298_v56  ;;  %v2438_v52 = vmul.f32 %v2298_v56, %v2298_v56 }
 0x284   : > { %v3182_v57 = vpop.f32.mrb[131].mxu1  ;;  %2366 = vst [vmem:[%s4816_s24 + $0x88] sm:$0xff] %v2290_v36  ;;  %v2436_v5 = vmul.f32 %v2290_v36, %v2290_v36  ;;  %v2466_v50 = vadd.f32 %v2465_v14, %v2435_v63  ;;  %v2397_v27 = vadd.f32 %v2396_v30, %v2290_v36 }
 0x285   : > { %v3183_v38 = vadd.f32 %v3182_v57, %v3181_v44  ;;  %v2158_v61 = vadd.f32 %v3180_v29, %v4765_v39 }
 0x286   : > { %v3264_v12 = vpop.f32.mrb[132].mxu0  ;;  %v2398_v16 = vadd.f32 %v2397_v27, %v2295_v37  ;;  %v2467_v25 = vadd.f32 %v2466_v50, %v2436_v5 }
 0x287   : > { %v2161_v51 = vadd.f32 %v3183_v38, %v4768_v40  ;;  %v2311_v3 = vadd.f32 %v3264_v12, %v2150_v58  ;;  %v2302_v20 = vpop.f32.mrb[133].mxu0 }
 0x288   : > { %v2303_v60 = vadd.f32 %v2302_v20, %v4853_v47  ;;  %v3265_v10 = vpop.f32.mrb[134].mxu0  ;;  %v2468_v48 = vadd.f32 %v2467_v25, %v2437_v13  ;;  %v2399_v34 = vadd.f32 %v2398_v16, %v2298_v56 }
 0x289   : > { %v3184_v33 = vpop.f32.mrb[132].mxu1  ;;  %2371 = vst [vmem:[%s4816_s24 + $0xb0] sm:$0xff] %v2311_v3  ;;  %v2314_v43 = vadd.f32 %v3265_v10, %v2153_v22  ;;  %v2305_v54 = vpop.f32.mrb[135].mxu0  ;;  %v2441_v22 = vmul.f32 %v2311_v3, %v2311_v3 }
 0x28a   : > { %v3185_v39 = vpop.f32.mrb[133].mxu1  ;;  %2369 = vst [vmem:[%s4816_s24 + $0xa0] sm:$0xff] %v2303_v60  ;;  %v2439_v35 = vmul.f32 %v2303_v60, %v2303_v60  ;;  %v2306_v19 = vadd.f32 %v2305_v54, %v4856_v23  ;;  %v2400_v9 = vadd.f32 %v2399_v34, %v2303_v60  ;;  %v2469_v18 = vadd.f32 %v2468_v48, %v2438_v52 }
 0x28b   : > { %v3186_v40 = vadd.f32 %v3185_v39, %v3184_v33  ;;  %v3187_v45 = vpop.f32.mrb[134].mxu1  ;;  %2372 = vst [vmem:[%s4816_s24 + $0xb8] sm:$0xff] %v2314_v43  ;;  %v2442_v28 = vmul.f32 %v2314_v43, %v2314_v43 }
 0x28c   : > { %v3188_v47 = vpop.f32.mrb[135].mxu1  ;;  %2370 = vst [vmem:[%s4816_s24 + $0xa8] sm:$0xff] %v2306_v19  ;;  %v2440_v21 = vmul.f32 %v2306_v19, %v2306_v19  ;;  %v2470_v58 = vadd.f32 %v2469_v18, %v2439_v35  ;;  %v2401_v62 = vadd.f32 %v2400_v9, %v2306_v19 }
 0x28d   : > { %v3189_v59 = vadd.f32 %v3188_v47, %v3187_v45  ;;  %v2166_v41 = vadd.f32 %v3186_v40, %v4777_v49 }
 0x28e   : > { %v3268_v7 = vpop.f32.mrb[136].mxu0  ;;  %v2402_v53 = vadd.f32 %v2401_v62, %v2311_v3  ;;  %v2471_v31 = vadd.f32 %v2470_v58, %v2440_v21 }
 0x28f   : > { %v2169_v11 = vadd.f32 %v3189_v59, %v4780_v8  ;;  %v2327_v23 = vadd.f32 %v3268_v7, %v2166_v41  ;;  %v2318_v15 = vpop.f32.mrb[137].mxu0 }
 0x290   : > { %v2319_v6 = vadd.f32 %v2318_v15, %v2158_v61  ;;  %v3269_v24 = vpop.f32.mrb[138].mxu0  ;;  %v2472_v0 = vadd.f32 %v2471_v31, %v2441_v22  ;;  %v2403_v42 = vadd.f32 %v2402_v53, %v2314_v43 }
 0x291   : > { %v3190_v37 = vpop.f32.mrb[136].mxu1  ;;  %2375 = vst [vmem:[%s4816_s24 + $0xd0] sm:$0xff] %v2327_v23  ;;  %v2330_v2 = vadd.f32 %v3269_v24, %v2169_v11  ;;  %v2321_v55 = vpop.f32.mrb[139].mxu0  ;;  %v2445_v50 = vmul.f32 %v2327_v23, %v2327_v23 }
 0x292   : > { %v3191_v49 = vpop.f32.mrb[137].mxu1  ;;  %2373 = vst [vmem:[%s4816_s24 + $0xc0] sm:$0xff] %v2319_v6  ;;  %v2443_v8 = vmul.f32 %v2319_v6, %v2319_v6  ;;  %v2322_v1 = vadd.f32 %v2321_v55, %v2161_v51  ;;  %v2404_v29 = vadd.f32 %v2403_v42, %v2319_v6  ;;  %v2473_v63 = vadd.f32 %v2472_v0, %v2442_v28 }
 0x293   : > { %v3192_v32 = vadd.f32 %v3191_v49, %v3190_v37  ;;  %v3193_v56 = vpop.f32.mrb[138].mxu1  ;;  %2376 = vst [vmem:[%s4816_s24 + $0xd8] sm:$0xff] %v2330_v2  ;;  %v2446_v3 = vmul.f32 %v2330_v2, %v2330_v2 }
 0x294   : > { %v3194_v44 = vpop.f32.mrb[139].mxu1  ;;  %2374 = vst [vmem:[%s4816_s24 + $0xc8] sm:$0xff] %v2322_v1  ;;  %v2444_v30 = vmul.f32 %v2322_v1, %v2322_v1  ;;  %v2474_v57 = vadd.f32 %v2473_v63, %v2443_v8  ;;  %v2405_v38 = vadd.f32 %v2404_v29, %v2322_v1 }
 0x295   : > { %v3195_v36 = vadd.f32 %v3194_v44, %v3193_v56  ;;  %v2174_v14 = vadd.f32 %v3192_v32, %v4789_v26 }
 0x296   : > { %v3272_v5 = vpop.f32.mrb[140].mxu0  ;;  %v2406_v27 = vadd.f32 %v2405_v38, %v2327_v23  ;;  %v2475_v12 = vadd.f32 %v2474_v57, %v2444_v30 }
 0x297   : > { %v2177_v61 = vadd.f32 %v3195_v36, %v4792_v4  ;;  %v2334_v13 = vpop.f32.mrb[141].mxu0 }
 0x298   : > { %v2335_v16 = vadd.f32 %v2334_v13, %v2174_v14  ;;  %v3273_v25 = vpop.f32.mrb[142].mxu0  ;;  %v2476_v20 = vadd.f32 %v2475_v12, %v2445_v50  ;;  %v2407_v26 = vadd.f32 %v2406_v27, %v2330_v2 }
 0x299   : > { %v3196_v51 = vpop.f32.mrb[140].mxu1  ;;  %v2337_v60 = vpop.f32.mrb[143].mxu0 }
 0x29a   : > { %v3197_v33 = vpop.f32.mrb[141].mxu1  ;;  %2377 = vst [vmem:[%s4816_s24 + $0xe0] sm:$0xff] %v2335_v16  ;;  %v2447_v52 = vmul.f32 %v2335_v16, %v2335_v16  ;;  %v2338_v4 = vadd.f32 %v2337_v60, %v2177_v61  ;;  %v2408_v39 = vadd.f32 %v2407_v26, %v2335_v16  ;;  %v2477_v34 = vadd.f32 %v2476_v20, %v2446_v3 }
 0x29b   : > { %v3198_v10 = vadd.f32 %v3197_v33, %v3196_v51  ;;  %v3199_v48 = vpop.f32.mrb[142].mxu1 }
 0x29c   : > { %v3200_v43 = vpop.f32.mrb[143].mxu1  ;;  %2378 = vst [vmem:[%s4816_s24 + $0xe8] sm:$0xff] %v2338_v4  ;;  %v2448_v35 = vmul.f32 %v2338_v4, %v2338_v4  ;;  %v2478_v45 = vadd.f32 %v2477_v34, %v2447_v52  ;;  %v2409_v19 = vadd.f32 %v2408_v39, %v2338_v4 }
 0x29d   : > { %v2182_v54 = vadd.f32 %v3198_v10, %v4801_v17  ;;  %v3201_v40 = vadd.f32 %v3200_v43, %v3199_v48 }
 0x29e   : > { %v2479_v47 = vadd.f32 %v2478_v45, %v2448_v35 }
 0x29f   : > { %v2343_v9 = vadd.f32 %v3272_v5, %v2182_v54  ;;  %v2185_v18 = vadd.f32 %v3201_v40, %v4804_v46 }
 0x2a1   : > { %2379 = vst [vmem:[%s4816_s24 + $0xf0] sm:$0xff] %v2343_v9  ;;  %v2449_v17 = vmul.f32 %v2343_v9, %v2343_v9  ;;  %v2346_v59 = vadd.f32 %v3273_v25, %v2185_v18  ;;  %v2410_v21 = vadd.f32 %v2409_v19, %v2343_v9 }
 0x2a3   : > { %2380 = vst [vmem:[%s4816_s24 + $0xf8] sm:$0xff] %v2346_v59  ;;  %v2450_v41 = vmul.f32 %v2346_v59, %v2346_v59  ;;  %v2411_v58 = vadd.f32 %v2410_v21, %v2346_v59  ;;  %v2480_v62 = vadd.f32 %v2479_v47, %v2449_v17 }
 0x2a4   : > { %3580 = shalt.err (!%p3577_p13)
}
 0x2a5   : > { %s3581_s28 = scalar_lea.hbm %s4901_s14, 4096  ;;  %s3585_s8 = scalar_lea.hbm %s4984_s4, 8192 }
 0x2a6   : > { %p3582_p0 = scmp.ne.s32.totalorder %s4901_s14, %s3581_s28  ;;  %p3586_p9 = scmp.lt.u32.totalorder %s4901_s14, %s4984_s4 }
 0x2a7   : > { %p3587_p12 = scmp.lt.u32.totalorder %s3585_s8, %s3581_s28  ;;  %p3589_p1 = scmp.lt.u32.totalorder %s3581_s28, %s4901_s14 }
 0x2a8   : > { %p3583_p5 = pnand %p3582_p0, %p3861_p6 }
 0x2a9   : > { %p3588_p2 = por %p3587_p12, %p3586_p9 }
 0x2aa   : > { %p3584_p11 = pneg %p3583_p5 }
 0x2ab   : > { %p3590_p4 = por %p3589_p1, %p3588_p2 }
 0x2ad   : > { %p3591_p8 = pnand %p3590_p4, %p3584_p11 }
 0x2af   : > { %3594 = shalt.err (!%p3591_p8)
}
 0x2b0   : > { %s3685_s30 = smov 128   ;;  %s3686_s13 = smov 8   ;;  %v2412_v46 = vrot.slane %v2411_v58, 4  ;;  %v2481_v7 = vadd.f32 %v2480_v62, %v2450_v41 }
 0x2b1   : > { %3304 = dma.vmem_to_hbm [thread:$0]  (%p3861_p6), %s4903_s11, 4096, %s4901_s14, %s2490_s6, %s3685_s30, %s3685_s30, %s3686_s13  }
 0x2b2   : > { %v2413_v11 = vadd.f32 %v2412_v46, %v2411_v58  ;;  %v2482_v22 = vrot.slane %v2481_v7, 4  ;;  %s2670_s9 = sshll.u32 %s3909_s17, 1  ;;  %s2749_s10 = sshll.u32 %s3739_s22, 5 }
 0x2b3   : > { %s293_s12 = scalar_lea.vmem [#allocation11], %s2670_s9  ;;  %s4936_s6 = scalar_lea.hbm %s4985_s5, %s2749_s10 }
 0x2b4   : > { %v2414_v53 = vrot.slane %v2413_v11, 2  ;;  %v2483_v31 = vadd.f32 %v2482_v22, %v2481_v7  ;;  %s2524_s15 = sshll.u32 %s293_s12, 4  ;;  %s2495_s28 = scalar_lea.sflag [#allocation12], %s3909_s17  ;;  %s4938_s15 = int_to_ptr.vmem [resolvable:$true] %s2524_s15 }
 0x2b5   : > { %s3595_s23 = scalar_lea.vmem %s4938_s15, 32  ;;  %s3687_s22 = smov [#allocation11]  }
 0x2b6   : > { %v2415_v23 = vadd.f32 %v2414_v53, %v2413_v11  ;;  %v2484_v15 = vrot.slane %v2483_v31, 2  ;;  %p3596_p3 = scmp.ne.s32.totalorder %s4938_s15, %s3595_s23  ;;  %s3599_s7 = sshll.u32 %s3687_s22, 4  ;;  %s3600_s7 = int_to_ptr.vmem [resolvable:$false] %s3599_s7 }
 0x2b7   : > { %s3601_s8 = scalar_lea.vmem %s3600_s7, 64  ;;  %p3602_p13 = scmp.lt.s32.totalorder %s4938_s15, %s3600_s7 }
 0x2b8   : > { %v2416_v37 = vrot.slane %v2415_v23, 1  ;;  %v2485_v6 = vadd.f32 %v2484_v15, %v2483_v31  ;;  %p3597_p7 = pnand %p3596_p3, %p3861_p6  ;;  %p3603_p0 = scmp.lt.s32.totalorder %s3601_s8, %s3595_s23 }
 0x2ba   : > { %v2417_v24 = vadd.f32 %v2416_v37, %v2415_v23  ;;  %v2486_v28 = vrot.slane %v2485_v6, 1  ;;  %p3598_p10 = pneg %p3597_p7  ;;  %p3604_p5 = por %p3603_p0, %p3602_p13 }
 0x2bc   : > { %2418 = vst [vmem:[%s293_s12] sm:$0x1] %v2417_v24  ;;  %v2487_v0 = vadd.f32 %v2486_v28, %v2485_v6  ;;  %p3605_p11 = pnand %p3604_p5, %p3598_p10 }
 0x2be   : > { %2488 = vst [vmem:[%s293_s12 + $0x1] sm:$0x1] %v2487_v0 }
 0x2bf   : > { %3608 = shalt.err (!%p3605_p11)
}
 0x2c0   : > { %s3609_s17 = scalar_lea.hbm %s4936_s6, 32  ;;  %s3613_s30 = scalar_lea.hbm %s4985_s5, 64 }
 0x2c1   : > { %p3610_p9 = scmp.ne.s32.totalorder %s4936_s6, %s3609_s17  ;;  %p3614_p1 = scmp.lt.u32.totalorder %s4936_s6, %s4985_s5 }
 0x2c2   : > { %p3615_p4 = scmp.lt.u32.totalorder %s3613_s30, %s3609_s17  ;;  %p3617_p3 = scmp.lt.u32.totalorder %s3609_s17, %s4936_s6 }
 0x2c3   : > { %p3611_p12 = pnand %p3610_p9, %p3861_p6 }
 0x2c4   : > { %p3616_p8 = por %p3615_p4, %p3614_p1 }
 0x2c5   : > { %p3612_p2 = pneg %p3611_p12 }
 0x2c6   : > { %p3618_p7 = por %p3617_p3, %p3616_p8 }
 0x2c8   : > { %p3619_p10 = pnand %p3618_p7, %p3612_p2 }
 0x2ca   : > { %3622 = shalt.err (!%p3619_p10)
}
 0x2cb   : > { %3305 = dma.vmem_to_hbm [thread:$0]  (%p3861_p6), %s4938_s15, 32, %s4936_s6, %s2495_s28  }
 0x2cc PF: > { %s2536_s10 = sand.u32 1, %s3661_s18   ;;  %p5006_p13 = scmp.ne.s32.totalorder %s4990_s25, 0 }
 0x2cd   : > { %p5007_p0 = scmp.ge.s32.totalorder %s3673_s21, 2  ;;  %s2537_s12 = scalar_lea.sflag [#allocation4], %s2536_s10 }
 0x2cf   : > { %p3323_p5 = pnand %p5007_p0, %p5006_p13 }
 0x2d1   : > { %3652 = dma.done.wait (!%p3323_p5), %s2537_s12, 4096  }
 0x2d2   : > { %3654 = vsyncadd (!%p3323_p5), %s2537_s12, 4294963200  ;;  %s2546_s11 = scalar_lea.sflag [#allocation12], %s2536_s10 }
 0x2d3   : > { %3656 = dma.done.wait (!%p3323_p5), %s2546_s11, 32  }
 0x2d4   : > { %3658 = vsyncadd (!%p3323_p5), %s2546_s11, 4294967264  ;;  %p24_p6 = scmp.ge.s32.totalorder %s3847_s16, 4   ;;  %s5008_s18 = smov %s3665_s19 }
 0x2d5   : > { %s5009_s19 = smov %s3669_s20  ;;  %s5010_s20 = smov %s3857_s27 }
 0x2d6   : > { %s5011_s21 = smov %s3847_s16  ;;  %26 = sbr.rel (!%p24_p6) target bundleno = 9 (0x9), region = 110 }
 0x2dd   :  { %2551 = vsyncpa [#allocation3], 1 }
 0x2de   :  { %2553 = vsyncpa [#allocation3 + $0x1], 1 }
 0x2df   :  { %2554 = vsyncpa [#allocation6], 1 }
 0x2e0   :  { %2555 = vsyncpa [#allocation9], 1 }
 0x2e1   :  { %2556 = vsyncpa [#allocation4], 1 }
 0x2e2   :  { %2558 = vsyncpa [#allocation4 + $0x1], 1 }
 0x2e3   :  { %2559 = vsyncpa [#allocation12], 1 }
 0x2e4   :  { %2561 = vsyncpa [#allocation12 + $0x1], 1 }

// kernel: basic_block_pallas.3
= control target key start
LH: loop header
LB: loop body
LE: loop exit
PB: predicated region body
PF: predicated region fallthrough
CT: control target
= control target key end

     0   :  { %9 = vsyncpa [#allocation3], 0  ;;  %s5163_s0 = inlined_call_operand.hbm [shape: bf16[2,18,18,128], index: 0, kind: input, shape index: {}]   ;;  %s5164_s1 = inlined_call_operand.hbm [shape: bf16[1152,128], index: 1, kind: input, shape index: {}]   ;;  %s5165_s2 = inlined_call_operand.hbm [shape: f32[2,16,16,128], index: 2, kind: output, shape index: {0}]   ;;  %s5166_s3 = inlined_call_operand.hbm [shape: f32[2,2,128], index: 3, kind: output, shape index: {1}]  }
   0x1   :  { %11 = vsyncpa [#allocation3 + $0x1], 0 }
   0x2   :  { %12 = vsyncpa [#allocation6], 0 }
   0x3   :  { %13 = vsyncpa [#allocation4], 0 }
   0x4   :  { %15 = vsyncpa [#allocation4 + $0x1], 0 }
   0x5   :  { %16 = vsyncpa [#allocation9], 0 }
   0x6   :  { %18 = vsyncpa [#allocation9 + $0x1], 0  ;;  %s3830_s12 = smov 0   ;;  %s3832_s13 = smov 0  }
   0x7   :  { %s3834_s14 = smov 0   ;;  %s3836_s15 = smov 0  }
   0x8 LB: > { %s3851_s16 = sadd.s32 4294967295, %s3800_s15   ;;  %s2772_s17 = sadd.s32 4294967294, %s3800_s15   ;;  %s3800_s15 = sphi %s3836_s15, %s5215_s15   ;;  %s3796_s14 = sphi %s3834_s14, %s5214_s14   ;;  %s3792_s13 = sphi %s3832_s13, %s5213_s13   ;;  %s3788_s12 = sphi %s3830_s12, %s5212_s12  }
   0x9   : > { %p44_p0 = scmp.ne.s32.totalorder %s3792_s13, %s3788_s12  ;;  %p5167_p1 = scmp.eq.s32.totalorder %s3851_s16, 0 }
   0xa   : > { %p95_p3 = scmp.eq.s32.totalorder %s2772_s17, 1  ;;  %p2773_p5 = scmp.ge.s32.totalorder %s3800_s15, 1 }
   0xb   : > { %p3860_p4 = por %p5167_p1, %p44_p0  ;;  %p128_p7 = scmp.lt.s32.totalorder %s3800_s15, 3 }
   0xc   : > { %p3865_p6 = por %p95_p3, %p44_p0  ;;  %s3802_s21 = smov [#allocation5]  }
   0xd   : > { %s5181_s18 = scalar_select %p3860_p4, 1, 0 }
   0xe   : > { %s5182_s19 = scalar_select %p3865_p6, 1, 0 }
   0xf   : > { %p3870_p8 = pnand %p2773_p5, %p128_p7  ;;  %s140_s22 = sshll.u32 %s3802_s21, 4  ;;  %s3874_s22 = int_to_ptr.vmem [resolvable:$true] %s140_s22 }
  0x10   : > { %s3886_s24 = sadd.s32 1, %s3800_s15   ;;  %s31_s25 = sadd.s32 1, %s3796_s14 }
  0x11   : > { %s5183_s20 = scalar_select %p3870_p8, 1, 0 }
  0x12   : > { %p3482_p9 = pneg %p3870_p8  ;;  %s28_s26 = ssub.s32 %s3800_s15, %s3886_s24 }
  0x13   : > { %s3640_s29 = scalar_lea.hbm %s5164_s1, 9216 }
  0x14   : > { %p3881_p11 = pnand %p3482_p9, %p5167_p1  ;;  %p3641_p12 = scmp.ne.s32.totalorder %s5164_s1, %s3640_s29 }
  0x15   : > { %p3647_p5 = scmp.lt.u32.totalorder %s3640_s29, %s5164_s1 }
  0x16   : > { %p3642_p13 = pneg %p3881_p11 }
  0x18   : > { %p3643_p0 = pnand %p3642_p13, %p3641_p12 }
  0x1a   : > { %p3644_p3 = pneg %p3643_p0 }
  0x1c   : > { %p3649_p7 = pnand %p3647_p5, %p3644_p3 }
  0x1e   : > { %3652 = shalt.err (!%p3649_p7)
}
  0x1f   : > { %s3653_s7 = scalar_lea.vmem %s3874_s22, 9216  ;;  %p3661_p2 = scmp.lt.s32.totalorder %s3874_s22, %s3874_s22 }
  0x20   : > { %p3654_p9 = scmp.ne.s32.totalorder %s3874_s22, %s3653_s7  ;;  %p3662_p6 = scmp.lt.s32.totalorder %s3653_s7, %s3653_s7 }
  0x22   : > { %p3656_p10 = pnand %p3654_p9, %p3642_p13  ;;  %p3663_p4 = por %p3662_p6, %p3661_p2 }
  0x24   : > { %p3657_p1 = pneg %p3656_p10 }
  0x26   : > { %p3664_p8 = pnand %p3663_p4, %p3657_p1 }
  0x28   : > { %3667 = shalt.err (!%p3664_p8)
}
  0x29   : > { %s3803_s8 = smov 64   ;;  %s3804_s9 = smov 4  }
  0x2a   : > { %3485 = dma.hbm_to_vmem [thread:$0]  (!%p3881_p11), %s5164_s1, 9216, %s3874_s22, [#allocation6], %s3803_s8, %s3803_s8, %s3804_s9  }
  0x2b   : > { %p29_p1 = scmp.eq.s32.totalorder %s28_s26, 0  ;;  %p38_p2 = scmp.ne.s32.totalorder %s3796_s14, %s3792_s13 }
  0x2c   : > { %p39_p4 = scmp.eq.s32.totalorder %s3800_s15, 0  ;;  %p3498_p6 = scmp.lt.s32.totalorder %s3800_s15, 2 }
  0x2d   : > { %s3920_s17 = scalar_select %p29_p1, %s3796_s14, %s31_s25  }
  0x2e   : > { %p40_p8 = por %p39_p4, %p38_p2  ;;  %p5185_p10 = scmp.eq.s32.totalorder %s3851_s16, 1 }
  0x2f   : > { %s154_s23 = sand.u32 1, %s3796_s14   ;;  %s3470_s27 = smul.u32 3456, %s3800_s15 }
  0x30   : > { %p3924_p12 = por %p5185_p10, %p38_p2  ;;  %s3469_s28 = smul.u32 216, %s154_s23 }
  0x31   : > { %p3930_p13 = pnand %p3498_p6, %p40_p8  ;;  %s3937_s25 = scalar_lea.hbm %s5163_s0, %s3470_s27 }
  0x32   : > { %s158_s30 = scalar_lea.vmem [#allocation2], %s3469_s28  ;;  %s3941_s5 = scalar_lea.sflag [#allocation3], %s154_s23 }
  0x33   : > { %s165_s4 = sshll.u32 %s158_s30, 4  ;;  %s3668_s6 = scalar_lea.hbm %s3937_s25, 3456  ;;  %s3939_s4 = int_to_ptr.vmem [resolvable:$true] %s165_s4 }
  0x34   : > { %p3669_p11 = scmp.ne.s32.totalorder %s3937_s25, %s3668_s6  ;;  %p3670_p0 = pneg %p3930_p13 }
  0x35   : > { %s3673_s11 = scalar_lea.hbm %s5163_s0, 6912  ;;  %p3674_p7 = scmp.lt.u32.totalorder %s3937_s25, %s5163_s0 }
  0x36   : > { %p3671_p3 = pnand %p3670_p0, %p3669_p11  ;;  %p3675_p9 = scmp.lt.u32.totalorder %s3673_s11, %s3668_s6 }
  0x37   : > { %p3677_p2 = scmp.lt.u32.totalorder %s3668_s6, %s3937_s25 }
  0x38   : > { %p3672_p5 = pneg %p3671_p3  ;;  %p3676_p1 = por %p3675_p9, %p3674_p7 }
  0x3a   : > { %p3678_p4 = por %p3677_p2, %p3676_p1 }
  0x3c   : > { %p3679_p6 = pnand %p3678_p4, %p3672_p5 }
  0x3e   : > { %3682 = shalt.err (!%p3679_p6)
}
  0x3f   : > { %s3683_s23 = scalar_lea.vmem %s3939_s4, 3456  ;;  %s3805_s28 = smov [#allocation2]  }
  0x40   : > { %p3684_p8 = scmp.ne.s32.totalorder %s3939_s4, %s3683_s23  ;;  %s3688_s26 = sshll.u32 %s3805_s28, 4  ;;  %s3689_s26 = int_to_ptr.vmem [resolvable:$false] %s3688_s26 }
  0x41   : > { %s3690_s30 = scalar_lea.vmem %s3689_s26, 6912  ;;  %p3691_p3 = scmp.lt.s32.totalorder %s3939_s4, %s3689_s26 }
  0x42   : > { %p3686_p10 = pnand %p3684_p8, %p3670_p0  ;;  %p3692_p7 = scmp.lt.s32.totalorder %s3690_s30, %s3683_s23 }
  0x44   : > { %p3687_p11 = pneg %p3686_p10  ;;  %p3693_p9 = por %p3692_p7, %p3691_p3 }
  0x46   : > { %p3694_p1 = pnand %p3693_p9, %p3687_p11 }
  0x48   : > { %3697 = shalt.err (!%p3694_p1)
}
  0x49   : > { %3489 = dma.hbm_to_vmem [thread:$0]  (!%p3930_p13), %s3937_s25, 3456, %s3939_s4, %s3941_s5, %s3803_s8, %s3803_s8, %s3804_s9  }
  0x4a   : > { %p5188_p0 = scmp.ne.s32.totalorder %s5183_s20, 0 }
  0x4c   : > { %177 = sbr.rel (%p5188_p0) target bundleno = 670 (0x29e), region = 28 }
  0x53   : > { %s3975_s6 = sand.u32 1, %s3792_s13   ;;  %p5189_p5 = scmp.ne.s32.totalorder %s5181_s18, 0 }
  0x54   : > { %s3471_s7 = smul.u32 216, %s3975_s6  ;;  %s180_s10 = scalar_lea.sflag [#allocation3], %s3975_s6 }
  0x56   : > { %s3979_s11 = scalar_lea.vmem [#allocation2], %s3471_s7 }
  0x57   : > { %3771 = dma.done.wait (%p5189_p5), %s180_s10, 3456  }
  0x58   : > { %3773 = vsyncadd (%p5189_p5), %s180_s10, 4294963840  ;;  %p5190_p13 = scmp.eq.s32.totalorder %s3851_s16, 0 }
  0x5a   : > { %3775 = dma.done.wait (%p5190_p13), [#allocation6], 9216   ;;  %p5191_p2 = pmov %p5190_p13 }
  0x5b   : > { %v3538_v0 = vld [vmem:[#allocation5 + $0x40] sm:$0xff]   ;;  %v3540_v2 = vld [vmem:[#allocation5 + $0x48] sm:$0xff]   ;;  %v3542_v4 = vld [vmem:[#allocation5 + $0x50] sm:$0xff]   ;;  %vm270_vm0 = vsmask.f32 3328  ;;  %vm705_vm3 = vcmask 1042432  }
  0x5c   : > { %3777 = vsyncadd (%p5191_p2), [#allocation6], 4294958080  ;;  %v3539_v1 = vld [vmem:[#allocation5] sm:$0xff]   ;;  %2933 = vmatprep.subr.bf16.mxu0 %v3538_v0  ;;  %3453 = vmatprep.subr.bf16.mxu1 %v3538_v0  ;;  %v3541_v3 = vld [vmem:[#allocation5 + $0x8] sm:$0xff]   ;;  %vm271_vm1 = vsmask.f32 7440 }
  0x5d   : > { %2934 = vmatpush3.bf16.msra.mxu0 %v3539_v1  ;;  %3461 = vmatpush3.bf16.msra.mxu1 %v3539_v1  ;;  %v3543_v5 = vld [vmem:[#allocation5 + $0x10] sm:$0xff]   ;;  %v3544_v6 = vld [vmem:[#allocation5 + $0x58] sm:$0xff]   ;;  %v3546_v8 = vld [vmem:[#allocation5 + $0x60] sm:$0xff]   ;;  %vm706_vm4 = vcmask 1046532   ;;  %s2779_s18 = sshll.u32 %s3975_s6, 8  ;;  %s2932_s8 = sshll.u32 %s3851_s16, 12 }
  0x5e   : > { %2935 = vmatprep.subr.bf16.mxu0 %v3540_v2  ;;  %3454 = vmatprep.subr.bf16.mxu1 %v3540_v2  ;;  %v3545_v7 = vld [vmem:[#allocation5 + $0x18] sm:$0xff]   ;;  %v3547_v9 = vld [vmem:[#allocation5 + $0x20] sm:$0xff]   ;;  %v3548_v10 = vld [vmem:[#allocation5 + $0x68] sm:$0xff]   ;;  %s4999_s20 = scalar_lea.vmem [#allocation7], %s2779_s18  ;;  %s5084_s4 = scalar_lea.hbm %s5165_s2, %s2932_s8 }
  0x5f   : > { %v3990_v11 = vld [vmem:[%s3979_s11] sm:$0xf]  ;;  %v3993_v12 = vld [vmem:[%s3979_s11 + $0x4] sm:$0xf]  ;;  %v3996_v13 = vld [vmem:[%s3979_s11 + $0x8] sm:$0x1] }
  0x60   : > { %v274_v14 = vshrl.u32 %v3990_v11, 16  ;;  %v277_v15 = vshll.u32 %v3990_v11, 16  ;;  %v283_v16 = vshll.u32 %v3993_v12, 16  ;;  %v287_v17 = vshrl.u32 %v3993_v12, 16  ;;  %v4003_v18 = vld [vmem:[%s3979_s11 + $0x90] sm:$0xf]  ;;  %vm4017_vm2 = vmor %vm270_vm0, %vm271_vm1 }
  0x61   : > { %2936 = vmatpush3.bf16.msra.mxu0 %v3541_v3  ;;  %3462 = vmatpush3.bf16.msra.mxu1 %v3541_v3  ;;  %v3549_v19 = vld [vmem:[#allocation5 + $0x28] sm:$0xff]   ;;  %v3550_v20 = vld [vmem:[#allocation5 + $0x70] sm:$0xff]   ;;  %v293_v21 = vshll.u32 %v3996_v13, 16  ;;  %v4007_v22 = vld [vmem:[%s3979_s11 + $0x94] sm:$0xf]  ;;  %v2781_v29 = vrot.slane %v3990_v11, 9  ;;  %v2799_v61 = vcombine.low %v3990_v11, %v3993_v12 }
  0x62   : > { %2937 = vmatprep.subr.bf16.mxu0 %v3542_v4  ;;  %3455 = vmatprep.subr.bf16.mxu1 %v3542_v4  ;;  %v276_v23 = vrot.slane %v274_v14, 4  ;;  %v279_v24 = vrot.slane %v277_v15, 5  ;;  %v285_v25 = vrot.slane %v283_v16, 5  ;;  %v289_v26 = vrot.slane %v287_v17, 4  ;;  %v254_v27 = vld [vmem:[%s3979_s11 + $0x98] sm:$0x1]  ;;  %vm4150_vm5 = vmor %vm705_vm3, %vm706_vm4 }
  0x63   : > { %v295_v28 = vrot.slane %v293_v21, 5  ;;  %v562_v30 = vshrl.u32 %v4003_v18, 16  ;;  %v565_v31 = vshll.u32 %v4003_v18, 16  ;;  %v3551_v32 = vld [vmem:[#allocation5 + $0x30] sm:$0xff]   ;;  %v571_v35 = vshll.u32 %v4007_v22, 16  ;;  %v3552_v37 = vld [vmem:[#allocation5 + $0x78] sm:$0xff]  }
  0x64   : > { %v280_v33 = vor.u32 %v279_v24, %v276_v23  ;;  %v290_v34 = vor.u32 %v289_v26, %v285_v25  ;;  %v575_v36 = vshrl.u32 %v4007_v22, 16  ;;  %v710_v39 = vrot.slane %v3993_v12, 5  ;;  %v3553_v50 = vld [vmem:[#allocation5 + $0x38] sm:$0xff]   ;;  %v3556_v56 = vld [vmem:[#allocation5 + $0xc0] sm:$0xff]   ;;  %v256_v16 = vld [vmem:[%s3979_s11 + $0xa0] sm:$0xf] }
  0x65   : > { %2938 = vmatpush3.bf16.msra.mxu0 %v3543_v5  ;;  %3463 = vmatpush3.bf16.msra.mxu1 %v3543_v5  ;;  %v564_v40 = vrot.slane %v562_v30, 4  ;;  %v567_v41 = vrot.slane %v565_v31, 5  ;;  %v581_v42 = vshll.u32 %v254_v27, 16  ;;  %v573_v45 = vrot.slane %v571_v35, 5  ;;  %v3557_v58 = vld [vmem:[#allocation5 + $0x140] sm:$0xff]   ;;  %v3560_v24 = vld [vmem:[#allocation5 + $0xc8] sm:$0xff]  }
  0x66   : > { %2939 = vmatprep.subr.bf16.mxu0 %v3544_v6  ;;  %3456 = vmatprep.subr.bf16.mxu1 %v3544_v6  ;;  %v281_v43 = vrot.slane %v280_v33, 4  ;;  %v291_v44 = vrot.slane %v290_v34, 4  ;;  %v577_v46 = vrot.slane %v575_v36, 4  ;;  %v713_v47 = vrot.slane %v3996_v13, 5  ;;  %v4028_v59 = vld [vmem:[%s3979_s11 + $0xc] sm:$0xf] }
  0x67   : > { %v568_v48 = vor.u32 %v567_v41, %v564_v40  ;;  %v583_v49 = vrot.slane %v581_v42, 5  ;;  %v4035_v62 = vld [vmem:[%s3979_s11 + $0x10] sm:$0xf]  ;;  %v4038_v63 = vld [vmem:[%s3979_s11 + $0x14] sm:$0x1]  ;;  %v298_v0 = vshrl.u32 %v4028_v59, 16 }
  0x68   : > { %v286_v51 = vsel %vm4017_vm2, %v281_v43, %v285_v25  ;;  %v296_v52 = vsel %vm4017_vm2, %v291_v44, %v295_v28  ;;  %v578_v53 = vor.u32 %v577_v46, %v573_v45  ;;  %v301_v1 = vshll.u32 %v4028_v59, 16  ;;  %v3558_v3 = vld [vmem:[#allocation5 + $0x80] sm:$0xff]   ;;  %v257_v17 = vld [vmem:[%s3979_s11 + $0xa4] sm:$0x1]  ;;  %s2644_s9 = sshll.u32 %s4999_s20, 4  ;;  %s2626_s5 = scalar_lea.sflag [#allocation4], %s3975_s6  ;;  %s5086_s9 = int_to_ptr.vmem [resolvable:$true] %s2644_s9 }
  0x69   : > { %2940 = vmatpush3.bf16.msra.mxu0 %v3545_v7  ;;  %3464 = vmatpush3.bf16.msra.mxu1 %v3545_v7  ;;  %v2815_v54 = vcombine.low %v286_v51, %v296_v52  ;;  %v569_v55 = vrot.slane %v568_v48, 4  ;;  %v3559_v4 = vld [vmem:[#allocation5 + $0x100] sm:$0xff]   ;;  %v307_v5 = vshll.u32 %v4035_v62, 16  ;;  %v311_v6 = vshrl.u32 %v4035_v62, 16  ;;  %v3564_v40 = vld [vmem:[#allocation5 + $0xd0] sm:$0xff]   ;;  %v3567_v41 = vld [vmem:[#allocation5 + $0x148] sm:$0xff]  }
  0x6a   : > { %2941 = vmatprep.subr.bf16.mxu0 %v3546_v8  ;;  %3457 = vmatprep.subr.bf16.mxu1 %v3546_v8  ;;  %v579_v57 = vrot.slane %v578_v53, 4  ;;  %v317_v7 = vshll.u32 %v4038_v63, 16  ;;  %v255_v8 = vld [vmem:[%s3979_s11 + $0x9c] sm:$0xf]  ;;  %v300_v14 = vrot.slane %v298_v0, 4  ;;  %v303_v15 = vrot.slane %v301_v1, 5 }
  0x6b   : > { %v574_v60 = vsel %vm4017_vm2, %v569_v55, %v573_v45  ;;  %1712 = vmatprep.mubr.bf16.mxu0 %v2815_v54  ;;  %v586_v23 = vshrl.u32 %v255_v8, 16  ;;  %v589_v26 = vshll.u32 %v255_v8, 16  ;;  %v595_v27 = vshll.u32 %v256_v16, 16  ;;  %v3566_v53 = vld [vmem:[#allocation5 + $0xd8] sm:$0xff]   ;;  %v3569_v54 = vld [vmem:[#allocation5 + $0x108] sm:$0xff]   ;;  %s3698_s27 = scalar_lea.vmem %s5086_s9, 4096 }
  0x6c   : > { %v584_v2 = vsel %vm4017_vm2, %v579_v57, %v583_v49  ;;  %v319_v21 = vrot.slane %v317_v7, 5  ;;  %v304_v25 = vor.u32 %v303_v15, %v300_v14  ;;  %v599_v28 = vshrl.u32 %v256_v16, 16  ;;  %v3565_v49 = vld [vmem:[#allocation5 + $0x90] sm:$0xff]   ;;  %v4076_v57 = vld [vmem:[%s3979_s11 + $0x18] sm:$0xf]  ;;  %p3699_p4 = scmp.ne.s32.totalorder %s5086_s9, %s3698_s27  ;;  %s3806_s22 = smov [#allocation7]  }
  0x6d   : > { %2942 = vmatpush3.bf16.msra.mxu0 %v3547_v9  ;;  %3465 = vmatpush3.bf16.msra.mxu1 %v3547_v9  ;;  %v4048_v9 = vcombine.low %v574_v60, %v584_v2  ;;  %v588_v30 = vrot.slane %v586_v23, 4  ;;  %v605_v31 = vshll.u32 %v257_v17, 16  ;;  %v591_v33 = vrot.slane %v589_v26, 5  ;;  %v4082_v60 = vld [vmem:[%s3979_s11 + $0x20] sm:$0x1]  ;;  %s3702_s23 = sshll.u32 %s3806_s22, 4  ;;  %s3703_s23 = int_to_ptr.vmem [resolvable:$false] %s3702_s23 }
  0x6e   : > { %2943 = vmatprep.subr.bf16.mxu0 %v3548_v10  ;;  %3458 = vmatprep.subr.bf16.mxu1 %v3548_v10  ;;  %v4052_v10 = vcombine.low %v4003_v18, %v4007_v22  ;;  %v3561_v18 = vld [vmem:[#allocation5 + $0x88] sm:$0xff]   ;;  %v597_v34 = vrot.slane %v595_v27, 5  ;;  %v601_v35 = vrot.slane %v599_v28, 4  ;;  %v4062_v45 = vrot.slane %v710_v39, 4  ;;  %v260_v15 = vld [vmem:[%s3979_s11 + $0xb0] sm:$0x1]  ;;  %p3700_p6 = pnand %p3699_p4, %p3924_p12  ;;  %p3705_p10 = scmp.lt.s32.totalorder %s5086_s9, %s3703_s23 }
  0x6f   : > { %5194 = vst [vmem:[#allocation14_spill] sm:$0xff] %v4048_v9  ;;  %1808 = vmatprep.mubr.bf16.mxu1 %v4048_v9  ;;  %v592_v43 = vor.u32 %v591_v33, %v588_v30  ;;  %v4068_v48 = vcombine.low %v4028_v59, %v4035_v62  ;;  %v2782_v55 = vrot.slane %v4028_v59, 9  ;;  %v322_v1 = vshrl.u32 %v4076_v57, 16  ;;  %v4272_v59 = vld [vmem:[%s3979_s11 + $0x58] sm:$0xf]  ;;  %s3704_s28 = scalar_lea.vmem %s3703_s23, 8192 }
  0x70   : > { %v602_v44 = vor.u32 %v601_v35, %v597_v34  ;;  %v325_v2 = vshll.u32 %v4076_v57, 16  ;;  %v341_v14 = vshll.u32 %v4082_v60, 16  ;;  %p3701_p8 = pneg %p3700_p6  ;;  %p3706_p11 = scmp.lt.s32.totalorder %s3704_s28, %s3698_s27 }
  0x71   : > { %2944 = vmatpush3.bf16.msra.mxu0 %v3549_v19  ;;  %3466 = vmatpush3.bf16.msra.mxu1 %v3549_v19  ;;  %v309_v19 = vrot.slane %v307_v5, 5  ;;  %v593_v51 = vrot.slane %v592_v43, 4 }
  0x72   : > { %2945 = vmatprep.subr.bf16.mxu0 %v3550_v20  ;;  %3459 = vmatprep.subr.bf16.mxu1 %v3550_v20  ;;  %v313_v20 = vrot.slane %v311_v6, 4  ;;  %v603_v52 = vrot.slane %v602_v44, 4  ;;  %v3568_v6 = vld [vmem:[#allocation5 + $0x98] sm:$0xff]   ;;  %v327_v17 = vrot.slane %v325_v2, 5  ;;  %p3707_p3 = por %p3706_p11, %p3705_p10 }
  0x74   : > { %v314_v22 = vor.u32 %v313_v20, %v309_v19  ;;  %p3708_p7 = pnand %p3707_p3, %p3701_p8 }
  0x75   : > { %2946 = vmatpush3.bf16.msra.mxu0 %v3551_v32  ;;  %3467 = vmatpush3.bf16.msra.mxu1 %v3551_v32  ;;  %v305_v32 = vrot.slane %v304_v25, 4 }
  0x76   : > { %2947 = vmatprep.subr.bf16.mxu0 %v3552_v37  ;;  %3460 = vmatprep.subr.bf16.mxu1 %v3552_v37  ;;  %v315_v36 = vrot.slane %v314_v22, 4  ;;  %v607_v37 = vrot.slane %v605_v31, 5  ;;  %v3572_v22 = vld [vmem:[#allocation5 + $0xe0] sm:$0xff]  }
  0x77   : > { %v310_v42 = vsel %vm4017_vm2, %v305_v32, %v309_v19  ;;  %v629_v32 = vshll.u32 %v260_v15, 16  ;;  %v4133_v15 = vld [vmem:[%s3979_s11 + $0xb8] sm:$0xf] }
  0x78   : > { %v320_v46 = vsel %vm4017_vm2, %v315_v36, %v319_v21  ;;  %v608_v0 = vsel %vm4017_vm2, %v603_v52, %v607_v37  ;;  %v4114_v52 = vld [vmem:[%s3979_s11 + $0x28] sm:$0xf] }
  0x79   : > { %2948 = vmatpush3.bf16.msra.mxu0 %v3553_v50  ;;  %3468 = vmatpush3.bf16.msra.mxu1 %v3553_v50  ;;  %v4070_v50 = vcombine.low %v310_v42, %v320_v46  ;;  %v631_v37 = vrot.slane %v629_v32, 5  ;;  %v3574_v42 = vld [vmem:[#allocation5 + $0xe8] sm:$0xff]  }
  0x7a   : > { %3045 = vmatprep.subr.bf16.mxu1 %v3556_v56  ;;  %3157 = vmatprep.subr.bf16.mxu0 %v3557_v58  ;;  %v4073_v56 = vcombine.low %v255_v8, %v256_v16  ;;  %v4079_v58 = vld [vmem:[%s3979_s11 + $0x1c] sm:$0xf]  ;;  %v324_v16 = vrot.slane %v322_v1, 4 }
  0x7b   : > { %v331_v7 = vshll.u32 %v4079_v58, 16  ;;  %v335_v8 = vshrl.u32 %v4079_v58, 16 }
  0x7c   : > { %1713 = vmatmul.mubr.bf16.vlgmr.msra.gmra.mrb[0].mxu0 %v2799_v61  ;;  %1809 = vmatmul.mubr.bf16.vlgmr.msra.gmra.mrb[0].mxu1 %v4052_v10  ;;  %v598_v61 = vsel %vm4017_vm2, %v593_v51, %v597_v34  ;;  %v328_v26 = vor.u32 %v327_v17, %v324_v16  ;;  %v4111_v51 = vld [vmem:[%s3979_s11 + $0x24] sm:$0xf] }
  0x7d   : > { %3046 = vmatpush3.bf16.msra.mxu1 %v3558_v3  ;;  %3158 = vmatpush3.bf16.msra.mxu0 %v3559_v4  ;;  %v258_v3 = vld [vmem:[%s3979_s11 + $0xa8] sm:$0xf]  ;;  %v259_v4 = vld [vmem:[%s3979_s11 + $0xac] sm:$0xf]  ;;  %v4093_v5 = vcombine.low %v598_v61, %v608_v0  ;;  %v333_v21 = vrot.slane %v331_v7, 5  ;;  %v337_v23 = vrot.slane %v335_v8, 4 }
  0x7e   : > { %3047 = vmatprep.subr.bf16.mxu1 %v3560_v24  ;;  %3159 = vmatprep.subr.bf16.mxu0 %v3567_v41  ;;  %v610_v19 = vshrl.u32 %v258_v3, 16  ;;  %v613_v20 = vshll.u32 %v258_v3, 16  ;;  %v343_v24 = vrot.slane %v341_v14, 5  ;;  %v619_v25 = vshll.u32 %v259_v4, 16  ;;  %v3573_v41 = vld [vmem:[#allocation5 + $0xa0] sm:$0xff]   ;;  %v3575_v61 = vld [vmem:[#allocation5 + $0xa8] sm:$0xff]  }
  0x7f   : > { %1720 = vmatprep.mubr.bf16.mxu0 %v4070_v50  ;;  %5195 = vst [vmem:[#allocation15_spill] sm:$0xff] %v4093_v5  ;;  %1816 = vmatprep.mubr.bf16.mxu1 %v4093_v5  ;;  %v338_v30 = vor.u32 %v337_v23, %v333_v21  ;;  %v329_v33 = vrot.slane %v328_v26, 4  ;;  %v4119_v0 = vld [vmem:[%s3979_s11 + $0x2c] sm:$0x1]  ;;  %v346_v1 = vshrl.u32 %v4111_v51, 16  ;;  %v349_v2 = vshll.u32 %v4111_v51, 16 }
  0x80   : > { %v612_v27 = vrot.slane %v610_v19, 4  ;;  %v615_v28 = vrot.slane %v613_v20, 5  ;;  %v621_v31 = vrot.slane %v619_v25, 5  ;;  %v359_v8 = vshrl.u32 %v4114_v52, 16  ;;  %v4130_v14 = vld [vmem:[%s3979_s11 + $0xb4] sm:$0xf] }
  0x81   : > { %3048 = vmatpush3.bf16.msra.mxu1 %v3561_v18  ;;  %3160 = vmatpush3.bf16.msra.mxu0 %v3569_v54  ;;  %v623_v18 = vshrl.u32 %v259_v4, 16  ;;  %v339_v36 = vrot.slane %v338_v30, 4  ;;  %v334_v43 = vsel %vm4017_vm2, %v329_v33, %v333_v21  ;;  %v3578_v16 = vld [vmem:[#allocation5 + $0xf0] sm:$0xff]   ;;  %v348_v17 = vrot.slane %v346_v1, 4  ;;  %v263_v23 = vld [vmem:[%s3979_s11 + $0xbc] sm:$0x1] }
  0x82   : > { %3049 = vmatprep.subr.bf16.mxu1 %v3564_v40  ;;  %v616_v34 = vor.u32 %v615_v28, %v612_v27  ;;  %v4104_v40 = vcombine.low %v4076_v57, %v4079_v58  ;;  %v351_v19 = vrot.slane %v349_v2, 5  ;;  %v365_v21 = vshll.u32 %v4119_v0, 16  ;;  %v3581_v28 = vld [vmem:[#allocation5 + $0x110] sm:$0xff]   ;;  %v3583_v2 = vld [vmem:[#allocation5 + $0xb8] sm:$0xff]  }
  0x83   : > { %v625_v35 = vrot.slane %v623_v18, 4  ;;  %v344_v54 = vsel %vm4017_vm2, %v339_v36, %v343_v24  ;;  %v361_v25 = vrot.slane %v359_v8, 4  ;;  %v634_v26 = vshrl.u32 %v4130_v14, 16  ;;  %v3580_v36 = vld [vmem:[#allocation5 + $0xb0] sm:$0xff]  }
  0x84   : > { %1721 = vmatmul.mubr.bf16.gmra.mrb[4].mxu0 %v4068_v48  ;;  %1817 = vmatmul.mubr.bf16.gmra.mrb[4].mxu1 %v4073_v56  ;;  %v617_v44 = vrot.slane %v616_v34, 4  ;;  %v637_v27 = vshll.u32 %v4130_v14, 16  ;;  %v367_v30 = vrot.slane %v365_v21, 5  ;;  %v4161_v8 = vcombine.low %v4111_v51, %v4114_v52  ;;  %v4176_v21 = vld [vmem:[%s3979_s11 + $0x34] sm:$0xf] }
  0x85   : > { %3050 = vmatpush3.bf16.msra.mxu1 %v3565_v49  ;;  %v626_v46 = vor.u32 %v625_v35, %v621_v31  ;;  %v4108_v49 = vcombine.low %v258_v3, %v259_v4  ;;  %v355_v3 = vshll.u32 %v4114_v52, 16  ;;  %v4124_v4 = vcombine.low %v334_v43, %v344_v54  ;;  %v3582_v43 = vld [vmem:[#allocation5 + $0xf8] sm:$0xff]  }
  0x86   : > { %3051 = vmatprep.subr.bf16.mxu1 %v3566_v53  ;;  %v3579_v53 = vld [vmem:[#allocation5 + $0x150] sm:$0xff]   ;;  %v636_v33 = vrot.slane %v634_v26, 4  ;;  %v639_v34 = vrot.slane %v637_v27, 5  ;;  %v647_v35 = vshrl.u32 %v4133_v15, 16  ;;  %5199 = vst [vmem:[#allocation17_spill] sm:$0xff] %v4161_v8  ;;  %v383_v27 = vshrl.u32 %v4176_v21, 16 }
  0x87   : > { %v627_v7 = vrot.slane %v626_v46, 4  ;;  %3161 = vmatprep.subr.bf16.mxu0 %v3579_v53  ;;  %v357_v20 = vrot.slane %v355_v3, 5  ;;  %1728 = vmatprep.mubr.bf16.mxu0 %v4124_v4 }
  0x88   : > { %3162 = vmatpush3.bf16.msra.mxu0 %v3581_v28  ;;  %v640_v53 = vor.u32 %v639_v34, %v636_v33  ;;  %v649_v54 = vrot.slane %v647_v35, 4  ;;  %v3591_v35 = vld [vmem:[#allocation5 + $0x160] sm:$0xff]  }
  0x89   : > { %3052 = vmatpush3.bf16.msra.mxu1 %v3568_v6  ;;  %v622_v6 = vsel %vm4017_vm2, %v617_v44, %v621_v31  ;;  %v632_v24 = vsel %vm4017_vm2, %v627_v7, %v631_v37  ;;  %v643_v31 = vshll.u32 %v4133_v15, 16  ;;  %v362_v32 = vor.u32 %v361_v25, %v357_v20  ;;  %v4181_v25 = vld [vmem:[%s3979_s11 + $0x38] sm:$0x1] }
  0x8a   : > { %3053 = vmatprep.subr.bf16.mxu1 %v3572_v22  ;;  %v4142_v18 = vcombine.low %v622_v6, %v632_v24  ;;  %v352_v22 = vor.u32 %v351_v19, %v348_v17  ;;  %v641_v6 = vrot.slane %v640_v53, 4  ;;  %v3585_v17 = vld [vmem:[#allocation5 + $0x1c0] sm:$0xff]   ;;  %v389_v28 = vshll.u32 %v4181_v25, 16 }
  0x8b   : > { %v363_v46 = vrot.slane %v362_v32, 4  ;;  %v4202_v32 = vcombine.low %v4130_v14, %v4133_v15 }
  0x8c   : > { %5196 = vst [vmem:[#allocation16_spill] sm:$0xff] %v4142_v18  ;;  %1729 = vmatmul.mubr.bf16.gmra.mrb[8].mxu0 %v4104_v40  ;;  %1824 = vmatprep.mubr.bf16.mxu1 %v4142_v18  ;;  %v353_v37 = vrot.slane %v352_v22, 4  ;;  %v4195_v22 = vsel %vm4150_vm5, %v2781_v29, %v710_v39  ;;  %v385_v39 = vrot.slane %v383_v27, 4  ;;  %v391_v34 = vrot.slane %v389_v28, 5  ;;  %v4241_v28 = vld [vmem:[%s3979_s11 + $0x50] sm:$0x1] }
  0x8d   : > { %3054 = vmatpush3.bf16.msra.mxu1 %v3573_v41  ;;  %v645_v41 = vrot.slane %v643_v31, 5  ;;  %v368_v3 = vsel %vm4017_vm2, %v363_v46, %v367_v30  ;;  %v3588_v30 = vld [vmem:[#allocation5 + $0x118] sm:$0xff]   ;;  %v717_v27 = vrot.slane %v4035_v62, 5  ;;  %v4365_v18 = vld [vmem:[%s3979_s11 + $0x7c] sm:$0xf] }
  0x8e   : > { %3055 = vmatprep.subr.bf16.mxu1 %v3574_v42  ;;  %v653_v42 = vshll.u32 %v263_v23, 16  ;;  %1825 = vmatmul.mubr.bf16.gmra.mrb[8].mxu1 %v4108_v49 }
  0x8f   : > { %v650_v7 = vor.u32 %v649_v54, %v645_v41  ;;  %v646_v23 = vsel %vm4017_vm2, %v641_v6, %v645_v41  ;;  %v4213_v41 = vld [vmem:[%s3979_s11 + $0x40] sm:$0xf]  ;;  %v4230_v6 = vld [vmem:[%s3979_s11 + $0x48] sm:$0xf] }
  0x90   : > { %v655_v1 = vrot.slane %v653_v42, 5  ;;  %v403_v54 = vshll.u32 %v4213_v41, 16 }
  0x91   : > { %3056 = vmatpush3.bf16.msra.mxu1 %v3575_v61  ;;  %v358_v61 = vsel %vm4017_vm2, %v353_v37, %v357_v20  ;;  %v4173_v20 = vld [vmem:[%s3979_s11 + $0x30] sm:$0xf]  ;;  %v651_v24 = vrot.slane %v650_v7, 4  ;;  %v4210_v37 = vld [vmem:[%s3979_s11 + $0x3c] sm:$0xf] }
  0x92   : > { %3057 = vmatprep.subr.bf16.mxu1 %v3578_v16  ;;  %v4168_v16 = vsel %vm4150_vm5, %v4062_v45, %v713_v47  ;;  %v4170_v19 = vcombine.low %v358_v61, %v368_v3  ;;  %v370_v13 = vshrl.u32 %v4173_v20, 16  ;;  %v373_v26 = vshll.u32 %v4173_v20, 16  ;;  %v3587_v47 = vld [vmem:[#allocation5 + $0x158] sm:$0xff]  }
  0x93   : > { %v379_v45 = vshll.u32 %v4176_v21, 16  ;;  %v656_v31 = vsel %vm4017_vm2, %v651_v24, %v655_v1  ;;  %3163 = vmatprep.subr.bf16.mxu0 %v3587_v47  ;;  %v2831_v15 = vcombine.low %v4195_v22, %v4168_v16  ;;  %v394_v46 = vshrl.u32 %v4210_v37, 16  ;;  %v4235_v24 = vld [vmem:[%s3979_s11 + $0x4c] sm:$0xf] }
  0x94   : > { %1736 = vmatprep.mubr.bf16.mxu0 %v4170_v19  ;;  %v372_v33 = vrot.slane %v370_v13, 4  ;;  %v375_v12 = vrot.slane %v373_v26, 5  ;;  %v4204_v11 = vcombine.low %v646_v23, %v656_v31  ;;  %3164 = vmatpush3.bf16.msra.mxu0 %v3588_v30  ;;  %v397_v53 = vshll.u32 %v4210_v37, 16  ;;  %v3586_v26 = vld [vmem:[#allocation5 + $0x180] sm:$0xff]  }
  0x95   : > { %3058 = vmatpush3.bf16.msra.mxu1 %v3580_v36  ;;  %1737 = vmatmul.mubr.bf16.gmra.mrb[12].mxu0 %v4161_v8  ;;  %v381_v29 = vrot.slane %v379_v45, 5  ;;  %v4225_v1 = vcombine.low %v4173_v20, %v4176_v21  ;;  %v405_v23 = vrot.slane %v403_v54, 5  ;;  %v720_v31 = vrot.slane %v4038_v63, 5  ;;  %v3594_v54 = vld [vmem:[#allocation5 + $0x188] sm:$0xff]  }
  0x96   : > { %3059 = vmatprep.subr.bf16.mxu1 %v3582_v43  ;;  %5200 = vst [vmem:[#allocation18_spill] sm:$0xff] %v4204_v11  ;;  %v376_v36 = vor.u32 %v375_v12, %v372_v33  ;;  %1832 = vmatprep.mubr.bf16.mxu1 %v4204_v11  ;;  %v4217_v43 = vld [vmem:[%s3979_s11 + $0x44] sm:$0x1]  ;;  %v399_v16 = vrot.slane %v397_v53, 5  ;;  %v418_v33 = vshrl.u32 %v4230_v6, 16  ;;  %v427_v62 = vshll.u32 %v4235_v24, 16 }
  0x97   : > { %v386_v14 = vor.u32 %v385_v39, %v381_v29  ;;  %3165 = vmatprep.subr.bf16.mxu0 %v3591_v35  ;;  %1833 = vmatmul.mubr.bf16.gmra.mrb[12].mxu1 %v4202_v32  ;;  %5201 = vst [vmem:[#allocation19_spill] sm:$0xff] %v4225_v1  ;;  %v413_v3 = vshll.u32 %v4217_v43, 16  ;;  %v3592_v12 = vld [vmem:[#allocation5 + $0x1c8] sm:$0xff]   ;;  %v719_v39 = vrot.slane %v717_v27, 4  ;;  %v4254_v63 = vcombine.low %v4210_v37, %v4213_v41 }
  0x98   : > { %v377_v42 = vrot.slane %v376_v36, 4  ;;  %1873 = vmatprep.mubr.bf16.mxu1 %v4068_v48  ;;  %v3593_v48 = vld [vmem:[#allocation5 + $0x120] sm:$0xff]   ;;  %v420_v36 = vrot.slane %v418_v33, 4  ;;  %v437_v53 = vshll.u32 %v4241_v28, 16 }
  0x99   : > { %3060 = vmatpush3.bf16.msra.mxu1 %v3583_v2  ;;  %v387_v61 = vrot.slane %v386_v14, 4  ;;  %v407_v2 = vshrl.u32 %v4213_v41, 16  ;;  %v415_v45 = vrot.slane %v413_v3, 5  ;;  %3166 = vmatpush3.bf16.msra.mxu0 %v3593_v48  ;;  %v431_v14 = vshrl.u32 %v4235_v24, 16  ;;  %5202 = vst [vmem:[#allocation20_spill] sm:$0xff] %v4254_v63 }
  0x9a   : > { %3269 = vmatprep.subr.bf16.mxu1 %v3585_v17  ;;  %v382_v7 = vsel %vm4017_vm2, %v377_v42, %v381_v29  ;;  %v396_v17 = vrot.slane %v394_v46, 4  ;;  %v718_v3 = vsel %vm4150_vm5, %v2782_v55, %v717_v27 }
  0x9b   : > { %v392_v13 = vsel %vm4017_vm2, %v387_v61, %v391_v34  ;;  %v409_v47 = vrot.slane %v407_v2, 4  ;;  %v421_v34 = vshll.u32 %v4230_v6, 16  ;;  %v3596_v61 = vld [vmem:[#allocation5 + $0x168] sm:$0xff]  }
  0x9c   : > { %v4243_v22 = vcombine.low %v382_v7, %v392_v13  ;;  %v400_v30 = vor.u32 %v399_v16, %v396_v17  ;;  %v429_v7 = vrot.slane %v427_v62, 5  ;;  %v433_v17 = vrot.slane %v431_v14, 4  ;;  %3167 = vmatprep.subr.bf16.mxu0 %v3596_v61 }
  0x9d   : > { %v410_v29 = vor.u32 %v409_v47, %v405_v23  ;;  %v423_v46 = vrot.slane %v421_v34, 5  ;;  %v439_v13 = vrot.slane %v437_v53, 5  ;;  %v3597_v47 = vld [vmem:[#allocation5 + $0x128] sm:$0xff]   ;;  %v455_v14 = vshrl.u32 %v4272_v59, 16 }
  0x9e   : > { %1744 = vmatprep.mubr.bf16.mxu0 %v4243_v22  ;;  %v401_v35 = vrot.slane %v400_v30, 4  ;;  %v434_v27 = vor.u32 %v433_v17, %v429_v7  ;;  %v724_v30 = vrot.slane %v4079_v58, 5  ;;  %3168 = vmatpush3.bf16.msra.mxu0 %v3597_v47  ;;  %v451_v58 = vshll.u32 %v4272_v59, 16 }
  0x9f   : > { %1745 = vmatmul.mubr.bf16.gmra.mrb[16].mxu0 %v4225_v1  ;;  %v411_v42 = vrot.slane %v410_v29, 4  ;;  %1874 = vmatmul.mubr.bf16.vlgmr.msra.gmra.mrb[16].mxu1 %v2831_v15  ;;  %v721_v15 = vsel %vm4150_vm5, %v719_v39, %v720_v31  ;;  %v424_v48 = vor.u32 %v423_v46, %v420_v36  ;;  %v727_v31 = vrot.slane %v4082_v60, 5 }
  0xa0   : > { %v406_v2 = vsel %vm4017_vm2, %v401_v35, %v405_v23  ;;  %3270 = vmatpush3.bf16.msra.mxu1 %v3586_v26  ;;  %1881 = vmatprep.mubr.bf16.mxu1 %v4104_v40  ;;  %v4269_v23 = vld [vmem:[%s3979_s11 + $0x54] sm:$0xf]  ;;  %v2783_v26 = vrot.slane %v4076_v57, 9  ;;  %v4285_v34 = vcombine.low %v718_v3, %v721_v15  ;;  %v435_v57 = vrot.slane %v434_v27, 4  ;;  %v3600_v3 = vld [vmem:[#allocation5 + $0x190] sm:$0xff]  }
  0xa1   : > { %v416_v16 = vsel %vm4017_vm2, %v411_v42, %v415_v45  ;;  %3271 = vmatprep.subr.bf16.mxu1 %v3592_v12  ;;  %v4279_v45 = vld [vmem:[%s3979_s11 + $0x5c] sm:$0x1]  ;;  %v425_v33 = vrot.slane %v424_v48, 4  ;;  %v442_v29 = vshrl.u32 %v4269_v23, 16  ;;  %v445_v39 = vshll.u32 %v4269_v23, 16  ;;  %v3599_v12 = vld [vmem:[#allocation5 + $0x1d0] sm:$0xff]  }
  0xa2   : > { %v4274_v55 = vcombine.low %v406_v2, %v416_v16  ;;  %v726_v35 = vrot.slane %v724_v30, 4  ;;  %v440_v42 = vsel %vm4017_vm2, %v435_v57, %v439_v13  ;;  %v725_v46 = vsel %vm4150_vm5, %v2783_v26, %v724_v30  ;;  %v4297_v2 = vld [vmem:[%s3979_s11 + $0x60] sm:$0xf]  ;;  %v4305_v15 = vld [vmem:[%s3979_s11 + $0x64] sm:$0xf] }
  0xa3   : > { %v430_v36 = vsel %vm4017_vm2, %v425_v33, %v429_v7  ;;  %v444_v60 = vrot.slane %v442_v29, 4  ;;  %v447_v62 = vrot.slane %v445_v39, 5  ;;  %v453_v53 = vrot.slane %v451_v58, 5  ;;  %v3602_v48 = vld [vmem:[#allocation5 + $0x170] sm:$0xff]   ;;  %v3605_v39 = vld [vmem:[#allocation5 + $0x1d8] sm:$0xff]  }
  0xa4   : > { %1752 = vmatprep.mubr.bf16.mxu0 %v4274_v55  ;;  %3272 = vmatpush3.bf16.msra.mxu1 %v3594_v54  ;;  %v461_v61 = vshll.u32 %v4279_v45, 16  ;;  %v4300_v54 = vcombine.low %v430_v36, %v440_v42  ;;  %v728_v7 = vsel %vm4150_vm5, %v726_v35, %v727_v31  ;;  %v457_v16 = vrot.slane %v455_v14, 4  ;;  %v4313_v27 = vld [vmem:[%s3979_s11 + $0x68] sm:$0x1]  ;;  %v4328_v42 = vld [vmem:[%s3979_s11 + $0x6c] sm:$0xf] }
  0xa5   : > { %3273 = vmatprep.subr.bf16.mxu1 %v3599_v12  ;;  %v448_v17 = vor.u32 %v447_v62, %v444_v60  ;;  %v4310_v13 = vcombine.low %v4230_v6, %v4235_v24  ;;  %v3603_v26 = vld [vmem:[#allocation5 + $0x130] sm:$0xff]   ;;  %v731_v31 = vrot.slane %v4114_v52, 5  ;;  %v466_v29 = vshrl.u32 %v4297_v2, 16  ;;  %3169 = vmatprep.subr.bf16.mxu0 %v3602_v48  ;;  %v3606_v36 = vld [vmem:[#allocation5 + $0x198] sm:$0xff]  }
  0xa6   : > { %v463_v47 = vrot.slane %v461_v61, 5  ;;  %v458_v33 = vor.u32 %v457_v16, %v453_v53  ;;  %v4319_v57 = vcombine.low %v725_v46, %v728_v7  ;;  %v2784_v35 = vrot.slane %v4111_v51, 9  ;;  %3170 = vmatpush3.bf16.msra.mxu0 %v3603_v26  ;;  %v3607_v51 = vld [vmem:[#allocation5 + $0x178] sm:$0xff]  }
  0xa7   : > { %1753 = vmatmul.mubr.bf16.gmra.mrb[20].mxu0 %v4254_v63  ;;  %1882 = vmatmul.mubr.bf16.gmra.mrb[20].mxu1 %v4285_v34  ;;  %v449_v30 = vrot.slane %v448_v17, 4  ;;  %v469_v58 = vshll.u32 %v4297_v2, 16  ;;  %v475_v12 = vshll.u32 %v4305_v15, 16  ;;  %v468_v52 = vrot.slane %v466_v29, 4  ;;  %v4333_v17 = vld [vmem:[%s3979_s11 + $0x70] sm:$0xf] }
  0xa8   : > { %1760 = vmatprep.mubr.bf16.mxu0 %v4300_v54  ;;  %1889 = vmatprep.mubr.bf16.mxu1 %v4161_v8  ;;  %v459_v62 = vrot.slane %v458_v33, 4  ;;  %v479_v14 = vshrl.u32 %v4305_v15, 16  ;;  %v734_v46 = vrot.slane %v4119_v0, 5  ;;  %v733_v16 = vrot.slane %v731_v31, 4  ;;  %v3610_v33 = vld [vmem:[#allocation5 + $0x1e0] sm:$0xff]  }
  0xa9   : > { %3274 = vmatpush3.bf16.msra.mxu1 %v3600_v3  ;;  %v454_v60 = vsel %vm4017_vm2, %v449_v30, %v453_v53  ;;  %v471_v61 = vrot.slane %v469_v58, 5  ;;  %v477_v7 = vrot.slane %v475_v12, 5  ;;  %v485_v3 = vshll.u32 %v4313_v27, 16  ;;  %3171 = vmatprep.subr.bf16.mxu0 %v3607_v51  ;;  %v3608_v30 = vld [vmem:[#allocation5 + $0x138] sm:$0xff]  }
  0xaa   : > { %3275 = vmatprep.subr.bf16.mxu1 %v3605_v39  ;;  %v464_v53 = vsel %vm4017_vm2, %v459_v62, %v463_v47  ;;  %v481_v48 = vrot.slane %v479_v14, 4  ;;  %v732_v0 = vsel %vm4150_vm5, %v2784_v35, %v731_v31  ;;  %v2785_v12 = vrot.slane %v4173_v20, 9  ;;  %v4345_v14 = vld [vmem:[#allocation5 + $0x200] sm:$0xff]   ;;  %3172 = vmatpush3.bf16.msra.mxu0 %v3608_v30 }
  0xab   : > { %v4337_v26 = vcombine.low %v454_v60, %v464_v53  ;;  %v472_v29 = vor.u32 %v471_v61, %v468_v52  ;;  %v487_v39 = vrot.slane %v485_v3, 5  ;;  %v738_v47 = vrot.slane %v4176_v21, 5  ;;  %v4350_v35 = vld [vmem:[%s3979_s11 + $0x74] sm:$0x1]  ;;  %v4360_v3 = vld [vmem:[%s3979_s11 + $0x78] sm:$0xf]  ;;  %3405 = vmatprep.subr.bf16.mxu0 %v4345_v14 }
  0xac   : > { %v482_v58 = vor.u32 %v481_v48, %v477_v7  ;;  %v490_v62 = vshrl.u32 %v4328_v42, 16  ;;  %v499_v20 = vshll.u32 %v4333_v17, 16  ;;  %v503_v21 = vshrl.u32 %v4333_v17, 16  ;;  %v3612_v53 = vld [vmem:[#allocation5 + $0x1a0] sm:$0xff]  }
  0xad   : > { %3276 = vmatpush3.bf16.msra.mxu1 %v3606_v36  ;;  %v473_v31 = vrot.slane %v472_v29, 4  ;;  %v493_v36 = vshll.u32 %v4328_v42, 16  ;;  %v735_v60 = vsel %vm4150_vm5, %v733_v16, %v734_v46  ;;  %v741_v51 = vrot.slane %v4181_v25, 5  ;;  %v3613_v46 = vld [vmem:[#allocation5 + $0x1e8] sm:$0xff]  }
  0xae   : > { %3277 = vmatprep.subr.bf16.mxu1 %v3610_v33  ;;  %v483_v52 = vrot.slane %v482_v58, 4  ;;  %v492_v61 = vrot.slane %v490_v62, 4  ;;  %v501_v29 = vrot.slane %v499_v20, 5  ;;  %v505_v11 = vrot.slane %v503_v21, 4  ;;  %v4380_v21 = vld [vmem:[%s3979_s11 + $0x80] sm:$0x1] }
  0xaf   : > { %1761 = vmatmul.mubr.bf16.gmra.mrb[24].mxu0 %v4310_v13  ;;  %1890 = vmatmul.mubr.bf16.gmra.mrb[24].mxu1 %v4319_v57  ;;  %v478_v48 = vsel %vm4017_vm2, %v473_v31, %v477_v7  ;;  %v495_v33 = vrot.slane %v493_v36, 5  ;;  %v4370_v25 = vcombine.low %v4269_v23, %v4272_v59  ;;  %v740_v30 = vrot.slane %v738_v47, 4 }
  0xb0   : > { %1768 = vmatprep.mubr.bf16.mxu0 %v4337_v26  ;;  %1897 = vmatprep.mubr.bf16.mxu1 %v4225_v1  ;;  %v488_v16 = vsel %vm4017_vm2, %v483_v52, %v487_v39  ;;  %v509_v58 = vshll.u32 %v4350_v35, 16  ;;  %v4375_v7 = vcombine.low %v732_v0, %v735_v60  ;;  %v506_v36 = vor.u32 %v505_v11, %v501_v29 }
  0xb1   : > { %3278 = vmatpush3.bf16.msra.mxu1 %v3612_v53  ;;  %v4377_v62 = vcombine.low %v478_v48, %v488_v16  ;;  %v496_v31 = vor.u32 %v495_v33, %v492_v61  ;;  %v514_v1 = vshrl.u32 %v4360_v3, 16  ;;  %v517_v39 = vshll.u32 %v4360_v3, 16  ;;  %v3615_v61 = vld [vmem:[#allocation5 + $0x1a8] sm:$0xff]  }
  0xb2   : > { %3279 = vmatprep.subr.bf16.mxu1 %v3613_v46  ;;  %v511_v20 = vrot.slane %v509_v58, 5  ;;  %v507_v9 = vrot.slane %v506_v36, 4  ;;  %v739_v0 = vsel %vm4150_vm5, %v2785_v12, %v738_v47  ;;  %v745_v60 = vrot.slane %v4213_v41, 5  ;;  %v4396_v12 = vld [vmem:[%s3979_s11 + $0x84] sm:$0xf] }
  0xb3   : > { %v497_v5 = vrot.slane %v496_v31, 4  ;;  %v523_v11 = vshll.u32 %v4365_v18, 16  ;;  %v527_v52 = vshrl.u32 %v4365_v18, 16  ;;  %v742_v53 = vsel %vm4150_vm5, %v740_v30, %v741_v51  ;;  %v4404_v31 = vld [vmem:[%s3979_s11 + $0x88] sm:$0xf] }
  0xb4   : > { %v2786_v48 = vrot.slane %v4210_v37, 9  ;;  %v516_v33 = vrot.slane %v514_v1, 4  ;;  %v519_v46 = vrot.slane %v517_v39, 5  ;;  %v512_v47 = vsel %vm4017_vm2, %v507_v9, %v511_v20  ;;  %v3616_v30 = vld [vmem:[#allocation5 + $0x1f0] sm:$0xff]  }
  0xb5   : > { %v502_v41 = vsel %vm4017_vm2, %v497_v5, %v501_v29  ;;  %v525_v16 = vrot.slane %v523_v11, 5  ;;  %v529_v58 = vrot.slane %v527_v52, 4  ;;  %3280 = vmatpush3.bf16.msra.mxu1 %v3615_v61  ;;  %v4408_v37 = vcombine.low %v4297_v2, %v4305_v15  ;;  %v4415_v9 = vld [vmem:[%s3979_s11 + $0x8c] sm:$0x1] }
  0xb6   : > { %v520_v1 = vor.u32 %v519_v46, %v516_v33  ;;  %v533_v51 = vshll.u32 %v4380_v21, 16  ;;  %v4411_v36 = vcombine.low %v739_v0, %v742_v53  ;;  %v747_v39 = vrot.slane %v745_v60, 4  ;;  %3281 = vmatprep.subr.bf16.mxu1 %v3616_v30  ;;  %v3618_v0 = vld [vmem:[#allocation5 + $0x1b0] sm:$0xff]  }
  0xb7   : > { %1769 = vmatmul.mubr.bf16.gmra.mrb[28].mxu0 %v4370_v25  ;;  %1898 = vmatmul.mubr.bf16.gmra.mrb[28].mxu1 %v4375_v7  ;;  %v748_v5 = vrot.slane %v4217_v43, 5  ;;  %v530_v29 = vor.u32 %v529_v58, %v525_v16  ;;  %v4417_v20 = vcombine.low %v502_v41, %v512_v47  ;;  %v538_v52 = vshrl.u32 %v4396_v12, 16  ;;  %v3619_v58 = vld [vmem:[#allocation5 + $0x1f8] sm:$0xff]  }
  0xb8   : > { %1776 = vmatprep.mubr.bf16.mxu0 %v4377_v62  ;;  %1905 = vmatprep.mubr.bf16.mxu1 %v4254_v63  ;;  %v521_v11 = vrot.slane %v520_v1, 4  ;;  %v541_v61 = vshll.u32 %v4396_v12, 16  ;;  %v535_v46 = vrot.slane %v533_v51, 5  ;;  %v547_v63 = vshll.u32 %v4404_v31, 16 }
  0xb9   : > { %v531_v33 = vrot.slane %v530_v29, 4  ;;  %v540_v53 = vrot.slane %v538_v52, 4  ;;  %v551_v43 = vshrl.u32 %v4404_v31, 16  ;;  %v752_v41 = vrot.slane %v4235_v24, 5  ;;  %3282 = vmatpush3.bf16.msra.mxu1 %v3618_v0 }
  0xba   : > { %v543_v8 = vrot.slane %v541_v61, 5  ;;  %v549_v47 = vrot.slane %v547_v63, 5  ;;  %v746_v1 = vsel %vm4150_vm5, %v2786_v48, %v745_v60  ;;  %v749_v51 = vsel %vm4150_vm5, %v747_v39, %v748_v5  ;;  %3283 = vmatprep.subr.bf16.mxu1 %v3619_v58  ;;  %v3621_v61 = vld [vmem:[#allocation5 + $0x1b8] sm:$0xff]  }
  0xbb   : > { %v553_v30 = vrot.slane %v551_v43, 4  ;;  %v557_v29 = vshll.u32 %v4415_v9, 16  ;;  %v526_v24 = vsel %vm4017_vm2, %v521_v11, %v525_v16  ;;  %v536_v63 = vsel %vm4017_vm2, %v531_v33, %v535_v46 }
  0xbc   : > { %v544_v52 = vor.u32 %v543_v8, %v540_v53  ;;  %v4439_v60 = vcombine.low %v4328_v42, %v4333_v17  ;;  %v4441_v48 = vcombine.low %v746_v1, %v749_v51  ;;  %v2787_v39 = vrot.slane %v4230_v6, 9 }
  0xbd   : > { %v554_v0 = vor.u32 %v553_v30, %v549_v47  ;;  %3284 = vmatpush3.bf16.msra.mxu1 %v3621_v61  ;;  %v4444_v5 = vcombine.low %v526_v24, %v536_v63  ;;  %v754_v43 = vrot.slane %v752_v41, 4  ;;  %v755_v16 = vrot.slane %v4241_v28, 5 }
  0xbe   : > { %v559_v11 = vrot.slane %v557_v29, 5  ;;  %v545_v33 = vrot.slane %v544_v52, 4  ;;  %v753_v46 = vsel %vm4150_vm5, %v2787_v39, %v752_v41  ;;  %v759_v58 = vrot.slane %v4272_v59, 5 }
  0xbf   : > { %1777 = vmatmul.mubr.bf16.gmra.mrb[32].mxu0 %v4408_v37  ;;  %1906 = vmatmul.mubr.bf16.gmra.mrb[32].mxu1 %v4411_v36  ;;  %v555_v8 = vrot.slane %v554_v0, 4  ;;  %v756_v6 = vsel %vm4150_vm5, %v754_v43, %v755_v16  ;;  %v4462_v1 = vcombine.low %v4360_v3, %v4365_v18  ;;  %v2788_v30 = vrot.slane %v4269_v23, 9 }
  0xc0   : > { %1784 = vmatprep.mubr.bf16.mxu0 %v4417_v20  ;;  %1913 = vmatprep.mubr.bf16.mxu1 %v4310_v13  ;;  %v550_v28 = vsel %vm4017_vm2, %v545_v33, %v549_v47  ;;  %v4464_v51 = vcombine.low %v753_v46, %v756_v6  ;;  %v761_v29 = vrot.slane %v759_v58, 4  ;;  %v762_v24 = vrot.slane %v4279_v45, 5  ;;  %v3614_v33 = vld [vmem:[#allocation5 + $0x208] sm:$0xff]   ;;  %v3620_v6 = vld [vmem:[#allocation5 + $0x218] sm:$0xff]  }
  0xc1   : > { %v560_v53 = vsel %vm4017_vm2, %v555_v8, %v559_v11  ;;  %v760_v59 = vsel %vm4150_vm5, %v2788_v30, %v759_v58  ;;  %v766_v63 = vrot.slane %v4305_v15, 5  ;;  %v4481_v23 = vcombine.low %v4396_v12, %v4404_v31 }
  0xc2   : > { %v4466_v41 = vcombine.low %v550_v28, %v560_v53  ;;  %v763_v47 = vsel %vm4150_vm5, %v761_v29, %v762_v24  ;;  %v2789_v52 = vrot.slane %v4297_v2, 9  ;;  %v769_v0 = vrot.slane %v4313_v27, 5  ;;  %v3624_v24 = vld [vmem:[#allocation5 + $0x228] sm:$0xff]  }
  0xc3   : > { %v4483_v45 = vcombine.low %v760_v59, %v763_v47  ;;  %v768_v61 = vrot.slane %v766_v63, 4  ;;  %v773_v43 = vrot.slane %v4333_v17, 5  ;;  %v2790_v27 = vrot.slane %v4328_v42, 9  ;;  %v3625_v47 = vld [vmem:[#allocation5 + $0x230] sm:$0xff]  }
  0xc4   : > { %v767_v15 = vsel %vm4150_vm5, %v2789_v52, %v766_v63  ;;  %v776_v11 = vrot.slane %v4350_v35, 5  ;;  %v780_v17 = vrot.slane %v4365_v18, 5  ;;  %v3617_v35 = vld [vmem:[#allocation5 + $0x210] sm:$0xff]   ;;  %v783_v46 = vrot.slane %v4380_v21, 5  ;;  %v3623_v21 = vld [vmem:[#allocation5 + $0x220] sm:$0xff]  }
  0xc5   : > { %v770_v39 = vsel %vm4150_vm5, %v768_v61, %v769_v0  ;;  %v775_v16 = vrot.slane %v773_v43, 4  ;;  %v2792_v58 = vrot.slane %v4396_v12, 9  ;;  %v790_v29 = vrot.slane %v4415_v9, 5  ;;  %v3628_v9 = vld [vmem:[%s3979_s11 + $0x94] sm:$0xf] }
  0xc6   : > { %v4496_v2 = vcombine.low %v767_v15, %v770_v39  ;;  %v794_v59 = vrot.slane %v3628_v9, 5  ;;  %v3629_v52 = vld [vmem:[%s3979_s11 + $0x90] sm:$0xf]  ;;  %v3630_v15 = vld [vmem:[%s3979_s11 + $0x98] sm:$0x1] }
  0xc7   : > { %1785 = vmatmul.mubr.bf16.gmra.mrb[36].mxu0 %v4439_v60  ;;  %1914 = vmatmul.mubr.bf16.gmra.mrb[36].mxu1 %v4441_v48  ;;  %v777_v42 = vsel %vm4150_vm5, %v775_v16, %v776_v11  ;;  %v2793_v61 = vrot.slane %v3629_v52, 9  ;;  %v797_v39 = vrot.slane %v3630_v15, 5  ;;  %v3631_v11 = vld [vmem:[%s3979_s11 + $0xa0] sm:$0xf]  ;;  %v3637_v9 = vld [vmem:[%s3979_s11 + $0xb8] sm:$0xf] }
  0xc8   : > { %1792 = vmatprep.mubr.bf16.mxu0 %v4444_v5  ;;  %1921 = vmatprep.mubr.bf16.mxu1 %v4370_v25  ;;  %v796_v0 = vrot.slane %v794_v59, 4  ;;  %v265_v52 = vld [vmem:[%s3979_s11 + $0xc4] sm:$0xf]  ;;  %v3638_v15 = vld [vmem:[%s3979_s11 + $0xb4] sm:$0xf] }
  0xca   : > { %v798_v16 = vsel %vm4150_vm5, %v796_v0, %v797_v39  ;;  %v2796_v39 = vrot.slane %v3638_v15, 9 }
  0xcf   : > { %1793 = vmatmul.mubr.bf16.gmra.mrb[40].mxu0 %v4462_v1  ;;  %1922 = vmatmul.mubr.bf16.gmra.mrb[40].mxu1 %v4464_v51 }
  0xd0   : > { %1800 = vmatprep.mubr.bf16.mxu0 %v4466_v41  ;;  %1929 = vmatprep.mubr.bf16.mxu1 %v4408_v37 }
  0xd7   : > { %1801 = vmatmul.mubr.bf16.gmra.mrb[44].mxu0 %v4481_v23  ;;  %1930 = vmatmul.mubr.bf16.gmra.mrb[44].mxu1 %v4483_v45 }
  0xd8   : > { %2034 = vmatprep.mubr.bf16.mxu0 %v4285_v34  ;;  %1937 = vmatprep.mubr.bf16.mxu1 %v4439_v60  ;;  %v774_v34 = vsel %vm4150_vm5, %v2790_v27, %v773_v43  ;;  %v3626_v43 = vld [vmem:[#allocation5 + $0x238] sm:$0xff]   ;;  %v795_v27 = vsel %vm4150_vm5, %v2793_v61, %v794_v59  ;;  %v815_v59 = vrot.slane %v3637_v9, 5 }
  0xd9   : > { %v4510_v8 = vcombine.low %v774_v34, %v777_v42  ;;  %v4549_v34 = vcombine.low %v795_v27, %v798_v16  ;;  %v3632_v42 = vld [vmem:[%s3979_s11 + $0x9c] sm:$0xf] }
  0xda   : > { %v3639_v27 = vld [vmem:[%s3979_s11 + $0xbc] sm:$0x1] }
  0xdb   : > { %v818_v16 = vrot.slane %v3639_v27, 5 }
  0xdf   : > { %2035 = vmatmul.mubr.bf16.vlgmr.msra.gmra.mrb[48].mxu0 %v4070_v50  ;;  %1938 = vmatmul.mubr.bf16.gmra.mrb[48].mxu1 %v4496_v2  ;;  %v2791_v50 = vrot.slane %v4360_v3, 9  ;;  %v787_v3 = vrot.slane %v4404_v31, 5 }
  0xe0   : > { %3406 = vmatpush3.bf16.msra.mxu0 %v4345_v14  ;;  %1945 = vmatprep.mubr.bf16.mxu1 %v4462_v1  ;;  %v782_v14 = vrot.slane %v780_v17, 4 }
  0xe1   : > { %2042 = vmatprep.mubr.bf16.mxu0 %v4319_v57  ;;  %3407 = vmatprep.subr.bf16.mxu0 %v3614_v33  ;;  %v781_v18 = vsel %vm4150_vm5, %v2791_v50, %v780_v17  ;;  %v789_v30 = vrot.slane %v787_v3, 4  ;;  %v788_v31 = vsel %vm4150_vm5, %v2792_v58, %v787_v3  ;;  %v2794_v17 = vrot.slane %v3632_v42, 9  ;;  %v3633_v50 = vld [vmem:[%s3979_s11 + $0xa4] sm:$0x1] }
  0xe2   : > { %v784_v28 = vsel %vm4150_vm5, %v782_v14, %v783_v46  ;;  %v804_v14 = vrot.slane %v3633_v50, 5 }
  0xe3   : > { %v4523_v53 = vcombine.low %v781_v18, %v784_v28  ;;  %v791_v12 = vsel %vm4150_vm5, %v789_v30, %v790_v29  ;;  %v3634_v18 = vld [vmem:[%s3979_s11 + $0xac] sm:$0xf]  ;;  %v3636_v29 = vld [vmem:[%s3979_s11 + $0xb0] sm:$0x1] }
  0xe4   : > { %3408 = vmatpush3.bf16.msra.mxu0 %v3614_v33  ;;  %v4536_v63 = vcombine.low %v788_v31, %v791_v12  ;;  %v801_v33 = vrot.slane %v3631_v11, 5  ;;  %v808_v28 = vrot.slane %v3634_v18, 5  ;;  %v816_v11 = vsel %vm4150_vm5, %v2796_v39, %v815_v59 }
  0xe5   : > { %3409 = vmatprep.subr.bf16.mxu0 %v3617_v35 }
  0xe6   : > { %v802_v46 = vsel %vm4150_vm5, %v2794_v17, %v801_v33  ;;  %v810_v30 = vrot.slane %v808_v28, 4  ;;  %v5203_v17 = vld [vmem:[#allocation17_spill] sm:$0xff] }
  0xe7   : > { %2043 = vmatmul.mubr.bf16.gmra.mrb[52].mxu0 %v4124_v4  ;;  %1946 = vmatmul.mubr.bf16.gmra.mrb[52].mxu1 %v4510_v8 }
  0xe8   : > { %2050 = vmatprep.mubr.bf16.mxu0 %v4375_v7  ;;  %1953 = vmatprep.mubr.bf16.mxu1 %v4481_v23 }
  0xe9   : > { %3410 = vmatpush3.bf16.msra.mxu0 %v3617_v35  ;;  %v803_v35 = vrot.slane %v801_v33, 4 }
  0xea   : > { %3411 = vmatprep.subr.bf16.mxu0 %v3620_v6 }
  0xed   : > { %3412 = vmatpush3.bf16.msra.mxu0 %v3620_v6  ;;  %v805_v6 = vsel %vm4150_vm5, %v803_v35, %v804_v14  ;;  %v5204_v35 = vld [vmem:[#allocation19_spill] sm:$0xff]  ;;  %v834_v14 = vshrl.u32 %v265_v52, 16 }
  0xee   : > { %3413 = vmatprep.subr.bf16.mxu0 %v3623_v21  ;;  %v4562_v3 = vcombine.low %v802_v46, %v805_v6  ;;  %v830_v46 = vshll.u32 %v265_v52, 16  ;;  %v266_v6 = vld [vmem:[%s3979_s11 + $0xc8] sm:$0x1] }
  0xef   : > { %2051 = vmatmul.mubr.bf16.gmra.mrb[56].mxu0 %v4170_v19  ;;  %1954 = vmatmul.mubr.bf16.gmra.mrb[56].mxu1 %v4523_v53 }
  0xf0   : > { %2058 = vmatprep.mubr.bf16.mxu0 %v4411_v36  ;;  %1961 = vmatprep.mubr.bf16.mxu1 %v4052_v10 }
  0xf1   : > { %3414 = vmatpush3.bf16.msra.mxu0 %v3623_v21  ;;  %v3635_v21 = vld [vmem:[%s3979_s11 + $0xa8] sm:$0xf] }
  0xf2   : > { %3415 = vmatprep.subr.bf16.mxu0 %v3624_v24  ;;  %v2795_v58 = vrot.slane %v3635_v21, 9  ;;  %v832_v21 = vrot.slane %v830_v46, 5 }
  0xf4   : > { %v809_v31 = vsel %vm4150_vm5, %v2795_v58, %v808_v28  ;;  %v836_v58 = vrot.slane %v834_v14, 4 }
  0xf5   : > { %3416 = vmatpush3.bf16.msra.mxu0 %v3624_v24  ;;  %v811_v24 = vrot.slane %v3636_v29, 5  ;;  %v852_v29 = vrot.slane %v266_v6, 5 }
  0xf6   : > { %3417 = vmatprep.subr.bf16.mxu0 %v3625_v47 }
  0xf7   : > { %2059 = vmatmul.mubr.bf16.gmra.mrb[60].mxu0 %v4243_v22  ;;  %1962 = vmatmul.mubr.bf16.gmra.mrb[60].mxu1 %v4536_v63  ;;  %v812_v12 = vsel %vm4150_vm5, %v810_v30, %v811_v24  ;;  %v5208_v24 = vld [vmem:[#allocation16_spill] sm:$0xff] }
  0xf8   : > { %2066 = vmatprep.mubr.bf16.mxu0 %v4441_v48  ;;  %1969 = vmatprep.mubr.bf16.mxu1 %v4073_v56  ;;  %v4577_v61 = vcombine.low %v809_v31, %v812_v12  ;;  %v837_v31 = vor.u32 %v836_v58, %v832_v21  ;;  %v840_v12 = vshll.u32 %v266_v6, 16 }
  0xf9   : > { %3418 = vmatpush3.bf16.msra.mxu0 %v3625_v47  ;;  %v264_v47 = vld [vmem:[%s3979_s11 + $0xc0] sm:$0xf] }
  0xfa   : > { %3419 = vmatprep.subr.bf16.mxu0 %v3626_v43  ;;  %v4579_v0 = vcombine.low %v264_v47, %v265_v52  ;;  %v824_v50 = vshll.u32 %v264_v47, 16  ;;  %v2797_v30 = vrot.slane %v264_v47, 9  ;;  %v842_v27 = vrot.slane %v840_v12, 5 }
  0xfc   : > { %v826_v28 = vrot.slane %v824_v50, 5 }
  0xfd   : > { %3420 = vmatpush3.bf16.msra.mxu0 %v3626_v43  ;;  %v817_v43 = vrot.slane %v815_v59, 4 }
  0xff   : > { %2067 = vmatmul.mubr.bf16.gmra.mrb[64].mxu0 %v4274_v55  ;;  %1970 = vmatmul.mubr.bf16.gmra.mrb[64].mxu1 %v4549_v34  ;;  %v819_v33 = vsel %vm4150_vm5, %v817_v43, %v818_v16  ;;  %v838_v43 = vrot.slane %v837_v31, 4 }
 0x100   : > { %2074 = vmatprep.mubr.bf16.mxu0 %v4464_v51  ;;  %1977 = vmatprep.mubr.bf16.mxu1 %v4108_v49  ;;  %v4591_v42 = vcombine.low %v816_v11, %v819_v33 }
 0x101   : > { %v843_v46 = vsel %vm4017_vm2, %v838_v43, %v842_v27 }
 0x107   : > { %2075 = vmatmul.mubr.bf16.gmra.mrb[68].mxu0 %v4300_v54  ;;  %1978 = vmatmul.mubr.bf16.gmra.mrb[68].mxu1 %v4562_v3 }
 0x108   : > { %2082 = vmatprep.mubr.bf16.mxu0 %v4483_v45  ;;  %1985 = vmatprep.mubr.bf16.mxu1 %v4202_v32 }
 0x10f   : > { %2083 = vmatmul.mubr.bf16.gmra.mrb[72].mxu0 %v4337_v26  ;;  %1986 = vmatmul.mubr.bf16.gmra.mrb[72].mxu1 %v4577_v61 }
 0x110   : > { %2090 = vmatprep.mubr.bf16.mxu0 %v4496_v2  ;;  %1993 = vmatprep.mubr.bf16.mxu1 %v4579_v0 }
 0x117   : > { %2091 = vmatmul.mubr.bf16.gmra.mrb[76].mxu0 %v4377_v62  ;;  %1994 = vmatmul.mubr.bf16.gmra.mrb[76].mxu1 %v4591_v42 }
 0x118   : > { %2098 = vmatprep.mubr.bf16.mxu0 %v4510_v8  ;;  %2195 = vmatprep.mubr.bf16.mxu1 %v4124_v4  ;;  %v5206_v4 = vld [vmem:[#allocation20_spill] sm:$0xff] }
 0x11f   : > { %2099 = vmatmul.mubr.bf16.gmra.mrb[80].mxu0 %v4417_v20  ;;  %2196 = vmatmul.mubr.bf16.vlgmr.msra.gmra.mrb[80].mxu1 %v4104_v40  ;;  %v5205_v40 = vld [vmem:[#allocation14_spill] sm:$0xff] }
 0x120   : > { %2106 = vmatprep.mubr.bf16.mxu0 %v4523_v53  ;;  %2203 = vmatprep.mubr.bf16.mxu1 %v4170_v19  ;;  %v5207_v19 = vld [vmem:[#allocation15_spill] sm:$0xff] }
 0x127   : > { %2107 = vmatmul.mubr.bf16.gmra.mrb[84].mxu0 %v4444_v5  ;;  %2204 = vmatmul.mubr.bf16.gmra.mrb[84].mxu1 %v5203_v17 }
 0x128   : > { %2114 = vmatprep.mubr.bf16.mxu0 %v4536_v63  ;;  %2211 = vmatprep.mubr.bf16.mxu1 %v4243_v22  ;;  %v821_v22 = vshrl.u32 %v264_v47, 16 }
 0x12a   : > { %v823_v18 = vrot.slane %v821_v22, 4 }
 0x12f   : > { %2115 = vmatmul.mubr.bf16.gmra.mrb[88].mxu0 %v4466_v41  ;;  %2212 = vmatmul.mubr.bf16.gmra.mrb[88].mxu1 %v5204_v35 }
 0x130   : > { %2122 = vmatprep.mubr.bf16.mxu0 %v4549_v34  ;;  %2219 = vmatprep.mubr.bf16.mxu1 %v4274_v55  ;;  %v849_v55 = vrot.slane %v265_v52, 5 }
 0x137   : > { %2123 = vmatmul.mubr.bf16.gmra.mrb[92].mxu0 %v5205_v40  ;;  %2220 = vmatmul.mubr.bf16.gmra.mrb[92].mxu1 %v5206_v4  ;;  %v5209_v4 = vld [vmem:[#allocation18_spill] sm:$0xff] }
 0x138   : > { %2130 = vmatprep.mubr.bf16.mxu0 %v4562_v3  ;;  %2227 = vmatprep.mubr.bf16.mxu1 %v4300_v54  ;;  %v851_v54 = vrot.slane %v849_v55, 4 }
 0x13a   : > { %v853_v9 = vsel %vm4150_vm5, %v851_v54, %v852_v29 }
 0x13f   : > { %2131 = vmatmul.mubr.bf16.gmra.mrb[96].mxu0 %v5207_v19  ;;  %2228 = vmatmul.mubr.bf16.gmra.mrb[96].mxu1 %v4310_v13  ;;  %v827_v13 = vor.u32 %v826_v28, %v823_v18 }
 0x140   : > { %2138 = vmatprep.mubr.bf16.mxu0 %v4577_v61  ;;  %2235 = vmatprep.mubr.bf16.mxu1 %v4337_v26  ;;  %v850_v26 = vsel %vm4150_vm5, %v2797_v30, %v849_v55 }
 0x141   : > { %v4626_v39 = vcombine.low %v850_v26, %v853_v9 }
 0x147   : > { %2139 = vmatmul.mubr.bf16.gmra.mrb[100].mxu0 %v5208_v24  ;;  %2236 = vmatmul.mubr.bf16.gmra.mrb[100].mxu1 %v4370_v25  ;;  %v828_v25 = vrot.slane %v827_v13, 4 }
 0x148   : > { %2146 = vmatprep.mubr.bf16.mxu0 %v4591_v42  ;;  %2243 = vmatprep.mubr.bf16.mxu1 %v4377_v62 }
 0x149   : > { %v833_v14 = vsel %vm4017_vm2, %v828_v25, %v832_v21 }
 0x14a   : > { %v4644_v55 = vcombine.low %v833_v14, %v843_v46 }
 0x14f   : > { %v2949_v59 = vpop.f32.mrb[0].mxu0  ;;  %v3021_v47 = vpop.f32.mrb[0].mxu1  ;;  %2147 = vmatmul.mubr.bf16.gmra.mrb[104].mxu0 %v5209_v4  ;;  %2244 = vmatmul.mubr.bf16.gmra.mrb[104].mxu1 %v4408_v37 }
 0x150   : > { %v2950_v52 = vpop.f32.mrb[1].mxu0  ;;  %v3022_v15 = vpop.f32.mrb[1].mxu1  ;;  %2154 = vmatprep.mubr.bf16.mxu0 %v4626_v39  ;;  %2251 = vmatprep.mubr.bf16.mxu1 %v4417_v20 }
 0x151   : > { %v4628_v16 = vadd.f32 %v2950_v52, %v2949_v59  ;;  %v4630_v11 = vadd.f32 %v3022_v15, %v3021_v47  ;;  %v2952_v62 = vpop.f32.mrb[2].mxu0  ;;  %v3024_v33 = vpop.f32.mrb[2].mxu1 }
 0x152   : > { %v2953_v17 = vpop.f32.mrb[3].mxu0  ;;  %v3025_v35 = vpop.f32.mrb[3].mxu1 }
 0x153   : > { %v4633_v22 = vadd.f32 %v2953_v17, %v2952_v62  ;;  %v4635_v50 = vadd.f32 %v3025_v35, %v3024_v33 }
 0x157   : > { %v2955_v6 = vpop.f32.mrb[4].mxu0  ;;  %v3027_v28 = vpop.f32.mrb[4].mxu1  ;;  %2155 = vmatmul.mubr.bf16.gmra.mrb[108].mxu0 %v4644_v55  ;;  %2252 = vmatmul.mubr.bf16.gmra.mrb[108].mxu1 %v4439_v60 }
 0x158   : > { %v2956_v18 = vpop.f32.mrb[5].mxu0  ;;  %v3028_v54 = vpop.f32.mrb[5].mxu1  ;;  %3421 = vmatprep.mubr.bf16.mxu0 %v4319_v57  ;;  %2259 = vmatprep.mubr.bf16.mxu1 %v4444_v5 }
 0x159   : > { %v4646_v58 = vadd.f32 %v2956_v18, %v2955_v6  ;;  %v2958_v30 = vpop.f32.mrb[6].mxu0  ;;  %v4649_v29 = vadd.f32 %v3028_v54, %v3027_v28  ;;  %v3030_v21 = vpop.f32.mrb[6].mxu1 }
 0x15a   : > { %v2959_v37 = vpop.f32.mrb[7].mxu0  ;;  %v3031_v20 = vpop.f32.mrb[7].mxu1 }
 0x15b   : > { %v4651_v13 = vadd.f32 %v2959_v37, %v2958_v30  ;;  %v4655_v31 = vadd.f32 %v3031_v20, %v3030_v21  ;;  %v4691_v20 = vld [vmem:[%s3979_s11 + $0xcc] sm:$0xf] }
 0x15f   : > { %v2961_v12 = vpop.f32.mrb[8].mxu0  ;;  %3422 = vmatmul.mubr.bf16.vlgmr.msra.gmra.mrb[112].mxu0 %v4375_v7  ;;  %2260 = vmatmul.mubr.bf16.gmra.mrb[112].mxu1 %v4462_v1 }
 0x160   : > { %v2962_v26 = vpop.f32.mrb[9].mxu0  ;;  %3425 = vmatprep.mubr.bf16.mxu0 %v4411_v36  ;;  %2267 = vmatprep.mubr.bf16.mxu1 %v4466_v41 }
 0x161   : > { %v4660_v9 = vadd.f32 %v2962_v26, %v2961_v12  ;;  %v2964_v59 = vpop.f32.mrb[10].mxu0  ;;  %v3033_v47 = vpop.f32.mrb[8].mxu1  ;;  %v855_v26 = vshrl.u32 %v4691_v20, 16 }
 0x162   : > { %v2965_v60 = vpop.f32.mrb[11].mxu0  ;;  %v3034_v57 = vpop.f32.mrb[9].mxu1 }
 0x163   : > { %v4664_v52 = vadd.f32 %v2965_v60, %v2964_v59  ;;  %v4666_v15 = vadd.f32 %v3034_v57, %v3033_v47  ;;  %v3036_v5 = vpop.f32.mrb[10].mxu1 }
 0x164   : > { %v3037_v25 = vpop.f32.mrb[11].mxu1 }
 0x165   : > { %v4668_v7 = vadd.f32 %v3037_v25, %v3036_v5 }
 0x167   : > { %3426 = vmatmul.mubr.bf16.gmra.mrb[116].mxu0 %v4441_v48  ;;  %2268 = vmatmul.mubr.bf16.gmra.mrb[116].mxu1 %v4481_v23 }
 0x168   : > { %v2967_v1 = vpop.f32.mrb[12].mxu0  ;;  %3429 = vmatprep.mubr.bf16.mxu0 %v4464_v51  ;;  %2275 = vmatprep.mubr.bf16.mxu1 %v5205_v40 }
 0x169   : > { %v2968_v43 = vpop.f32.mrb[13].mxu0 }
 0x16a   : > { %v4673_v36 = vadd.f32 %v2968_v43, %v2967_v1  ;;  %v2970_v41 = vpop.f32.mrb[14].mxu0  ;;  %v3039_v62 = vpop.f32.mrb[12].mxu1 }
 0x16b   : > { %v2971_v27 = vpop.f32.mrb[15].mxu0  ;;  %v3040_v17 = vpop.f32.mrb[13].mxu1 }
 0x16c   : > { %v4676_v33 = vadd.f32 %v2971_v27, %v2970_v41  ;;  %v4678_v35 = vadd.f32 %v3040_v17, %v3039_v62  ;;  %v3042_v14 = vpop.f32.mrb[14].mxu1 }
 0x16d   : > { %v3043_v48 = vpop.f32.mrb[15].mxu1 }
 0x16e   : > { %v4680_v46 = vadd.f32 %v3043_v48, %v3042_v14 }
 0x16f   : > { %3430 = vmatmul.mubr.bf16.gmra.mrb[120].mxu0 %v4483_v45  ;;  %2276 = vmatmul.mubr.bf16.gmra.mrb[120].mxu1 %v4052_v10 }
 0x170   : > { %3433 = vmatprep.mubr.bf16.mxu0 %v4496_v2  ;;  %2283 = vmatprep.mubr.bf16.mxu1 %v5207_v19  ;;  %v4698_v19 = vld [vmem:[%s3979_s11 + $0xd0] sm:$0xf] }
 0x171   : > { %v864_v47 = vshll.u32 %v4698_v19, 16 }
 0x172   : > { %v2973_v51 = vpop.f32.mrb[16].mxu0  ;;  %v3061_v23 = vpop.f32.mrb[16].mxu1 }
 0x173   : > { %v2974_v40 = vpop.f32.mrb[17].mxu0  ;;  %v3062_v18 = vpop.f32.mrb[17].mxu1  ;;  %v866_v62 = vrot.slane %v864_v47, 5 }
 0x174   : > { %v4686_v6 = vadd.f32 %v2974_v40, %v2973_v51  ;;  %v2976_v28 = vpop.f32.mrb[18].mxu0  ;;  %v3063_v30 = vadd.f32 %v3062_v18, %v3061_v23  ;;  %v3064_v54 = vpop.f32.mrb[18].mxu1  ;;  %v269_v51 = vld [vmem:[%s3979_s11 + $0xd4] sm:$0x1] }
 0x175   : > { %v2977_v37 = vpop.f32.mrb[19].mxu0  ;;  %v3065_v45 = vpop.f32.mrb[19].mxu1 }
 0x176   : > { %v4688_v21 = vadd.f32 %v2977_v37, %v2976_v28  ;;  %v4694_v10 = vadd.f32 %v3063_v30, %v4628_v16  ;;  %v3066_v2 = vadd.f32 %v3065_v45, %v3064_v54  ;;  %v858_v16 = vshll.u32 %v4691_v20, 16 }
 0x177   : > { %3434 = vmatmul.mubr.bf16.gmra.mrb[124].mxu0 %v4510_v8  ;;  %2284 = vmatmul.mubr.bf16.gmra.mrb[124].mxu1 %v4073_v56  ;;  %v868_v8 = vshrl.u32 %v4698_v19, 16  ;;  %v874_v30 = vshll.u32 %v269_v51, 16 }
 0x178   : > { %3437 = vmatprep.mubr.bf16.mxu0 %v4523_v53  ;;  %v4703_v12 = vadd.f32 %v3066_v2, %v4633_v22  ;;  %2291 = vmatprep.mubr.bf16.mxu1 %v5208_v24  ;;  %v857_v24 = vrot.slane %v855_v26, 4  ;;  %v860_v27 = vrot.slane %v858_v16, 5 }
 0x179   : > { %v870_v17 = vrot.slane %v868_v8, 4  ;;  %v876_v47 = vrot.slane %v874_v30, 5 }
 0x17a   : > { %v2979_v59 = vpop.f32.mrb[20].mxu0  ;;  %v3067_v60 = vpop.f32.mrb[20].mxu1  ;;  %v861_v18 = vor.u32 %v860_v27, %v857_v24 }
 0x17b   : > { %v2980_v57 = vpop.f32.mrb[21].mxu0  ;;  %v3068_v53 = vpop.f32.mrb[21].mxu1  ;;  %v871_v28 = vor.u32 %v870_v17, %v866_v62 }
 0x17c   : > { %v4710_v56 = vadd.f32 %v2980_v57, %v2979_v59  ;;  %v2982_v5 = vpop.f32.mrb[22].mxu0  ;;  %v3069_v22 = vadd.f32 %v3068_v53, %v3067_v60  ;;  %v3070_v25 = vpop.f32.mrb[22].mxu1  ;;  %v883_v60 = vrot.slane %v4698_v19, 5 }
 0x17d   : > { %v2983_v1 = vpop.f32.mrb[23].mxu0  ;;  %v3071_v41 = vpop.f32.mrb[23].mxu1  ;;  %v872_v16 = vrot.slane %v871_v28, 4 }
 0x17e   : > { %v4712_v43 = vadd.f32 %v2983_v1, %v2982_v5  ;;  %v4715_v14 = vadd.f32 %v3069_v22, %v4646_v58  ;;  %v3072_v48 = vadd.f32 %v3071_v41, %v3070_v25  ;;  %v2798_v1 = vrot.slane %v4691_v20, 9 }
 0x17f   : > { %3438 = vmatmul.mubr.bf16.gmra.mrb[128].mxu0 %v4536_v63  ;;  %2292 = vmatmul.mubr.bf16.gmra.mrb[128].mxu1 %v4108_v49  ;;  %v885_v24 = vrot.slane %v883_v60, 4 }
 0x180   : > { %3441 = vmatprep.mubr.bf16.mxu0 %v4549_v34  ;;  %v4722_v23 = vadd.f32 %v3072_v48, %v4651_v13  ;;  %2299 = vmatprep.mubr.bf16.mxu1 %v5209_v4  ;;  %v862_v13 = vrot.slane %v861_v18, 4 }
 0x182   : > { %v2985_v40 = vpop.f32.mrb[24].mxu0  ;;  %v3073_v54 = vpop.f32.mrb[24].mxu1  ;;  %v867_v5 = vsel %vm4017_vm2, %v862_v13, %v866_v62 }
 0x183   : > { %v2986_v58 = vpop.f32.mrb[25].mxu0  ;;  %v3074_v45 = vpop.f32.mrb[25].mxu1 }
 0x184   : > { %v4725_v37 = vadd.f32 %v2986_v58, %v2985_v40  ;;  %v2988_v63 = vpop.f32.mrb[26].mxu0  ;;  %v3075_v2 = vadd.f32 %v3074_v45, %v3073_v54  ;;  %v3076_v26 = vpop.f32.mrb[26].mxu1 }
 0x185   : > { %v2989_v49 = vpop.f32.mrb[27].mxu0  ;;  %v3077_v34 = vpop.f32.mrb[27].mxu1 }
 0x186   : > { %v4727_v59 = vadd.f32 %v2989_v49, %v2988_v63  ;;  %v4730_v4 = vadd.f32 %v3075_v2, %v4660_v9  ;;  %v3078_v8 = vadd.f32 %v3077_v34, %v3076_v26  ;;  %v877_v9 = vsel %vm4017_vm2, %v872_v16, %v876_v47 }
 0x187   : > { %3442 = vmatmul.mubr.bf16.gmra.mrb[132].mxu0 %v4562_v3  ;;  %2300 = vmatmul.mubr.bf16.gmra.mrb[132].mxu1 %v4202_v32  ;;  %v2851_v17 = vcombine.low %v867_v5, %v877_v9 }
 0x188   : > { %3445 = vmatprep.mubr.bf16.mxu0 %v4577_v61  ;;  %v4737_v57 = vadd.f32 %v3078_v8, %v4664_v52  ;;  %2307 = vmatprep.mubr.bf16.mxu1 %v4644_v55  ;;  %v886_v52 = vrot.slane %v269_v51, 5  ;;  %v884_v51 = vsel %vm4150_vm5, %v2798_v1, %v883_v60 }
 0x18a   : > { %v2991_v53 = vpop.f32.mrb[28].mxu0  ;;  %v3079_v22 = vpop.f32.mrb[28].mxu1  ;;  %v887_v18 = vsel %vm4150_vm5, %v885_v24, %v886_v52 }
 0x18b   : > { %v2992_v3 = vpop.f32.mrb[29].mxu0  ;;  %v3080_v32 = vpop.f32.mrb[29].mxu1  ;;  %v2852_v58 = vcombine.low %v884_v51, %v887_v18 }
 0x18c   : > { %v4744_v25 = vadd.f32 %v2992_v3, %v2991_v53  ;;  %v2994_v61 = vpop.f32.mrb[30].mxu0  ;;  %v3081_v41 = vadd.f32 %v3080_v32, %v3079_v22  ;;  %v3082_v27 = vpop.f32.mrb[30].mxu1 }
 0x18d   : > { %v2995_v55 = vpop.f32.mrb[31].mxu0  ;;  %v3083_v62 = vpop.f32.mrb[31].mxu1 }
 0x18e   : > { %v4747_v48 = vadd.f32 %v2995_v55, %v2994_v61  ;;  %v4750_v38 = vadd.f32 %v3081_v41, %v4673_v36  ;;  %v3084_v40 = vadd.f32 %v3083_v62, %v3082_v27 }
 0x18f   : > { %3446 = vmatmul.mubr.bf16.gmra.mrb[136].mxu0 %v4591_v42  ;;  %2308 = vmatmul.mubr.bf16.gmra.mrb[136].mxu1 %v4579_v0 }
 0x190   : > { %3449 = vmatprep.mubr.bf16.mxu0 %v4626_v39  ;;  %v4760_v28 = vadd.f32 %v3084_v40, %v4676_v33  ;;  %2315 = vmatprep.mubr.bf16.mxu1 %v2851_v17  ;;  %v2850_v39 = vcombine.low %v4691_v20, %v4698_v19 }
 0x192   : > { %v2997_v30 = vpop.f32.mrb[32].mxu0  ;;  %v3085_v36 = vpop.f32.mrb[32].mxu1 }
 0x193   : > { %v2998_v54 = vpop.f32.mrb[33].mxu0  ;;  %v3086_v42 = vpop.f32.mrb[33].mxu1 }
 0x194   : > { %v4762_v45 = vadd.f32 %v2998_v54, %v2997_v30  ;;  %v3000_v0 = vpop.f32.mrb[34].mxu0  ;;  %v3087_v63 = vadd.f32 %v3086_v42, %v3085_v36  ;;  %v3088_v2 = vpop.f32.mrb[34].mxu1 }
 0x195   : > { %v3001_v26 = vpop.f32.mrb[35].mxu0  ;;  %v3089_v49 = vpop.f32.mrb[35].mxu1 }
 0x196   : > { %v4766_v44 = vadd.f32 %v3001_v26, %v3000_v0  ;;  %v4769_v33 = vadd.f32 %v3087_v63, %v4686_v6  ;;  %v3090_v34 = vadd.f32 %v3089_v49, %v3088_v2 }
 0x197   : > { %3450 = vmatmul.mubr.bf16.gmra.mrb[140].mxu0 %v2852_v58  ;;  %2316 = vmatmul.mubr.bf16.gmra.mrb[140].mxu1 %v2850_v39 }
 0x198   : > { %v4772_v13 = vadd.f32 %v3090_v34, %v4688_v21 }
 0x19a   : > { %v3003_v16 = vpop.f32.mrb[36].mxu0  ;;  %v3091_v47 = vpop.f32.mrb[36].mxu1 }
 0x19b   : > { %v3004_v8 = vpop.f32.mrb[37].mxu0  ;;  %v3092_v20 = vpop.f32.mrb[37].mxu1 }
 0x19c   : > { %v4774_v60 = vadd.f32 %v3004_v8, %v3003_v16  ;;  %v3006_v19 = vpop.f32.mrb[38].mxu0  ;;  %v3093_v53 = vadd.f32 %v3092_v20, %v3091_v47  ;;  %v3094_v5 = vpop.f32.mrb[38].mxu1 }
 0x19d   : > { %v3007_v9 = vpop.f32.mrb[39].mxu0  ;;  %v3095_v6 = vpop.f32.mrb[39].mxu1 }
 0x19e   : > { %v4776_v22 = vadd.f32 %v3007_v9, %v3006_v19  ;;  %v4779_v3 = vadd.f32 %v3093_v53, %v4710_v56  ;;  %v3096_v32 = vadd.f32 %v3095_v6, %v3094_v5 }
 0x1a0   : > { %v4782_v21 = vadd.f32 %v3096_v32, %v4712_v43 }
 0x1a2   : > { %v3009_v61 = vpop.f32.mrb[40].mxu0  ;;  %v3097_v1 = vpop.f32.mrb[40].mxu1 }
 0x1a3   : > { %v3010_v24 = vpop.f32.mrb[41].mxu0  ;;  %v3098_v41 = vpop.f32.mrb[41].mxu1 }
 0x1a4   : > { %v4784_v52 = vadd.f32 %v3010_v24, %v3009_v61  ;;  %v3012_v27 = vpop.f32.mrb[42].mxu0  ;;  %v3099_v55 = vadd.f32 %v3098_v41, %v3097_v1  ;;  %v3100_v17 = vpop.f32.mrb[42].mxu1 }
 0x1a5   : > { %v3013_v62 = vpop.f32.mrb[43].mxu0  ;;  %v3101_v51 = vpop.f32.mrb[43].mxu1 }
 0x1a6   : > { %v4786_v40 = vadd.f32 %v3013_v62, %v3012_v27  ;;  %v4789_v56 = vadd.f32 %v3099_v55, %v4725_v37  ;;  %v3102_v18 = vadd.f32 %v3101_v51, %v3100_v17 }
 0x1a8   : > { %v4792_v43 = vadd.f32 %v3102_v18, %v4727_v59 }
 0x1aa   : > { %v3015_v30 = vpop.f32.mrb[44].mxu0  ;;  %v3103_v36 = vpop.f32.mrb[44].mxu1 }
 0x1ab   : > { %v3016_v54 = vpop.f32.mrb[45].mxu0  ;;  %v3104_v42 = vpop.f32.mrb[45].mxu1 }
 0x1ac   : > { %v4794_v58 = vadd.f32 %v3016_v54, %v3015_v30  ;;  %v3018_v0 = vpop.f32.mrb[46].mxu0  ;;  %v3105_v39 = vadd.f32 %v3104_v42, %v3103_v36  ;;  %v3106_v63 = vpop.f32.mrb[46].mxu1 }
 0x1ad   : > { %v3019_v2 = vpop.f32.mrb[47].mxu0  ;;  %v3107_v49 = vpop.f32.mrb[47].mxu1 }
 0x1ae   : > { %v4796_v26 = vadd.f32 %v3019_v2, %v3018_v0  ;;  %v4799_v37 = vadd.f32 %v3105_v39, %v4744_v25  ;;  %v3108_v34 = vadd.f32 %v3107_v49, %v3106_v63 }
 0x1b0   : > { %v4802_v59 = vadd.f32 %v3108_v34, %v4747_v48 }
 0x1b2   : > { %v3173_v16 = vpop.f32.mrb[48].mxu0  ;;  %v3109_v47 = vpop.f32.mrb[48].mxu1 }
 0x1b3   : > { %v3174_v8 = vpop.f32.mrb[49].mxu0  ;;  %v3110_v20 = vpop.f32.mrb[49].mxu1 }
 0x1b4   : > { %v3175_v19 = vadd.f32 %v3174_v8, %v3173_v16  ;;  %v3176_v53 = vpop.f32.mrb[50].mxu0  ;;  %v3111_v5 = vadd.f32 %v3110_v20, %v3109_v47  ;;  %v3112_v9 = vpop.f32.mrb[50].mxu1 }
 0x1b5   : > { %v3177_v6 = vpop.f32.mrb[51].mxu0  ;;  %v3113_v61 = vpop.f32.mrb[51].mxu1 }
 0x1b6   : > { %v4805_v32 = vadd.f32 %v3175_v19, %v4694_v10  ;;  %v3178_v1 = vadd.f32 %v3177_v6, %v3176_v53  ;;  %v4808_v25 = vadd.f32 %v3111_v5, %v4762_v45  ;;  %v3114_v24 = vadd.f32 %v3113_v61, %v3112_v9 }
 0x1b8   : > { %v4811_v48 = vadd.f32 %v3178_v1, %v4703_v12  ;;  %v4814_v41 = vadd.f32 %v3114_v24, %v4766_v44 }
 0x1ba   : > { %v3179_v27 = vpop.f32.mrb[52].mxu0  ;;  %v3115_v55 = vpop.f32.mrb[52].mxu1 }
 0x1bb   : > { %v3180_v17 = vpop.f32.mrb[53].mxu0  ;;  %v3116_v62 = vpop.f32.mrb[53].mxu1 }
 0x1bc   : > { %v3181_v51 = vadd.f32 %v3180_v17, %v3179_v27  ;;  %v3182_v18 = vpop.f32.mrb[54].mxu0  ;;  %v3117_v10 = vadd.f32 %v3116_v62, %v3115_v55  ;;  %v3118_v30 = vpop.f32.mrb[54].mxu1 }
 0x1bd   : > { %v3183_v36 = vpop.f32.mrb[55].mxu0  ;;  %v3119_v45 = vpop.f32.mrb[55].mxu1 }
 0x1be   : > { %v4817_v54 = vadd.f32 %v3181_v51, %v4715_v14  ;;  %v3184_v42 = vadd.f32 %v3183_v36, %v3182_v18  ;;  %v4820_v12 = vadd.f32 %v3117_v10, %v4774_v60  ;;  %v3120_v0 = vadd.f32 %v3119_v45, %v3118_v30 }
 0x1c0   : > { %v4823_v44 = vadd.f32 %v3184_v42, %v4722_v23  ;;  %v4826_v39 = vadd.f32 %v3120_v0, %v4776_v22 }
 0x1c2   : > { %v3185_v63 = vpop.f32.mrb[56].mxu0  ;;  %v3121_v2 = vpop.f32.mrb[56].mxu1 }
 0x1c3   : > { %v3186_v49 = vpop.f32.mrb[57].mxu0  ;;  %v3122_v34 = vpop.f32.mrb[57].mxu1 }
 0x1c4   : > { %v3187_v16 = vadd.f32 %v3186_v49, %v3185_v63  ;;  %v3188_v47 = vpop.f32.mrb[58].mxu0  ;;  %v3123_v14 = vadd.f32 %v3122_v34, %v3121_v2  ;;  %v3124_v8 = vpop.f32.mrb[58].mxu1 }
 0x1c5   : > { %v3189_v20 = vpop.f32.mrb[59].mxu0  ;;  %v3125_v60 = vpop.f32.mrb[59].mxu1 }
 0x1c6   : > { %v4829_v19 = vadd.f32 %v3187_v16, %v4730_v4  ;;  %v3190_v53 = vadd.f32 %v3189_v20, %v3188_v47  ;;  %v4832_v23 = vadd.f32 %v3123_v14, %v4784_v52  ;;  %v3126_v5 = vadd.f32 %v3125_v60, %v3124_v8 }
 0x1c8   : > { %v4835_v22 = vadd.f32 %v3190_v53, %v4737_v57  ;;  %v4838_v9 = vadd.f32 %v3126_v5, %v4786_v40 }
 0x1ca   : > { %v3191_v6 = vpop.f32.mrb[60].mxu0  ;;  %v3127_v61 = vpop.f32.mrb[60].mxu1 }
 0x1cb   : > { %v3192_v1 = vpop.f32.mrb[61].mxu0  ;;  %v3128_v24 = vpop.f32.mrb[61].mxu1 }
 0x1cc   : > { %v3193_v27 = vadd.f32 %v3192_v1, %v3191_v6  ;;  %v3194_v55 = vpop.f32.mrb[62].mxu0  ;;  %v3129_v4 = vadd.f32 %v3128_v24, %v3127_v61  ;;  %v3130_v17 = vpop.f32.mrb[62].mxu1 }
 0x1cd   : > { %v3195_v62 = vpop.f32.mrb[63].mxu0  ;;  %v3131_v52 = vpop.f32.mrb[63].mxu1 }
 0x1ce   : > { %v4841_v51 = vadd.f32 %v3193_v27, %v4750_v38  ;;  %v3196_v18 = vadd.f32 %v3195_v62, %v3194_v55  ;;  %v4844_v57 = vadd.f32 %v3129_v4, %v4794_v58  ;;  %v3132_v10 = vadd.f32 %v3131_v52, %v3130_v17 }
 0x1d0   : > { %v4847_v40 = vadd.f32 %v3196_v18, %v4760_v28  ;;  %v4850_v30 = vadd.f32 %v3132_v10, %v4796_v26 }
 0x1d2   : > { %v3197_v36 = vpop.f32.mrb[64].mxu0  ;;  %v3133_v45 = vpop.f32.mrb[64].mxu1 }
 0x1d3   : > { %v3198_v42 = vpop.f32.mrb[65].mxu0  ;;  %v3134_v0 = vpop.f32.mrb[65].mxu1 }
 0x1d4   : > { %v3199_v63 = vadd.f32 %v3198_v42, %v3197_v36  ;;  %v3200_v2 = vpop.f32.mrb[66].mxu0  ;;  %v3135_v38 = vadd.f32 %v3134_v0, %v3133_v45  ;;  %v3136_v49 = vpop.f32.mrb[66].mxu1 }
 0x1d5   : > { %v3201_v34 = vpop.f32.mrb[67].mxu0  ;;  %v3137_v58 = vpop.f32.mrb[67].mxu1 }
 0x1d6   : > { %v4853_v16 = vadd.f32 %v3199_v63, %v4769_v33  ;;  %v3202_v47 = vadd.f32 %v3201_v34, %v3200_v2  ;;  %v4856_v28 = vadd.f32 %v3135_v38, %v4630_v11  ;;  %v3138_v14 = vadd.f32 %v3137_v58, %v3136_v49 }
 0x1d8   : > { %v4859_v26 = vadd.f32 %v3202_v47, %v4772_v13  ;;  %v4862_v8 = vadd.f32 %v3138_v14, %v4635_v50 }
 0x1da   : > { %v3203_v20 = vpop.f32.mrb[68].mxu0  ;;  %v3139_v60 = vpop.f32.mrb[68].mxu1 }
 0x1db   : > { %v3204_v53 = vpop.f32.mrb[69].mxu0  ;;  %v3140_v5 = vpop.f32.mrb[69].mxu1 }
 0x1dc   : > { %v3205_v6 = vadd.f32 %v3204_v53, %v3203_v20  ;;  %v3206_v61 = vpop.f32.mrb[70].mxu0  ;;  %v3141_v33 = vadd.f32 %v3140_v5, %v3139_v60  ;;  %v3142_v1 = vpop.f32.mrb[70].mxu1 }
 0x1dd   : > { %v3207_v24 = vpop.f32.mrb[71].mxu0  ;;  %v3143_v11 = vpop.f32.mrb[71].mxu1 }
 0x1de   : > { %v4865_v27 = vadd.f32 %v3205_v6, %v4779_v3  ;;  %v3208_v55 = vadd.f32 %v3207_v24, %v3206_v61  ;;  %v4868_v13 = vadd.f32 %v3141_v33, %v4649_v29  ;;  %v3144_v4 = vadd.f32 %v3143_v11, %v3142_v1 }
 0x1e0   : > { %v4871_v50 = vadd.f32 %v3208_v55, %v4782_v21  ;;  %v4874_v17 = vadd.f32 %v3144_v4, %v4655_v31 }
 0x1e2   : > { %v3209_v62 = vpop.f32.mrb[72].mxu0  ;;  %v3145_v52 = vpop.f32.mrb[72].mxu1 }
 0x1e3   : > { %v3210_v18 = vpop.f32.mrb[73].mxu0  ;;  %v3146_v10 = vpop.f32.mrb[73].mxu1 }
 0x1e4   : > { %v3211_v36 = vadd.f32 %v3210_v18, %v3209_v62  ;;  %v3212_v45 = vpop.f32.mrb[74].mxu0  ;;  %v3147_v3 = vadd.f32 %v3146_v10, %v3145_v52  ;;  %v3148_v42 = vpop.f32.mrb[74].mxu1 }
 0x1e5   : > { %v3213_v0 = vpop.f32.mrb[75].mxu0  ;;  %v3149_v29 = vpop.f32.mrb[75].mxu1 }
 0x1e6   : > { %v4877_v63 = vadd.f32 %v3211_v36, %v4789_v56  ;;  %v3214_v2 = vadd.f32 %v3213_v0, %v3212_v45  ;;  %v4880_v21 = vadd.f32 %v3147_v3, %v4666_v15  ;;  %v3150_v38 = vadd.f32 %v3149_v29, %v3148_v42 }
 0x1e8   : > { %v4883_v31 = vadd.f32 %v3214_v2, %v4792_v43  ;;  %v4886_v49 = vadd.f32 %v3150_v38, %v4668_v7 }
 0x1ea   : > { %v3215_v34 = vpop.f32.mrb[76].mxu0  ;;  %v3151_v58 = vpop.f32.mrb[76].mxu1 }
 0x1eb   : > { %v3216_v47 = vpop.f32.mrb[77].mxu0  ;;  %v3152_v14 = vpop.f32.mrb[77].mxu1 }
 0x1ec   : > { %v3217_v20 = vadd.f32 %v3216_v47, %v3215_v34  ;;  %v3218_v60 = vpop.f32.mrb[78].mxu0  ;;  %v3153_v56 = vadd.f32 %v3152_v14, %v3151_v58  ;;  %v3154_v53 = vpop.f32.mrb[78].mxu1 }
 0x1ed   : > { %v3219_v5 = vpop.f32.mrb[79].mxu0  ;;  %v3155_v15 = vpop.f32.mrb[79].mxu1 }
 0x1ee   : > { %v4889_v6 = vadd.f32 %v3217_v20, %v4799_v37  ;;  %v3220_v61 = vadd.f32 %v3219_v5, %v3218_v60  ;;  %v4892_v43 = vadd.f32 %v3153_v56, %v4678_v35  ;;  %v3156_v33 = vadd.f32 %v3155_v15, %v3154_v53 }
 0x1f0   : > { %v4895_v7 = vadd.f32 %v3220_v61, %v4802_v59  ;;  %v4898_v1 = vadd.f32 %v3156_v33, %v4680_v46 }
 0x1f2   : > { %v3221_v24 = vpop.f32.mrb[80].mxu0  ;;  %v3285_v11 = vpop.f32.mrb[80].mxu1 }
 0x1f3   : > { %v3222_v55 = vpop.f32.mrb[81].mxu0  ;;  %v3286_v62 = vpop.f32.mrb[81].mxu1 }
 0x1f4   : > { %v3223_v4 = vadd.f32 %v3222_v55, %v3221_v24  ;;  %v3224_v52 = vpop.f32.mrb[82].mxu0  ;;  %v3287_v37 = vadd.f32 %v3286_v62, %v3285_v11  ;;  %v3288_v18 = vpop.f32.mrb[82].mxu1 }
 0x1f5   : > { %v3225_v10 = vpop.f32.mrb[83].mxu0  ;;  %v3289_v45 = vpop.f32.mrb[83].mxu1 }
 0x1f6   : > { %v4901_v36 = vadd.f32 %v3223_v4, %v4808_v25  ;;  %v3226_v35 = vadd.f32 %v3225_v10, %v3224_v52  ;;  %v3290_v3 = vadd.f32 %v3289_v45, %v3288_v18  ;;  %v4904_v59 = vadd.f32 %v3287_v37, %v4805_v32 }
 0x1f8   : > { %v4907_v46 = vadd.f32 %v3226_v35, %v4814_v41  ;;  %v4910_v42 = vadd.f32 %v3290_v3, %v4811_v48 }
 0x1fa   : > { %v3227_v0 = vpop.f32.mrb[84].mxu0  ;;  %v3291_v29 = vpop.f32.mrb[84].mxu1 }
 0x1fb   : > { %v3228_v2 = vpop.f32.mrb[85].mxu0  ;;  %v3292_v34 = vpop.f32.mrb[85].mxu1 }
 0x1fc   : > { %v3229_v38 = vadd.f32 %v3228_v2, %v3227_v0  ;;  %v3230_v58 = vpop.f32.mrb[86].mxu0  ;;  %v3293_v25 = vadd.f32 %v3292_v34, %v3291_v29  ;;  %v3294_v47 = vpop.f32.mrb[86].mxu1 }
 0x1fd   : > { %v3231_v14 = vpop.f32.mrb[87].mxu0  ;;  %v3295_v60 = vpop.f32.mrb[87].mxu1 }
 0x1fe   : > { %v4913_v20 = vadd.f32 %v3229_v38, %v4820_v12  ;;  %v3232_v32 = vadd.f32 %v3231_v14, %v3230_v58  ;;  %v3296_v56 = vadd.f32 %v3295_v60, %v3294_v47  ;;  %v4916_v41 = vadd.f32 %v3293_v25, %v4817_v54 }
 0x200   : > { %v4919_v48 = vadd.f32 %v3232_v32, %v4826_v39  ;;  %v4922_v53 = vadd.f32 %v3296_v56, %v4823_v44 }
 0x202   : > { %v3233_v5 = vpop.f32.mrb[88].mxu0  ;;  %v3297_v15 = vpop.f32.mrb[88].mxu1 }
 0x203   : > { %v3234_v61 = vpop.f32.mrb[89].mxu0  ;;  %v3298_v24 = vpop.f32.mrb[89].mxu1 }
 0x204   : > { %v3235_v33 = vadd.f32 %v3234_v61, %v3233_v5  ;;  %v3236_v11 = vpop.f32.mrb[90].mxu0  ;;  %v3299_v12 = vadd.f32 %v3298_v24, %v3297_v15  ;;  %v3300_v55 = vpop.f32.mrb[90].mxu1 }
 0x205   : > { %v3237_v4 = vpop.f32.mrb[91].mxu0  ;;  %v3301_v52 = vpop.f32.mrb[91].mxu1 }
 0x206   : > { %v4925_v62 = vadd.f32 %v3235_v33, %v4832_v23  ;;  %v3238_v54 = vadd.f32 %v3237_v4, %v3236_v11  ;;  %v3302_v37 = vadd.f32 %v3301_v52, %v3300_v55  ;;  %v4928_v39 = vadd.f32 %v3299_v12, %v4829_v19 }
 0x208   : > { %v4931_v44 = vadd.f32 %v3238_v54, %v4838_v9  ;;  %v4934_v18 = vadd.f32 %v3302_v37, %v4835_v22 }
 0x20a   : > { %v3239_v10 = vpop.f32.mrb[92].mxu0  ;;  %v3303_v35 = vpop.f32.mrb[92].mxu1 }
 0x20b   : > { %v3240_v45 = vpop.f32.mrb[93].mxu0  ;;  %v3304_v0 = vpop.f32.mrb[93].mxu1 }
 0x20c   : > { %v3241_v3 = vadd.f32 %v3240_v45, %v3239_v10  ;;  %v3242_v29 = vpop.f32.mrb[94].mxu0  ;;  %v3305_v23 = vadd.f32 %v3304_v0, %v3303_v35  ;;  %v3306_v2 = vpop.f32.mrb[94].mxu1 }
 0x20d   : > { %v3243_v38 = vpop.f32.mrb[95].mxu0  ;;  %v3307_v58 = vpop.f32.mrb[95].mxu1 }
 0x20e   : > { %v4937_v34 = vadd.f32 %v3241_v3, %v4844_v57  ;;  %v3244_v19 = vadd.f32 %v3243_v38, %v3242_v29  ;;  %v3308_v25 = vadd.f32 %v3307_v58, %v3306_v2  ;;  %v4940_v9 = vadd.f32 %v3305_v23, %v4841_v51 }
 0x210   : > { %v4943_v22 = vadd.f32 %v3244_v19, %v4850_v30  ;;  %v4946_v47 = vadd.f32 %v3308_v25, %v4847_v40 }
 0x212   : > { %v3245_v14 = vpop.f32.mrb[96].mxu0  ;;  %v3309_v32 = vpop.f32.mrb[96].mxu1 }
 0x213   : > { %v3246_v60 = vpop.f32.mrb[97].mxu0  ;;  %v3310_v5 = vpop.f32.mrb[97].mxu1 }
 0x214   : > { %v3247_v56 = vadd.f32 %v3246_v60, %v3245_v14  ;;  %v3248_v15 = vpop.f32.mrb[98].mxu0  ;;  %v3311_v57 = vadd.f32 %v3310_v5, %v3309_v32  ;;  %v3312_v61 = vpop.f32.mrb[98].mxu1 }
 0x215   : > { %v3249_v33 = vpop.f32.mrb[99].mxu0  ;;  %v3313_v11 = vpop.f32.mrb[99].mxu1 }
 0x216   : > { %v4949_v24 = vadd.f32 %v3247_v56, %v4856_v28  ;;  %v3250_v51 = vadd.f32 %v3249_v33, %v3248_v15  ;;  %v3314_v12 = vadd.f32 %v3313_v11, %v3312_v61  ;;  %v4952_v30 = vadd.f32 %v3311_v57, %v4853_v16 }
 0x218   : > { %v4955_v40 = vadd.f32 %v3250_v51, %v4862_v8  ;;  %v4958_v55 = vadd.f32 %v3314_v12, %v4859_v26 }
 0x21a   : > { %v3251_v4 = vpop.f32.mrb[100].mxu0  ;;  %v3315_v54 = vpop.f32.mrb[100].mxu1 }
 0x21b   : > { %v3252_v52 = vpop.f32.mrb[101].mxu0  ;;  %v3316_v10 = vpop.f32.mrb[101].mxu1 }
 0x21c   : > { %v3253_v37 = vadd.f32 %v3252_v52, %v3251_v4  ;;  %v3254_v35 = vpop.f32.mrb[102].mxu0  ;;  %v3317_v28 = vadd.f32 %v3316_v10, %v3315_v54  ;;  %v3318_v45 = vpop.f32.mrb[102].mxu1 }
 0x21d   : > { %v3255_v3 = vpop.f32.mrb[103].mxu0  ;;  %v3319_v29 = vpop.f32.mrb[103].mxu1 }
 0x21e   : > { %v4961_v0 = vadd.f32 %v3253_v37, %v4868_v13  ;;  %v3256_v16 = vadd.f32 %v3255_v3, %v3254_v35  ;;  %v3320_v23 = vadd.f32 %v3319_v29, %v3318_v45  ;;  %v4964_v8 = vadd.f32 %v3317_v28, %v4865_v27 }
 0x220   : > { %v4967_v26 = vadd.f32 %v3256_v16, %v4874_v17  ;;  %v4970_v2 = vadd.f32 %v3320_v23, %v4871_v50 }
 0x222   : > { %v3257_v38 = vpop.f32.mrb[104].mxu0  ;;  %v3321_v19 = vpop.f32.mrb[104].mxu1 }
 0x223   : > { %v3258_v58 = vpop.f32.mrb[105].mxu0  ;;  %v3322_v14 = vpop.f32.mrb[105].mxu1 }
 0x224   : > { %v3259_v25 = vadd.f32 %v3258_v58, %v3257_v38  ;;  %v3260_v32 = vpop.f32.mrb[106].mxu0  ;;  %v3323_v13 = vadd.f32 %v3322_v14, %v3321_v19  ;;  %v3324_v60 = vpop.f32.mrb[106].mxu1 }
 0x225   : > { %v3261_v56 = vpop.f32.mrb[107].mxu0  ;;  %v3325_v15 = vpop.f32.mrb[107].mxu1 }
 0x226   : > { %v4973_v5 = vadd.f32 %v3259_v25, %v4880_v21  ;;  %v3262_v27 = vadd.f32 %v3261_v56, %v3260_v32  ;;  %v3326_v57 = vadd.f32 %v3325_v15, %v3324_v60  ;;  %v4976_v17 = vadd.f32 %v3323_v13, %v4877_v63 }
 0x228   : > { %v4979_v50 = vadd.f32 %v3262_v27, %v4886_v49  ;;  %v4982_v61 = vadd.f32 %v3326_v57, %v4883_v31 }
 0x22a   : > { %v3263_v33 = vpop.f32.mrb[108].mxu0  ;;  %v3327_v51 = vpop.f32.mrb[108].mxu1 }
 0x22b   : > { %v3264_v11 = vpop.f32.mrb[109].mxu0  ;;  %v3328_v4 = vpop.f32.mrb[109].mxu1 }
 0x22c   : > { %v3265_v12 = vadd.f32 %v3264_v11, %v3263_v33  ;;  %v3266_v21 = vpop.f32.mrb[110].mxu0  ;;  %v3329_v54 = vadd.f32 %v3328_v4, %v3327_v51  ;;  %v3330_v52 = vpop.f32.mrb[110].mxu1 }
 0x22d   : > { %v3267_v37 = vpop.f32.mrb[111].mxu0  ;;  %v3331_v35 = vpop.f32.mrb[111].mxu1 }
 0x22e   : > { %v4985_v10 = vadd.f32 %v3265_v12, %v4892_v43  ;;  %v3268_v63 = vadd.f32 %v3267_v37, %v3266_v21  ;;  %v3332_v28 = vadd.f32 %v3331_v35, %v3330_v52  ;;  %v4989_v49 = vadd.f32 %v3329_v54, %v4889_v6 }
 0x230   : > { %v4992_v31 = vadd.f32 %v3268_v63, %v4898_v1  ;;  %v4995_v45 = vadd.f32 %v3332_v28, %v4895_v7 }
 0x232   : > { %v3423_v3 = vpop.f32.mrb[112].mxu0  ;;  %v3333_v16 = vpop.f32.mrb[112].mxu1 }
 0x233   : > { %v2367_v29 = vadd.f32 %v3423_v3, %v4916_v41  ;;  %v2358_v23 = vpop.f32.mrb[113].mxu0  ;;  %v3334_v43 = vpop.f32.mrb[113].mxu1 }
 0x234   : > { %v2359_v38 = vadd.f32 %v2358_v23, %v4904_v59  ;;  %v3424_v19 = vpop.f32.mrb[114].mxu0  ;;  %v3335_v6 = vadd.f32 %v3334_v43, %v3333_v16  ;;  %v3336_v1 = vpop.f32.mrb[114].mxu1 }
 0x235   : > { %2487 = vst [vmem:[%s4999_s20 + $0x10] sm:$0xff] %v2367_v29  ;;  %v2370_v7 = vadd.f32 %v3424_v19, %v4922_v53  ;;  %v2361_v58 = vpop.f32.mrb[115].mxu0  ;;  %v3337_v25 = vpop.f32.mrb[115].mxu1  ;;  %v2557_v27 = vmul.f32 %v2367_v29, %v2367_v29 }
 0x236   : > { %2485 = vst [vmem:[%s4999_s20] sm:$0xff] %v2359_v38  ;;  %v2362_v41 = vadd.f32 %v2361_v58, %v4910_v42  ;;  %v3338_v14 = vadd.f32 %v3337_v25, %v3336_v1  ;;  %v5007_v59 = vadd.f32 %v3335_v6, %v4901_v36  ;;  %v2555_v32 = vmul.f32 %v2359_v38, %v2359_v38 }
 0x237   : > { %2488 = vst [vmem:[%s4999_s20 + $0x18] sm:$0xff] %v2370_v7  ;;  %v2558_v11 = vmul.f32 %v2370_v7, %v2370_v7 }
 0x238   : > { %2486 = vst [vmem:[%s4999_s20 + $0x8] sm:$0xff] %v2362_v41  ;;  %v2517_v13 = vadd.f32 %v2362_v41, %v2359_v38  ;;  %v2556_v60 = vmul.f32 %v2362_v41, %v2362_v41  ;;  %v5011_v56 = vadd.f32 %v3338_v14, %v4907_v46 }
 0x23a   : > { %v2518_v53 = vadd.f32 %v2517_v13, %v2367_v29  ;;  %v2587_v15 = vadd.f32 %v2556_v60, %v2555_v32  ;;  %v3427_v57 = vpop.f32.mrb[116].mxu0  ;;  %v3339_v33 = vpop.f32.mrb[116].mxu1 }
 0x23b   : > { %v2383_v42 = vadd.f32 %v3427_v57, %v4940_v9  ;;  %v2374_v51 = vpop.f32.mrb[117].mxu0  ;;  %v3340_v12 = vpop.f32.mrb[117].mxu1 }
 0x23c   : > { %v2588_v36 = vadd.f32 %v2587_v15, %v2557_v27  ;;  %v2375_v4 = vadd.f32 %v2374_v51, %v4928_v39  ;;  %v2519_v21 = vadd.f32 %v2518_v53, %v2370_v7  ;;  %v3428_v54 = vpop.f32.mrb[118].mxu0  ;;  %v3341_v46 = vadd.f32 %v3340_v12, %v3339_v33  ;;  %v3342_v52 = vpop.f32.mrb[118].mxu1 }
 0x23d   : > { %2491 = vst [vmem:[%s4999_s20 + $0x30] sm:$0xff] %v2383_v42  ;;  %v2386_v37 = vadd.f32 %v3428_v54, %v4946_v47  ;;  %v2377_v63 = vpop.f32.mrb[119].mxu0  ;;  %v3343_v3 = vpop.f32.mrb[119].mxu1  ;;  %v2561_v19 = vmul.f32 %v2383_v42, %v2383_v42 }
 0x23e   : > { %2489 = vst [vmem:[%s4999_s20 + $0x20] sm:$0xff] %v2375_v4  ;;  %v2520_v35 = vadd.f32 %v2519_v21, %v2375_v4  ;;  %v2559_v28 = vmul.f32 %v2375_v4, %v2375_v4  ;;  %v2589_v9 = vadd.f32 %v2588_v36, %v2558_v11  ;;  %v2378_v16 = vadd.f32 %v2377_v63, %v4934_v18 }
 0x23f   : > { %2492 = vst [vmem:[%s4999_s20 + $0x38] sm:$0xff] %v2386_v37  ;;  %v3344_v29 = vadd.f32 %v3343_v3, %v3342_v52  ;;  %v5021_v39 = vadd.f32 %v3341_v46, %v4913_v20  ;;  %v2562_v41 = vmul.f32 %v2386_v37, %v2386_v37 }
 0x240   : > { %v2590_v23 = vadd.f32 %v2589_v9, %v2559_v28  ;;  %2490 = vst [vmem:[%s4999_s20 + $0x28] sm:$0xff] %v2378_v16  ;;  %v2521_v43 = vadd.f32 %v2520_v35, %v2378_v16  ;;  %v2560_v38 = vmul.f32 %v2378_v16, %v2378_v16 }
 0x241   : > { %v5025_v47 = vadd.f32 %v3344_v29, %v4919_v48 }
 0x242   : > { %v2522_v6 = vadd.f32 %v2521_v43, %v2383_v42  ;;  %v2591_v1 = vadd.f32 %v2590_v23, %v2560_v38  ;;  %v3431_v7 = vpop.f32.mrb[120].mxu0  ;;  %v3345_v58 = vpop.f32.mrb[120].mxu1 }
 0x243   : > { %v2399_v18 = vadd.f32 %v3431_v7, %v4964_v8  ;;  %v2390_v25 = vpop.f32.mrb[121].mxu0  ;;  %v3346_v14 = vpop.f32.mrb[121].mxu1 }
 0x244   : > { %v2592_v20 = vadd.f32 %v2591_v1, %v2561_v19  ;;  %v2391_v32 = vadd.f32 %v2390_v25, %v4952_v30  ;;  %v2523_v13 = vadd.f32 %v2522_v6, %v2386_v37  ;;  %v3432_v60 = vpop.f32.mrb[122].mxu0  ;;  %v3347_v48 = vadd.f32 %v3346_v14, %v3345_v58  ;;  %v3348_v27 = vpop.f32.mrb[122].mxu1 }
 0x245   : > { %2495 = vst [vmem:[%s4999_s20 + $0x50] sm:$0xff] %v2399_v18  ;;  %v2402_v53 = vadd.f32 %v3432_v60, %v4970_v2  ;;  %v2393_v15 = vpop.f32.mrb[123].mxu0  ;;  %v3349_v42 = vpop.f32.mrb[123].mxu1  ;;  %v2565_v21 = vmul.f32 %v2399_v18, %v2399_v18 }
 0x246   : > { %2493 = vst [vmem:[%s4999_s20 + $0x40] sm:$0xff] %v2391_v32  ;;  %v2524_v57 = vadd.f32 %v2523_v13, %v2391_v32  ;;  %v2563_v33 = vmul.f32 %v2391_v32, %v2391_v32  ;;  %v2593_v8 = vadd.f32 %v2592_v20, %v2562_v41  ;;  %v2394_v51 = vadd.f32 %v2393_v15, %v4958_v55 }
 0x247   : > { %2496 = vst [vmem:[%s4999_s20 + $0x58] sm:$0xff] %v2402_v53  ;;  %v3350_v11 = vadd.f32 %v3349_v42, %v3348_v27  ;;  %v5035_v30 = vadd.f32 %v3347_v48, %v4925_v62  ;;  %v2566_v35 = vmul.f32 %v2402_v53, %v2402_v53 }
 0x248   : > { %v2594_v36 = vadd.f32 %v2593_v8, %v2563_v33  ;;  %2494 = vst [vmem:[%s4999_s20 + $0x48] sm:$0xff] %v2394_v51  ;;  %v2525_v12 = vadd.f32 %v2524_v57, %v2394_v51  ;;  %v2564_v4 = vmul.f32 %v2394_v51, %v2394_v51 }
 0x249   : > { %v5039_v2 = vadd.f32 %v3350_v11, %v4931_v44 }
 0x24a   : > { %v2526_v54 = vadd.f32 %v2525_v12, %v2399_v18  ;;  %v2595_v46 = vadd.f32 %v2594_v36, %v2564_v4  ;;  %v3435_v52 = vpop.f32.mrb[124].mxu0  ;;  %v3351_v37 = vpop.f32.mrb[124].mxu1 }
 0x24b   : > { %v2415_v55 = vadd.f32 %v3435_v52, %v4989_v49  ;;  %v2406_v63 = vpop.f32.mrb[125].mxu0  ;;  %v3352_v28 = vpop.f32.mrb[125].mxu1 }
 0x24c   : > { %v2596_v62 = vadd.f32 %v2595_v46, %v2565_v21  ;;  %v2407_v9 = vadd.f32 %v2406_v63, %v4976_v17  ;;  %v2527_v3 = vadd.f32 %v2526_v54, %v2402_v53  ;;  %v3436_v16 = vpop.f32.mrb[126].mxu0  ;;  %v3353_v44 = vadd.f32 %v3352_v28, %v3351_v37  ;;  %v3354_v29 = vpop.f32.mrb[126].mxu1 }
 0x24d   : > { %2499 = vst [vmem:[%s4999_s20 + $0x70] sm:$0xff] %v2415_v55  ;;  %v2418_v23 = vadd.f32 %v3436_v16, %v4995_v45  ;;  %v2409_v43 = vpop.f32.mrb[127].mxu0  ;;  %v3355_v6 = vpop.f32.mrb[127].mxu1  ;;  %v2569_v45 = vmul.f32 %v2415_v55, %v2415_v55 }
 0x24e   : > { %2497 = vst [vmem:[%s4999_s20 + $0x60] sm:$0xff] %v2407_v9  ;;  %v2528_v38 = vadd.f32 %v2527_v3, %v2407_v9  ;;  %v2567_v19 = vmul.f32 %v2407_v9, %v2407_v9  ;;  %v2597_v49 = vadd.f32 %v2596_v62, %v2566_v35  ;;  %v2410_v1 = vadd.f32 %v2409_v43, %v4982_v61 }
 0x24f   : > { %2500 = vst [vmem:[%s4999_s20 + $0x78] sm:$0xff] %v2418_v23  ;;  %v3356_v7 = vadd.f32 %v3355_v6, %v3354_v29  ;;  %v2286_v17 = vadd.f32 %v3353_v44, %v4937_v34  ;;  %v2570_v48 = vmul.f32 %v2418_v23, %v2418_v23 }
 0x250   : > { %v2598_v58 = vadd.f32 %v2597_v49, %v2567_v19  ;;  %2498 = vst [vmem:[%s4999_s20 + $0x68] sm:$0xff] %v2410_v1  ;;  %v2529_v18 = vadd.f32 %v2528_v38, %v2410_v1  ;;  %v2568_v25 = vmul.f32 %v2410_v1, %v2410_v1 }
 0x251   : > { %v2289_v41 = vadd.f32 %v3356_v7, %v4943_v22 }
 0x252   : > { %v2530_v20 = vadd.f32 %v2529_v18, %v2415_v55  ;;  %v2599_v14 = vadd.f32 %v2598_v58, %v2568_v25  ;;  %v3439_v32 = vpop.f32.mrb[128].mxu0  ;;  %v3357_v13 = vpop.f32.mrb[128].mxu1 }
 0x253   : > { %v2431_v60 = vadd.f32 %v3439_v32, %v5021_v39  ;;  %v2422_v61 = vpop.f32.mrb[129].mxu0  ;;  %v3358_v34 = vpop.f32.mrb[129].mxu1 }
 0x254   : > { %v2600_v27 = vadd.f32 %v2599_v14, %v2569_v45  ;;  %v2423_v53 = vadd.f32 %v2422_v61, %v5007_v59  ;;  %v2531_v15 = vadd.f32 %v2530_v20, %v2418_v23  ;;  %v3440_v57 = vpop.f32.mrb[130].mxu0  ;;  %v3359_v22 = vadd.f32 %v3358_v34, %v3357_v13  ;;  %v3360_v33 = vpop.f32.mrb[130].mxu1 }
 0x255   : > { %2503 = vst [vmem:[%s4999_s20 + $0x90] sm:$0xff] %v2431_v60  ;;  %v2434_v8 = vadd.f32 %v3440_v57, %v5025_v47  ;;  %v2425_v42 = vpop.f32.mrb[131].mxu0  ;;  %v3361_v36 = vpop.f32.mrb[131].mxu1  ;;  %v2573_v47 = vmul.f32 %v2431_v60, %v2431_v60 }
 0x256   : > { %2501 = vst [vmem:[%s4999_s20 + $0x80] sm:$0xff] %v2423_v53  ;;  %v2532_v51 = vadd.f32 %v2531_v15, %v2423_v53  ;;  %v2571_v11 = vmul.f32 %v2423_v53, %v2423_v53  ;;  %v2601_v39 = vadd.f32 %v2600_v27, %v2570_v48  ;;  %v2426_v12 = vadd.f32 %v2425_v42, %v5011_v56 }
 0x257   : > { %2504 = vst [vmem:[%s4999_s20 + $0x98] sm:$0xff] %v2434_v8  ;;  %v3362_v4 = vadd.f32 %v3361_v36, %v3360_v33  ;;  %v2294_v59 = vadd.f32 %v3359_v22, %v4949_v24  ;;  %v2574_v56 = vmul.f32 %v2434_v8, %v2434_v8 }
 0x258   : > { %v2602_v21 = vadd.f32 %v2601_v39, %v2571_v11  ;;  %2502 = vst [vmem:[%s4999_s20 + $0x88] sm:$0xff] %v2426_v12  ;;  %v2533_v54 = vadd.f32 %v2532_v51, %v2426_v12  ;;  %v2572_v46 = vmul.f32 %v2426_v12, %v2426_v12 }
 0x259   : > { %v2297_v52 = vadd.f32 %v3362_v4, %v4955_v40 }
 0x25a   : > { %v2534_v37 = vadd.f32 %v2533_v54, %v2431_v60  ;;  %v2603_v55 = vadd.f32 %v2602_v21, %v2572_v46  ;;  %v3443_v63 = vpop.f32.mrb[132].mxu0  ;;  %v3363_v35 = vpop.f32.mrb[132].mxu1 }
 0x25b   : > { %v2447_v62 = vadd.f32 %v3443_v63, %v2286_v17  ;;  %v2438_v28 = vpop.f32.mrb[133].mxu0  ;;  %v3364_v3 = vpop.f32.mrb[133].mxu1 }
 0x25c   : > { %v2604_v9 = vadd.f32 %v2603_v55, %v2573_v47  ;;  %v2439_v24 = vadd.f32 %v2438_v28, %v5035_v30  ;;  %v2535_v16 = vadd.f32 %v2534_v37, %v2434_v8  ;;  %v3444_v44 = vpop.f32.mrb[134].mxu0  ;;  %v3365_v29 = vadd.f32 %v3364_v3, %v3363_v35  ;;  %v3366_v40 = vpop.f32.mrb[134].mxu1 }
 0x25d   : > { %2507 = vst [vmem:[%s4999_s20 + $0xb0] sm:$0xff] %v2447_v62  ;;  %v2450_v23 = vadd.f32 %v3444_v44, %v2289_v41  ;;  %v2441_v43 = vpop.f32.mrb[135].mxu0  ;;  %v3367_v6 = vpop.f32.mrb[135].mxu1  ;;  %v2577_v41 = vmul.f32 %v2447_v62, %v2447_v62 }
 0x25e   : > { %2505 = vst [vmem:[%s4999_s20 + $0xa0] sm:$0xff] %v2439_v24  ;;  %v2536_v38 = vadd.f32 %v2535_v16, %v2439_v24  ;;  %v2575_v19 = vmul.f32 %v2439_v24, %v2439_v24  ;;  %v2605_v49 = vadd.f32 %v2604_v9, %v2574_v56  ;;  %v2442_v1 = vadd.f32 %v2441_v43, %v5039_v2 }
 0x25f   : > { %2508 = vst [vmem:[%s4999_s20 + $0xb8] sm:$0xff] %v2450_v23  ;;  %v3368_v7 = vadd.f32 %v3367_v6, %v3366_v40  ;;  %v2302_v17 = vadd.f32 %v3365_v29, %v4961_v0  ;;  %v2578_v2 = vmul.f32 %v2450_v23, %v2450_v23 }
 0x260   : > { %v2606_v30 = vadd.f32 %v2605_v49, %v2575_v19  ;;  %2506 = vst [vmem:[%s4999_s20 + $0xa8] sm:$0xff] %v2442_v1  ;;  %v2537_v58 = vadd.f32 %v2536_v38, %v2442_v1  ;;  %v2576_v18 = vmul.f32 %v2442_v1, %v2442_v1 }
 0x261   : > { %v2305_v25 = vadd.f32 %v3368_v7, %v4967_v26 }
 0x262   : > { %v2538_v45 = vadd.f32 %v2537_v58, %v2447_v62  ;;  %v2607_v20 = vadd.f32 %v2606_v30, %v2576_v18  ;;  %v3447_v14 = vpop.f32.mrb[136].mxu0  ;;  %v3369_v32 = vpop.f32.mrb[136].mxu1 }
 0x263   : > { %v2463_v13 = vadd.f32 %v3447_v14, %v2302_v17  ;;  %v2454_v60 = vpop.f32.mrb[137].mxu0  ;;  %v3370_v48 = vpop.f32.mrb[137].mxu1 }
 0x264   : > { %v2608_v61 = vadd.f32 %v2607_v20, %v2577_v41  ;;  %v2455_v0 = vadd.f32 %v2454_v60, %v2294_v59  ;;  %v2539_v27 = vadd.f32 %v2538_v45, %v2450_v23  ;;  %v3448_v34 = vpop.f32.mrb[138].mxu0  ;;  %v3371_v53 = vadd.f32 %v3370_v48, %v3369_v32  ;;  %v3372_v15 = vpop.f32.mrb[138].mxu1 }
 0x265   : > { %2511 = vst [vmem:[%s4999_s20 + $0xd0] sm:$0xff] %v2463_v13  ;;  %v2466_v26 = vadd.f32 %v3448_v34, %v2305_v25  ;;  %v2457_v57 = vpop.f32.mrb[139].mxu0  ;;  %v3373_v42 = vpop.f32.mrb[139].mxu1  ;;  %v2581_v21 = vmul.f32 %v2463_v13, %v2463_v13 }
 0x266   : > { %2509 = vst [vmem:[%s4999_s20 + $0xc0] sm:$0xff] %v2455_v0  ;;  %v2540_v22 = vadd.f32 %v2539_v27, %v2455_v0  ;;  %v2579_v33 = vmul.f32 %v2455_v0, %v2455_v0  ;;  %v2609_v8 = vadd.f32 %v2608_v61, %v2578_v2  ;;  %v2458_v51 = vadd.f32 %v2457_v57, %v2297_v52 }
 0x267   : > { %2512 = vst [vmem:[%s4999_s20 + $0xd8] sm:$0xff] %v2466_v26  ;;  %v3374_v11 = vadd.f32 %v3373_v42, %v3372_v15  ;;  %v2310_v39 = vadd.f32 %v3371_v53, %v4973_v5  ;;  %v2582_v63 = vmul.f32 %v2466_v26, %v2466_v26 }
 0x268   : > { %v2610_v36 = vadd.f32 %v2609_v8, %v2579_v33  ;;  %2510 = vst [vmem:[%s4999_s20 + $0xc8] sm:$0xff] %v2458_v51  ;;  %v2541_v12 = vadd.f32 %v2540_v22, %v2458_v51  ;;  %v2580_v4 = vmul.f32 %v2458_v51, %v2458_v51 }
 0x269   : > { %v2313_v59 = vadd.f32 %v3374_v11, %v4979_v50 }
 0x26a   : > { %v2542_v54 = vadd.f32 %v2541_v12, %v2463_v13  ;;  %v2611_v46 = vadd.f32 %v2610_v36, %v2580_v4  ;;  %v3451_v47 = vpop.f32.mrb[140].mxu0  ;;  %v3375_v37 = vpop.f32.mrb[140].mxu1 }
 0x26b   : > { %v2470_v55 = vpop.f32.mrb[141].mxu0  ;;  %v3376_v52 = vpop.f32.mrb[141].mxu1 }
 0x26c   : > { %v2612_v35 = vadd.f32 %v2611_v46, %v2581_v21  ;;  %v2471_v62 = vadd.f32 %v2470_v55, %v2310_v39  ;;  %v2543_v5 = vadd.f32 %v2542_v54, %v2466_v26  ;;  %v3452_v28 = vpop.f32.mrb[142].mxu0  ;;  %v3377_v56 = vadd.f32 %v3376_v52, %v3375_v37  ;;  %v3378_v9 = vpop.f32.mrb[142].mxu1 }
 0x26d   : > { %v2473_v3 = vpop.f32.mrb[143].mxu0  ;;  %v3379_v44 = vpop.f32.mrb[143].mxu1 }
 0x26e   : > { %2513 = vst [vmem:[%s4999_s20 + $0xe0] sm:$0xff] %v2471_v62  ;;  %v2544_v50 = vadd.f32 %v2543_v5, %v2471_v62  ;;  %v2583_v24 = vmul.f32 %v2471_v62, %v2471_v62  ;;  %v2613_v16 = vadd.f32 %v2612_v35, %v2582_v63  ;;  %v2474_v29 = vadd.f32 %v2473_v3, %v2313_v59 }
 0x26f   : > { %v2318_v40 = vadd.f32 %v3377_v56, %v4985_v10  ;;  %v3380_v23 = vadd.f32 %v3379_v44, %v3378_v9 }
 0x270   : > { %v2614_v43 = vadd.f32 %v2613_v16, %v2583_v24  ;;  %2514 = vst [vmem:[%s4999_s20 + $0xe8] sm:$0xff] %v2474_v29  ;;  %v2545_v38 = vadd.f32 %v2544_v50, %v2474_v29  ;;  %v2584_v19 = vmul.f32 %v2474_v29, %v2474_v29 }
 0x271   : > { %v2479_v49 = vadd.f32 %v3451_v47, %v2318_v40  ;;  %v2321_v6 = vadd.f32 %v3380_v23, %v4992_v31 }
 0x272   : > { %v2615_v1 = vadd.f32 %v2614_v43, %v2584_v19 }
 0x273   : > { %2515 = vst [vmem:[%s4999_s20 + $0xf0] sm:$0xff] %v2479_v49  ;;  %v2585_v10 = vmul.f32 %v2479_v49, %v2479_v49  ;;  %v2482_v7 = vadd.f32 %v3452_v28, %v2321_v6  ;;  %v2546_v17 = vadd.f32 %v2545_v38, %v2479_v49 }
 0x275   : > { %2516 = vst [vmem:[%s4999_s20 + $0xf8] sm:$0xff] %v2482_v7  ;;  %v2586_v30 = vmul.f32 %v2482_v7, %v2482_v7  ;;  %v2547_v58 = vadd.f32 %v2546_v17, %v2482_v7  ;;  %v2616_v18 = vadd.f32 %v2615_v1, %v2585_v10 }
 0x276   : > { %3711 = shalt.err (!%p3708_p7)
}
 0x277   : > { %s3712_s26 = scalar_lea.hbm %s5084_s4, 4096  ;;  %s3716_s10 = scalar_lea.hbm %s5165_s2, 8192 }
 0x278   : > { %p3713_p9 = scmp.ne.s32.totalorder %s5084_s4, %s3712_s26  ;;  %p3717_p5 = scmp.lt.u32.totalorder %s5084_s4, %s5165_s2 }
 0x279   : > { %p3718_p13 = scmp.lt.u32.totalorder %s3716_s10, %s3712_s26  ;;  %p3720_p4 = scmp.lt.u32.totalorder %s3712_s26, %s5084_s4 }
 0x27a   : > { %p3714_p1 = pnand %p3713_p9, %p3924_p12 }
 0x27b   : > { %p3719_p2 = por %p3718_p13, %p3717_p5 }
 0x27c   : > { %p3715_p0 = pneg %p3714_p1 }
 0x27d   : > { %p3721_p6 = por %p3720_p4, %p3719_p2 }
 0x27f   : > { %p3722_p8 = pnand %p3721_p6, %p3715_p0 }
 0x281   : > { %3725 = shalt.err (!%p3722_p8)
}
 0x282   : > { %s3807_s20 = smov 128   ;;  %s3808_s8 = smov 8   ;;  %v2548_v31 = vrot.slane %v2547_v58, 4  ;;  %v2617_v25 = vadd.f32 %v2616_v18, %v2586_v30 }
 0x283   : > { %3478 = dma.vmem_to_hbm [thread:$0]  (%p3924_p12), %s5086_s9, 4096, %s5084_s4, %s2626_s5, %s3807_s20, %s3807_s20, %s3808_s8  }
 0x284   : > { %v2549_v41 = vadd.f32 %v2548_v31, %v2547_v58  ;;  %v2618_v45 = vrot.slane %v2617_v25, 4  ;;  %s2780_s29 = sshll.u32 %s3975_s6, 1  ;;  %s2929_s25 = sshll.u32 %s3851_s16, 5 }
 0x285   : > { %s214_s27 = scalar_lea.vmem [#allocation8], %s2780_s29  ;;  %s5119_s5 = scalar_lea.hbm %s5166_s3, %s2929_s25 }
 0x286   : > { %v2550_v20 = vrot.slane %v2549_v41, 2  ;;  %v2619_v14 = vadd.f32 %v2618_v45, %v2617_v25  ;;  %s2660_s22 = sshll.u32 %s214_s27, 4  ;;  %s2631_s23 = scalar_lea.sflag [#allocation9], %s3975_s6  ;;  %s5121_s22 = int_to_ptr.vmem [resolvable:$true] %s2660_s22 }
 0x287   : > { %s3726_s28 = scalar_lea.vmem %s5121_s22, 32  ;;  %s3809_s16 = smov [#allocation8]  }
 0x288   : > { %v2551_v32 = vadd.f32 %v2550_v20, %v2549_v41  ;;  %v2620_v13 = vrot.slane %v2619_v14, 2  ;;  %p3727_p10 = scmp.ne.s32.totalorder %s5121_s22, %s3726_s28  ;;  %s3730_s26 = sshll.u32 %s3809_s16, 4  ;;  %s3731_s26 = int_to_ptr.vmem [resolvable:$false] %s3730_s26 }
 0x289   : > { %s3732_s30 = scalar_lea.vmem %s3731_s26, 64  ;;  %p3733_p7 = scmp.lt.s32.totalorder %s5121_s22, %s3731_s26 }
 0x28a   : > { %v2552_v60 = vrot.slane %v2551_v32, 1  ;;  %v2621_v2 = vadd.f32 %v2620_v13, %v2619_v14  ;;  %p3728_p11 = pnand %p3727_p10, %p3924_p12  ;;  %p3734_p9 = scmp.lt.s32.totalorder %s3732_s30, %s3726_s28 }
 0x28c   : > { %v2553_v61 = vadd.f32 %v2552_v60, %v2551_v32  ;;  %v2622_v48 = vrot.slane %v2621_v2, 1  ;;  %p3729_p3 = pneg %p3728_p11  ;;  %p3735_p1 = por %p3734_p9, %p3733_p7 }
 0x28e   : > { %2554 = vst [vmem:[%s214_s27] sm:$0x1] %v2553_v61  ;;  %v2623_v0 = vadd.f32 %v2622_v48, %v2621_v2  ;;  %p3736_p0 = pnand %p3735_p1, %p3729_p3 }
 0x290   : > { %2624 = vst [vmem:[%s214_s27 + $0x1] sm:$0x1] %v2623_v0 }
 0x291   : > { %3739 = shalt.err (!%p3736_p0)
}
 0x292   : > { %s3740_s6 = scalar_lea.hbm %s5119_s5, 32  ;;  %s3744_s11 = scalar_lea.hbm %s5166_s3, 64 }
 0x293   : > { %p3741_p5 = scmp.ne.s32.totalorder %s5119_s5, %s3740_s6  ;;  %p3745_p4 = scmp.lt.u32.totalorder %s5119_s5, %s5166_s3 }
 0x294   : > { %p3746_p6 = scmp.lt.u32.totalorder %s3744_s11, %s3740_s6  ;;  %p3748_p10 = scmp.lt.u32.totalorder %s3740_s6, %s5119_s5 }
 0x295   : > { %p3742_p13 = pnand %p3741_p5, %p3924_p12 }
 0x296   : > { %p3747_p8 = por %p3746_p6, %p3745_p4 }
 0x297   : > { %p3743_p2 = pneg %p3742_p13 }
 0x298   : > { %p3749_p11 = por %p3748_p10, %p3747_p8 }
 0x29a   : > { %p3750_p3 = pnand %p3749_p11, %p3743_p2 }
 0x29c   : > { %3753 = shalt.err (!%p3750_p3)
}
 0x29d   : > { %3479 = dma.vmem_to_hbm [thread:$0]  (%p3924_p12), %s5121_s22, 32, %s5119_s5, %s2631_s23  }
 0x29e PF: > { %s2672_s8 = sand.u32 1, %s3788_s12   ;;  %p5210_p7 = scmp.ne.s32.totalorder %s5182_s19, 0 }
 0x29f   : > { %p5211_p9 = scmp.ge.s32.totalorder %s3800_s15, 2  ;;  %s2673_s29 = scalar_lea.sflag [#allocation4], %s2672_s8 }
 0x2a1   : > { %p3491_p1 = pnand %p5211_p9, %p5210_p7 }
 0x2a3   : > { %3779 = dma.done.wait (!%p3491_p1), %s2673_s29, 4096  }
 0x2a4   : > { %3781 = vsyncadd (!%p3491_p1), %s2673_s29, 4294963200  ;;  %s2682_s25 = scalar_lea.sflag [#allocation9], %s2672_s8 }
 0x2a5   : > { %3783 = dma.done.wait (!%p3491_p1), %s2682_s25, 32  }
 0x2a6   : > { %3785 = vsyncadd (!%p3491_p1), %s2682_s25, 4294967264  ;;  %p21_p12 = scmp.ge.s32.totalorder %s3886_s24, 4   ;;  %s5212_s12 = smov %s3792_s13 }
 0x2a7   : > { %s5213_s13 = smov %s3796_s14  ;;  %s5214_s14 = smov %s3920_s17 }
 0x2a8   : > { %s5215_s15 = smov %s3886_s24  ;;  %23 = sbr.rel (!%p21_p12) target bundleno = 8 (0x8), region = 94 }
 0x2af   :  { %2687 = vsyncpa [#allocation3], 1 }
 0x2b0   :  { %2689 = vsyncpa [#allocation3 + $0x1], 1 }
 0x2b1   :  { %2690 = vsyncpa [#allocation6], 1 }
 0x2b2   :  { %2691 = vsyncpa [#allocation4], 1 }
 0x2b3   :  { %2693 = vsyncpa [#allocation4 + $0x1], 1 }
 0x2b4   :  { %2694 = vsyncpa [#allocation9], 1 }
 0x2b5   :  { %2696 = vsyncpa [#allocation9 + $0x1], 1 }

</bundles_post_ra>
